<compile_context>
chip_gen: v6e
topology: v6e:2x2x1
jax: 0.10.0
libtpu: 0.0.40
codegen_flags: <defaults>
</compile_context>

<pallas_src>
import functools

import jax
import jax.numpy as jnp
import numpy as np
from jax import lax
from jax.experimental import pallas as pl
from jax.experimental.pallas import tpu as pltpu

LEAK = 0.2
BN_EPS = 0.8          # nn.BatchNorm2d(C, 0.8): the 2nd positional arg is eps.
F32 = jnp.float32

# (Cin, Cout, H_in(=W_in), use_bn) for the four conv blocks (28x28 input).
LAYERS = [(1, 16, 28, False), (16, 32, 14, True), (32, 64, 7, True), (64, 128, 4, True)]


def _out_hw(h):
    # 3x3 conv, stride 2, padding 1
    return (h - 1) // 2 + 1


def _vmem_spec():
    return pl.BlockSpec(memory_space=pltpu.MemorySpace.VMEM)


# ---------------------------------------------------------------------------
# The fused kernel
# ---------------------------------------------------------------------------
def _disc_kernel(xp1_ref,
                 t1_ref, c1_ref,
                 t2_ref, c2_ref, g2_ref, be2_ref, rf2_ref, rb2_ref,
                 t3_ref, c3_ref, g3_ref, be3_ref, rf3_ref, rb3_ref,
                 t4_ref, c4_ref, g4_ref, be4_ref, rf4_ref, rb4_ref,
                 wh0_ref, wh1_ref, bh_ref,
                 label_ref, comb_ref,
                 f1_ref, f2_ref, f3_ref, f4_ref,
                 s2_ref, s3_ref, s4_ref, v4_ref,
                 *, n):
    """Whole Discriminator forward for one (small) batch, fully VMEM resident."""

    def conv_rows(src_ref, taps_ref, bias_ref, h_in):
        # src_ref: ((h_in+2)*n, W*Cin) row-padded input, rows ordered (h, sample).
        # taps_ref[k]: (W*Cin, Wout*Cout) -- kw taps / stride-2 columns / W-padding
        # of weight-tap kh=k folded in.  Result has one row group per *unit* row
        # offset; only every second group is a real conv-output row.
        rows = h_in * n
        acc = jnp.dot(src_ref[pl.ds(0, rows), :], taps_ref[0],
                      preferred_element_type=jnp.float32)
        acc = acc + jnp.dot(src_ref[pl.ds(n, rows), :], taps_ref[1],
                            preferred_element_type=jnp.float32)
        acc = acc + jnp.dot(src_ref[pl.ds(2 * n, rows), :], taps_ref[2],
                            preferred_element_type=jnp.float32)
        acc = acc + bias_ref[...]
        # TODO(synk): Dropout2d(0.25) is stochastic; treated as identity (eval).
        return jnp.where(acc > 0, acc, LEAK * acc)          # LeakyReLU(0.2)

    def batchnorm(v, g_ref, be_ref, rf_ref, rb_ref, count):
        # Training-mode BatchNorm2d on a (rows, Wout*Cout) slab.  One pass:
        # var = E[x^2] - mean^2.  Per-channel fold / broadcast across the Wout
        # column groups via tiny 0/1 matmuls rf (Wout*C, C) and rb (C, Wout*C).
        inv = 1.0 / count
        colsum = jnp.sum(v, axis=0, keepdims=True)
        colsq = jnp.sum(v * v, axis=0, keepdims=True)
        mean = jnp.dot(colsum, rf_ref[...], preferred_element_type=jnp.float32) * inv
        ex2 = jnp.dot(colsq, rf_ref[...], preferred_element_type=jnp.float32) * inv
        var = ex2 - mean * mean
        s = g_ref[...] * jax.lax.rsqrt(var + BN_EPS)
        t = be_ref[...] - mean * s
        s_b = jnp.dot(s, rb_ref[...], preferred_element_type=jnp.float32)
        t_b = jnp.dot(t, rb_ref[...], preferred_element_type=jnp.float32)
        return v * s_b + t_b

    def layer(src_ref, taps_ref, bias_ref, h_in, ho, full_ref, dst_ref, dst_off, bn):
        # conv + bias + LeakyReLU at unit row stride
        full_ref[...] = conv_rows(src_ref, taps_ref, bias_ref, h_in)
        # keep the stride-2 row groups (the real conv output rows)
        for i in range(ho):
            dst_ref[pl.ds(dst_off + i * n, n), :] = full_ref[pl.ds(2 * i * n, n), :]
        if bn is not None:
            g_ref, be_ref, rf_ref, rb_ref = bn
            sl = (pl.ds(dst_off, ho * n), slice(None))
            dst_ref[sl] = batchnorm(dst_ref[sl], g_ref, be_ref, rf_ref, rb_ref,
                                    n * ho * ho)

    # Zero the row-padded inter-layer buffers (only the +-1 padding rows really
    # need it; buffers are tiny so zero everything).
    s2_ref[...] = jnp.zeros(s2_ref.shape, F32)
    s3_ref[...] = jnp.zeros(s3_ref.shape, F32)
    s4_ref[...] = jnp.zeros(s4_ref.shape, F32)

    srcs = (xp1_ref, s2_ref, s3_ref, s4_ref)
    fulls = (f1_ref, f2_ref, f3_ref, f4_ref)
    dsts = (s2_ref, s3_ref, s4_ref, v4_ref)
    taps = (t1_ref, t2_ref, t3_ref, t4_ref)
    biases = (c1_ref, c2_ref, c3_ref, c4_ref)
    bns = (None,
           (g2_ref, be2_ref, rf2_ref, rb2_ref),
           (g3_ref, be3_ref, rf3_ref, rb3_ref),
           (g4_ref, be4_ref, rf4_ref, rb4_ref))

    for li, (_, _, h_in, _) in enumerate(LAYERS):
        ho = _out_hw(h_in)
        dst_off = 0 if li == len(LAYERS) - 1 else n     # last layer: unpadded buffer
        layer(srcs[li], taps[li], biases[li], h_in, ho, fulls[li], dsts[li],
              dst_off, bns[li])

    # Heads: one concatenated, 128-lane padded matmul
    #   columns = [label logits (0:10) | validity (10) | code (11:13) | zero pad].
    # v4_ref rows: [0:n] -> h=0, [n:2n] -> h=1 (feature permutation folded into W).
    logits = (jnp.dot(v4_ref[pl.ds(0, n), :], wh0_ref[...],
                      preferred_element_type=jnp.float32)
              + jnp.dot(v4_ref[pl.ds(n, n), :], wh1_ref[...],
                        preferred_element_type=jnp.float32)
              + bh_ref[...])
    comb_ref[...] = logits                              # lane-dense (n, 128) store

    lab = logits[:, 0:10]
    m = jnp.max(lab, axis=-1, keepdims=True)
    e = jnp.exp(lab - m)
    denom = jnp.sum(e, axis=-1, keepdims=True)
    label_ref[...] = e * pl.reciprocal(denom, approx=True)


# ---------------------------------------------------------------------------
# Parameter preprocessing (runs once, host side)
# ---------------------------------------------------------------------------
def prepare_pallas_params(params):
    """Precompute matmul-friendly operands consumed by the fused kernel."""
    prep = {"convs": []}
    for (cin, cout, h, use_bn), layer in zip(LAYERS, params["convs"]):
        w = np.asarray(layer["w"], np.float32)           # (Cout, Cin, 3, 3)
        ho = _out_hw(h)
        # taps[k, wi*Cin+ci, j*Cout+co] = w[co, ci, k, kw] with wi = 2j + kw - 1
        taps = np.zeros((3, h, cin, ho, cout), np.float32)
        for k in range(3):
            for j in range(ho):
                for kw in range(3):
                    wi = 2 * j + kw - 1
                    if 0 <= wi < h:
                        taps[k, wi, :, j, :] = w[:, :, k, kw].T
        entry = {
            "taps": jnp.asarray(taps.reshape(3, h * cin, ho * cout)),
            "bias": jnp.asarray(np.tile(np.asarray(layer["b"], np.float32), ho)[None, :]),
        }
        if use_bn:
            eye = np.eye(cout, dtype=np.float32)
            entry["gamma"] = jnp.asarray(np.asarray(layer["gamma"], np.float32)[None, :])
            entry["beta"] = jnp.asarray(np.asarray(layer["beta"], np.float32)[None, :])
            entry["rfold"] = jnp.asarray(np.tile(eye, (ho, 1)))    # (ho*C, C)
            entry["rbcast"] = jnp.asarray(np.tile(eye, (1, ho)))   # (C, ho*C)
        prep["convs"].append(entry)

    # Heads: concat [label(10) | validity(1) | code(2)], permute the torch
    # (c, h, w) flatten order into this kernel's (h -> operand, row w*128+c)
    # layout, pad the output dim to 128 lanes.
    (wv, bv), (wl, bl), (wc, bc) = params["lins"]
    w_all = np.concatenate([np.asarray(wl), np.asarray(wv), np.asarray(wc)],
                           axis=0).astype(np.float32)              # (13, 512)
    b_all = np.concatenate([np.asarray(bl), np.asarray(bv), np.asarray(bc)],
                           axis=0).astype(np.float32)              # (13,)
    w_r = w_all.reshape(13, 128, 2, 2).transpose(2, 3, 1, 0)       # (h, w, c, 13)
    wh = np.zeros((2, 2 * 128, 128), np.float32)
    wh[:, :, :13] = w_r.reshape(2, 2 * 128, 13)
    bh = np.zeros((1, 128), np.float32)
    bh[0, :13] = b_all
    prep["wh0"] = jnp.asarray(wh[0])
    prep["wh1"] = jnp.asarray(wh[1])
    prep["bh"] = jnp.asarray(bh)
    return prep


# ---------------------------------------------------------------------------
# Forward wrapper
# ---------------------------------------------------------------------------
def discriminator_forward(img, prep):
    """img: (N, 1, 28, 28) f32 -> (validity (N,1), label (N,10), code (N,2))."""
    n = img.shape[0]
    # Row-pad only (W padding is folded into the tap matrices) and interleave the
    # samples into the (h, sample) row order used throughout the kernel.
    xp = jnp.pad(img[:, 0], ((0, 0), (1, 1), (0, 0)))              # (N, 30, 28)
    xp = jnp.transpose(xp, (1, 0, 2)).reshape((28 + 2) * n, 28)

    c1, c2, c3, c4 = prep["convs"]
    inputs = [xp,
              c1["taps"], c1["bias"],
              c2["taps"], c2["bias"], c2["gamma"], c2["beta"], c2["rfold"], c2["rbcast"],
              c3["taps"], c3["bias"], c3["gamma"], c3["beta"], c3["rfold"], c3["rbcast"],
              c4["taps"], c4["bias"], c4["gamma"], c4["beta"], c4["rfold"], c4["rbcast"],
              prep["wh0"], prep["wh1"], prep["bh"]]

    hs = [h for (_, _, h, _) in LAYERS]                 # [28, 14, 7, 4]
    outs = [_out_hw(h) for h in hs]                     # [14, 7, 4, 2]
    couts = [c for (_, c, _, _) in LAYERS]              # [16, 32, 64, 128]
    full_shapes = [(hs[i] * n, outs[i] * couts[i]) for i in range(4)]
    pad_shapes = [((outs[i] + 2) * n, outs[i] * couts[i]) for i in range(3)]
    v4_shape = (outs[3] * n, outs[3] * couts[3])
    scratch_shapes = ([pltpu.VMEM(s, F32) for s in full_shapes]
                      + [pltpu.VMEM(s, F32) for s in pad_shapes]
                      + [pltpu.VMEM(v4_shape, F32)])

    kern = functools.partial(_disc_kernel, n=n)
    label, comb = pl.pallas_call(
        kern,
        out_shape=(jax.ShapeDtypeStruct((n, 10), F32),
                   jax.ShapeDtypeStruct((n, 128), F32)),
        in_specs=[_vmem_spec()] * len(inputs),
        out_specs=(_vmem_spec(), _vmem_spec()),
        scratch_shapes=scratch_shapes,
        compiler_params=pltpu.CompilerParams(vmem_limit_bytes=32 * 1024 * 1024),
    )(*inputs)

    validity = comb[:, 10:11]
    code = comb[:, 11:13]
    return validity, label, code


# ---------------------------------------------------------------------------
# Raw ("torch-like") parameters and a pure-JAX reference for validation
# ---------------------------------------------------------------------------
def init_params(key):
    params = {"convs": [], "lins": []}
    for cin, cout, _, use_bn in LAYERS:
        key, kw, kb, kg, kbeta = jax.random.split(key, 5)
        w = jax.random.normal(kw, (cout, cin, 3, 3), F32) / float(np.sqrt(cin * 9))
        b = 0.05 * jax.random.normal(kb, (cout,), F32)
        gamma = 1.0 + 0.1 * jax.random.normal(kg, (cout,), F32)
        beta = 0.1 * jax.random.normal(kbeta, (cout,), F32)
        params["convs"].append(dict(w=w, b=b, gamma=gamma, beta=beta, use_bn=use_bn))
    for dout in (1, 10, 2):                 # validity, label, code
        key, kw, kb = jax.random.split(key, 3)
        w = jax.random.normal(kw, (dout, 512), F32) / float(np.sqrt(512.0))
        b = 0.05 * jax.random.normal(kb, (dout,), F32)
        params["lins"].append((w, b))
    return params


def reference_forward(img, params):
    x = img
    for layer in params["convs"]:
        x = lax.conv_general_dilated(
            x, layer["w"], window_strides=(2, 2), padding=((1, 1), (1, 1)),
            dimension_numbers=("NCHW", "OIHW", "NCHW"))
        x = x + layer["b"][None, :, None, None]
        x = jnp.where(x > 0, x, LEAK * x)                 # LeakyReLU(0.2)
        if layer["use_bn"]:                               # training-mode BN, eps=0.8
            mean = jnp.mean(x, axis=(0, 2, 3), keepdims=True)
            var = jnp.mean((x - mean) ** 2, axis=(0, 2, 3), keepdims=True)
            x = (x - mean) * jax.lax.rsqrt(var + BN_EPS)
            x = x * layer["gamma"][None, :, None, None] + layer["beta"][None, :, None, None]
    flat = x.reshape(x.shape[0], -1)
    (wv, bv), (wl, bl), (wc, bc) = params["lins"]
    validity = flat @ wv.T + bv
    label = jax.nn.softmax(flat @ wl.T + bl, axis=-1)
    code = flat @ wc.T + bc
    return validity, label, code


if __name__ == "__main__":
    key = jax.random.PRNGKey(0)
    kimg, kparam = jax.random.split(key)
    # 28x28 single-channel input is required so the conv stack yields
    # 128 * 2 * 2 = 512 features feeding the Linear(512, ...) heads.
    img = jax.random.normal(kimg, (2, 1, 28, 28), F32)
    params = init_params(kparam)
    prep = prepare_pallas_params(params)

    fwd = jax.jit(discriminator_forward)
    validity, label, code = jax.block_until_ready(fwd(img, prep))

    assert validity.shape == (2, 1)
    assert label.shape == (2, 10)
    assert code.shape == (2, 2)
    assert jnp.allclose(jnp.sum(label, axis=-1), 1.0, atol=2e-2)

    # Validate against a plain-JAX (lax.conv) implementation of the same forward.
    v_ref, l_ref, c_ref = reference_forward(img, params)
    assert jnp.allclose(validity, v_ref, rtol=2e-2, atol=2e-2)
    assert jnp.allclose(label, l_ref, rtol=2e-2, atol=2e-2)
    assert jnp.allclose(code, c_ref, rtol=2e-2, atol=2e-2)

    print("KERNEL_OK")
</pallas_src>

<mosaic_0001>
module attributes {stable_mosaic.version = 11 : i64} {
  func.func @_disc_kernel(%arg0: memref<60x28xf32, #tpu.memory_space<vmem>>, %arg1: memref<3x28x224xf32, #tpu.memory_space<vmem>>, %arg2: memref<1x224xf32, #tpu.memory_space<vmem>>, %arg3: memref<3x224x224xf32, #tpu.memory_space<vmem>>, %arg4: memref<1x224xf32, #tpu.memory_space<vmem>>, %arg5: memref<1x32xf32, #tpu.memory_space<vmem>>, %arg6: memref<1x32xf32, #tpu.memory_space<vmem>>, %arg7: memref<224x32xf32, #tpu.memory_space<vmem>>, %arg8: memref<32x224xf32, #tpu.memory_space<vmem>>, %arg9: memref<3x224x256xf32, #tpu.memory_space<vmem>>, %arg10: memref<1x256xf32, #tpu.memory_space<vmem>>, %arg11: memref<1x64xf32, #tpu.memory_space<vmem>>, %arg12: memref<1x64xf32, #tpu.memory_space<vmem>>, %arg13: memref<256x64xf32, #tpu.memory_space<vmem>>, %arg14: memref<64x256xf32, #tpu.memory_space<vmem>>, %arg15: memref<3x256x256xf32, #tpu.memory_space<vmem>>, %arg16: memref<1x256xf32, #tpu.memory_space<vmem>>, %arg17: memref<1x128xf32, #tpu.memory_space<vmem>>, %arg18: memref<1x128xf32, #tpu.memory_space<vmem>>, %arg19: memref<256x128xf32, #tpu.memory_space<vmem>>, %arg20: memref<128x256xf32, #tpu.memory_space<vmem>>, %arg21: memref<256x128xf32, #tpu.memory_space<vmem>>, %arg22: memref<256x128xf32, #tpu.memory_space<vmem>>, %arg23: memref<1x128xf32, #tpu.memory_space<vmem>>, %arg24: memref<2x10xf32, #tpu.memory_space<vmem>>, %arg25: memref<2x128xf32, #tpu.memory_space<vmem>>, %arg26: memref<56x224xf32, #tpu.memory_space<vmem>>, %arg27: memref<28x224xf32, #tpu.memory_space<vmem>>, %arg28: memref<14x256xf32, #tpu.memory_space<vmem>>, %arg29: memref<8x256xf32, #tpu.memory_space<vmem>>, %arg30: memref<32x224xf32, #tpu.memory_space<vmem>>, %arg31: memref<18x224xf32, #tpu.memory_space<vmem>>, %arg32: memref<12x256xf32, #tpu.memory_space<vmem>>, %arg33: memref<4x256xf32, #tpu.memory_space<vmem>>) attributes {dimension_semantics = [], scalar_prefetch = 0 : i64, scratch_operands = 8 : i64, tpu.core_type = #tpu.core_type<tc>} {
    %cst = arith.constant 0.000000e+00 : f32
    %0 = vector.broadcast %cst : f32 to vector<32x224xf32>
    %c0 = arith.constant 0 : index
    %c0_0 = arith.constant 0 : index
    %1 = vector.load %arg30[%c0, %c0_0] : memref<32x224xf32, #tpu.memory_space<vmem>>, vector<32x224xf32>
    tpu.vector_store %arg30[%c0, %c0_0], %0 {strides = array<i32>} : memref<32x224xf32, #tpu.memory_space<vmem>>, vector<32x224xf32>,
    %cst_1 = arith.constant 0.000000e+00 : f32
    %2 = vector.broadcast %cst_1 : f32 to vector<18x224xf32>
    %c0_2 = arith.constant 0 : index
    %c0_3 = arith.constant 0 : index
    %3 = vector.load %arg31[%c0_2, %c0_3] : memref<18x224xf32, #tpu.memory_space<vmem>>, vector<18x224xf32>
    tpu.vector_store %arg31[%c0_2, %c0_3], %2 {strides = array<i32>} : memref<18x224xf32, #tpu.memory_space<vmem>>, vector<18x224xf32>,
    %cst_4 = arith.constant 0.000000e+00 : f32
    %4 = vector.broadcast %cst_4 : f32 to vector<12x256xf32>
    %c0_5 = arith.constant 0 : index
    %c0_6 = arith.constant 0 : index
    %5 = vector.load %arg32[%c0_5, %c0_6] : memref<12x256xf32, #tpu.memory_space<vmem>>, vector<12x256xf32>
    tpu.vector_store %arg32[%c0_5, %c0_6], %4 {strides = array<i32>} : memref<12x256xf32, #tpu.memory_space<vmem>>, vector<12x256xf32>,
    %c0_7 = arith.constant 0 : index
    %c0_8 = arith.constant 0 : index
    %6 = vector.load %arg0[%c0_7, %c0_8] : memref<60x28xf32, #tpu.memory_space<vmem>>, vector<56x28xf32>
    %c0_9 = arith.constant 0 : index
    %c0_10 = arith.constant 0 : index
    %c0_11 = arith.constant 0 : index
    %7 = vector.load %arg1[%c0_9, %c0_10, %c0_11] : memref<3x28x224xf32, #tpu.memory_space<vmem>>, vector<1x28x224xf32>
    %8 = vector.shape_cast %7 : vector<1x28x224xf32> to vector<28x224xf32>
    %cst_12 = arith.constant dense<0.000000e+00> : vector<56x224xf32>
    %9 = tpu.matmul %6, %8, %cst_12 {dimension_numbers = #tpu.dot_dimension_numbers<[1], [0], [0], [1], [0, 0, 1, 1], [], []>} : vector<56x28xf32>, vector<28x224xf32>, vector<56x224xf32> -> vector<56x224xf32>
    %c2 = arith.constant 2 : index
    %c0_13 = arith.constant 0 : index
    %10 = vector.load %arg0[%c2, %c0_13] : memref<60x28xf32, #tpu.memory_space<vmem>>, vector<56x28xf32>
    %c1 = arith.constant 1 : index
    %c0_14 = arith.constant 0 : index
    %c0_15 = arith.constant 0 : index
    %11 = vector.load %arg1[%c1, %c0_14, %c0_15] : memref<3x28x224xf32, #tpu.memory_space<vmem>>, vector<1x28x224xf32>
    %12 = vector.shape_cast %11 : vector<1x28x224xf32> to vector<28x224xf32>
    %cst_16 = arith.constant dense<0.000000e+00> : vector<56x224xf32>
    %13 = tpu.matmul %10, %12, %cst_16 {dimension_numbers = #tpu.dot_dimension_numbers<[1], [0], [0], [1], [0, 0, 1, 1], [], []>} : vector<56x28xf32>, vector<28x224xf32>, vector<56x224xf32> -> vector<56x224xf32>
    %14 = arith.addf %9, %13 : vector<56x224xf32>
    %c4 = arith.constant 4 : index
    %c0_17 = arith.constant 0 : index
    %15 = vector.load %arg0[%c4, %c0_17] : memref<60x28xf32, #tpu.memory_space<vmem>>, vector<56x28xf32>
    %c2_18 = arith.constant 2 : index
    %c0_19 = arith.constant 0 : index
    %c0_20 = arith.constant 0 : index
    %16 = vector.load %arg1[%c2_18, %c0_19, %c0_20] : memref<3x28x224xf32, #tpu.memory_space<vmem>>, vector<1x28x224xf32>
    %17 = vector.shape_cast %16 : vector<1x28x224xf32> to vector<28x224xf32>
    %cst_21 = arith.constant dense<0.000000e+00> : vector<56x224xf32>
    %18 = tpu.matmul %15, %17, %cst_21 {dimension_numbers = #tpu.dot_dimension_numbers<[1], [0], [0], [1], [0, 0, 1, 1], [], []>} : vector<56x28xf32>, vector<28x224xf32>, vector<56x224xf32> -> vector<56x224xf32>
    %19 = arith.addf %14, %18 : vector<56x224xf32>
    %c0_22 = arith.constant 0 : index
    %c0_23 = arith.constant 0 : index
    %20 = vector.load %arg2[%c0_22, %c0_23] : memref<1x224xf32, #tpu.memory_space<vmem>>, vector<1x224xf32>
    %21 = vector.broadcast %20 : vector<1x224xf32> to vector<56x224xf32>
    %22 = arith.addf %19, %21 : vector<56x224xf32>
    %cst_24 = arith.constant 0.000000e+00 : f32
    %23 = vector.broadcast %cst_24 : f32 to vector<56x224xf32>
    %24 = arith.cmpf ogt, %22, %23 : vector<56x224xf32>
    %cst_25 = arith.constant 2.000000e-01 : f32
    %25 = vector.broadcast %cst_25 : f32 to vector<56x224xf32>
    %26 = arith.mulf %25, %22 : vector<56x224xf32>
    %27 = arith.select %24, %22, %26 : vector<56x224xi1>, vector<56x224xf32>
    %c0_26 = arith.constant 0 : index
    %c0_27 = arith.constant 0 : index
    %28 = vector.load %arg26[%c0_26, %c0_27] : memref<56x224xf32, #tpu.memory_space<vmem>>, vector<56x224xf32>
    tpu.vector_store %arg26[%c0_26, %c0_27], %27 {strides = array<i32>} : memref<56x224xf32, #tpu.memory_space<vmem>>, vector<56x224xf32>,
    %c0_28 = arith.constant 0 : index
    %c0_29 = arith.constant 0 : index
    %29 = vector.load %arg26[%c0_28, %c0_29] : memref<56x224xf32, #tpu.memory_space<vmem>>, vector<2x224xf32>
    %c2_30 = arith.constant 2 : index
    %c0_31 = arith.constant 0 : index
    %30 = vector.load %arg30[%c2_30, %c0_31] : memref<32x224xf32, #tpu.memory_space<vmem>>, vector<2x224xf32>
    tpu.vector_store %arg30[%c2_30, %c0_31], %29 {strides = array<i32>} : memref<32x224xf32, #tpu.memory_space<vmem>>, vector<2x224xf32>,
    %c4_32 = arith.constant 4 : index
    %c0_33 = arith.constant 0 : index
    %31 = vector.load %arg26[%c4_32, %c0_33] : memref<56x224xf32, #tpu.memory_space<vmem>>, vector<2x224xf32>
    %c4_34 = arith.constant 4 : index
    %c0_35 = arith.constant 0 : index
    %32 = vector.load %arg30[%c4_34, %c0_35] : memref<32x224xf32, #tpu.memory_space<vmem>>, vector<2x224xf32>
    tpu.vector_store %arg30[%c4_34, %c0_35], %31 {strides = array<i32>} : memref<32x224xf32, #tpu.memory_space<vmem>>, vector<2x224xf32>,
    %c8 = arith.constant 8 : index
    %c0_36 = arith.constant 0 : index
    %33 = vector.load %arg26[%c8, %c0_36] : memref<56x224xf32, #tpu.memory_space<vmem>>, vector<2x224xf32>
    %c6 = arith.constant 6 : index
    %c0_37 = arith.constant 0 : index
    %34 = vector.load %arg30[%c6, %c0_37] : memref<32x224xf32, #tpu.memory_space<vmem>>, vector<2x224xf32>
    tpu.vector_store %arg30[%c6, %c0_37], %33 {strides = array<i32>} : memref<32x224xf32, #tpu.memory_space<vmem>>, vector<2x224xf32>,
    %c12 = arith.constant 12 : index
    %c0_38 = arith.constant 0 : index
    %35 = vector.load %arg26[%c12, %c0_38] : memref<56x224xf32, #tpu.memory_space<vmem>>, vector<2x224xf32>
    %c8_39 = arith.constant 8 : index
    %c0_40 = arith.constant 0 : index
    %36 = vector.load %arg30[%c8_39, %c0_40] : memref<32x224xf32, #tpu.memory_space<vmem>>, vector<2x224xf32>
    tpu.vector_store %arg30[%c8_39, %c0_40], %35 {strides = array<i32>} : memref<32x224xf32, #tpu.memory_space<vmem>>, vector<2x224xf32>,
    %c16 = arith.constant 16 : index
    %c0_41 = arith.constant 0 : index
    %37 = vector.load %arg26[%c16, %c0_41] : memref<56x224xf32, #tpu.memory_space<vmem>>, vector<2x224xf32>
    %c10 = arith.constant 10 : index
    %c0_42 = arith.constant 0 : index
    %38 = vector.load %arg30[%c10, %c0_42] : memref<32x224xf32, #tpu.memory_space<vmem>>, vector<2x224xf32>
    tpu.vector_store %arg30[%c10, %c0_42], %37 {strides = array<i32>} : memref<32x224xf32, #tpu.memory_space<vmem>>, vector<2x224xf32>,
    %c20 = arith.constant 20 : index
    %c0_43 = arith.constant 0 : index
    %39 = vector.load %arg26[%c20, %c0_43] : memref<56x224xf32, #tpu.memory_space<vmem>>, vector<2x224xf32>
    %c12_44 = arith.constant 12 : index
    %c0_45 = arith.constant 0 : index
    %40 = vector.load %arg30[%c12_44, %c0_45] : memref<32x224xf32, #tpu.memory_space<vmem>>, vector<2x224xf32>
    tpu.vector_store %arg30[%c12_44, %c0_45], %39 {strides = array<i32>} : memref<32x224xf32, #tpu.memory_space<vmem>>, vector<2x224xf32>,
    %c24 = arith.constant 24 : index
    %c0_46 = arith.constant 0 : index
    %41 = vector.load %arg26[%c24, %c0_46] : memref<56x224xf32, #tpu.memory_space<vmem>>, vector<2x224xf32>
    %c14 = arith.constant 14 : index
    %c0_47 = arith.constant 0 : index
    %42 = vector.load %arg30[%c14, %c0_47] : memref<32x224xf32, #tpu.memory_space<vmem>>, vector<2x224xf32>
    tpu.vector_store %arg30[%c14, %c0_47], %41 {strides = array<i32>} : memref<32x224xf32, #tpu.memory_space<vmem>>, vector<2x224xf32>,
    %c28 = arith.constant 28 : index
    %c0_48 = arith.constant 0 : index
    %43 = vector.load %arg26[%c28, %c0_48] : memref<56x224xf32, #tpu.memory_space<vmem>>, vector<2x224xf32>
    %c16_49 = arith.constant 16 : index
    %c0_50 = arith.constant 0 : index
    %44 = vector.load %arg30[%c16_49, %c0_50] : memref<32x224xf32, #tpu.memory_space<vmem>>, vector<2x224xf32>
    tpu.vector_store %arg30[%c16_49, %c0_50], %43 {strides = array<i32>} : memref<32x224xf32, #tpu.memory_space<vmem>>, vector<2x224xf32>,
    %c32 = arith.constant 32 : index
    %c0_51 = arith.constant 0 : index
    %45 = vector.load %arg26[%c32, %c0_51] : memref<56x224xf32, #tpu.memory_space<vmem>>, vector<2x224xf32>
    %c18 = arith.constant 18 : index
    %c0_52 = arith.constant 0 : index
    %46 = vector.load %arg30[%c18, %c0_52] : memref<32x224xf32, #tpu.memory_space<vmem>>, vector<2x224xf32>
    tpu.vector_store %arg30[%c18, %c0_52], %45 {strides = array<i32>} : memref<32x224xf32, #tpu.memory_space<vmem>>, vector<2x224xf32>,
    %c36 = arith.constant 36 : index
    %c0_53 = arith.constant 0 : index
    %47 = vector.load %arg26[%c36, %c0_53] : memref<56x224xf32, #tpu.memory_space<vmem>>, vector<2x224xf32>
    %c20_54 = arith.constant 20 : index
    %c0_55 = arith.constant 0 : index
    %48 = vector.load %arg30[%c20_54, %c0_55] : memref<32x224xf32, #tpu.memory_space<vmem>>, vector<2x224xf32>
    tpu.vector_store %arg30[%c20_54, %c0_55], %47 {strides = array<i32>} : memref<32x224xf32, #tpu.memory_space<vmem>>, vector<2x224xf32>,
    %c40 = arith.constant 40 : index
    %c0_56 = arith.constant 0 : index
    %49 = vector.load %arg26[%c40, %c0_56] : memref<56x224xf32, #tpu.memory_space<vmem>>, vector<2x224xf32>
    %c22 = arith.constant 22 : index
    %c0_57 = arith.constant 0 : index
    %50 = vector.load %arg30[%c22, %c0_57] : memref<32x224xf32, #tpu.memory_space<vmem>>, vector<2x224xf32>
    tpu.vector_store %arg30[%c22, %c0_57], %49 {strides = array<i32>} : memref<32x224xf32, #tpu.memory_space<vmem>>, vector<2x224xf32>,
    %c44 = arith.constant 44 : index
    %c0_58 = arith.constant 0 : index
    %51 = vector.load %arg26[%c44, %c0_58] : memref<56x224xf32, #tpu.memory_space<vmem>>, vector<2x224xf32>
    %c24_59 = arith.constant 24 : index
    %c0_60 = arith.constant 0 : index
    %52 = vector.load %arg30[%c24_59, %c0_60] : memref<32x224xf32, #tpu.memory_space<vmem>>, vector<2x224xf32>
    tpu.vector_store %arg30[%c24_59, %c0_60], %51 {strides = array<i32>} : memref<32x224xf32, #tpu.memory_space<vmem>>, vector<2x224xf32>,
    %c48 = arith.constant 48 : index
    %c0_61 = arith.constant 0 : index
    %53 = vector.load %arg26[%c48, %c0_61] : memref<56x224xf32, #tpu.memory_space<vmem>>, vector<2x224xf32>
    %c26 = arith.constant 26 : index
    %c0_62 = arith.constant 0 : index
    %54 = vector.load %arg30[%c26, %c0_62] : memref<32x224xf32, #tpu.memory_space<vmem>>, vector<2x224xf32>
    tpu.vector_store %arg30[%c26, %c0_62], %53 {strides = array<i32>} : memref<32x224xf32, #tpu.memory_space<vmem>>, vector<2x224xf32>,
    %c52 = arith.constant 52 : index
    %c0_63 = arith.constant 0 : index
    %55 = vector.load %arg26[%c52, %c0_63] : memref<56x224xf32, #tpu.memory_space<vmem>>, vector<2x224xf32>
    %c28_64 = arith.constant 28 : index
    %c0_65 = arith.constant 0 : index
    %56 = vector.load %arg30[%c28_64, %c0_65] : memref<32x224xf32, #tpu.memory_space<vmem>>, vector<2x224xf32>
    tpu.vector_store %arg30[%c28_64, %c0_65], %55 {strides = array<i32>} : memref<32x224xf32, #tpu.memory_space<vmem>>, vector<2x224xf32>,
    %c0_66 = arith.constant 0 : index
    %c0_67 = arith.constant 0 : index
    %57 = vector.load %arg30[%c0_66, %c0_67] : memref<32x224xf32, #tpu.memory_space<vmem>>, vector<28x224xf32>
    %c0_68 = arith.constant 0 : index
    %c0_69 = arith.constant 0 : index
    %c0_70 = arith.constant 0 : index
    %58 = vector.load %arg3[%c0_68, %c0_69, %c0_70] : memref<3x224x224xf32, #tpu.memory_space<vmem>>, vector<1x224x224xf32>
    %59 = vector.shape_cast %58 : vector<1x224x224xf32> to vector<224x224xf32>
    %cst_71 = arith.constant dense<0.000000e+00> : vector<28x224xf32>
    %60 = tpu.matmul %57, %59, %cst_71 {dimension_numbers = #tpu.dot_dimension_numbers<[1], [0], [0], [1], [0, 0, 1, 1], [], []>} : vector<28x224xf32>, vector<224x224xf32>, vector<28x224xf32> -> vector<28x224xf32>
    %c2_72 = arith.constant 2 : index
    %c0_73 = arith.constant 0 : index
    %61 = vector.load %arg30[%c2_72, %c0_73] : memref<32x224xf32, #tpu.memory_space<vmem>>, vector<28x224xf32>
    %c1_74 = arith.constant 1 : index
    %c0_75 = arith.constant 0 : index
    %c0_76 = arith.constant 0 : index
    %62 = vector.load %arg3[%c1_74, %c0_75, %c0_76] : memref<3x224x224xf32, #tpu.memory_space<vmem>>, vector<1x224x224xf32>
    %63 = vector.shape_cast %62 : vector<1x224x224xf32> to vector<224x224xf32>
    %cst_77 = arith.constant dense<0.000000e+00> : vector<28x224xf32>
    %64 = tpu.matmul %61, %63, %cst_77 {dimension_numbers = #tpu.dot_dimension_numbers<[1], [0], [0], [1], [0, 0, 1, 1], [], []>} : vector<28x224xf32>, vector<224x224xf32>, vector<28x224xf32> -> vector<28x224xf32>
    %65 = arith.addf %60, %64 : vector<28x224xf32>
    %c4_78 = arith.constant 4 : index
    %c0_79 = arith.constant 0 : index
    %66 = vector.load %arg30[%c4_78, %c0_79] : memref<32x224xf32, #tpu.memory_space<vmem>>, vector<28x224xf32>
    %c2_80 = arith.constant 2 : index
    %c0_81 = arith.constant 0 : index
    %c0_82 = arith.constant 0 : index
    %67 = vector.load %arg3[%c2_80, %c0_81, %c0_82] : memref<3x224x224xf32, #tpu.memory_space<vmem>>, vector<1x224x224xf32>
    %68 = vector.shape_cast %67 : vector<1x224x224xf32> to vector<224x224xf32>
    %cst_83 = arith.constant dense<0.000000e+00> : vector<28x224xf32>
    %69 = tpu.matmul %66, %68, %cst_83 {dimension_numbers = #tpu.dot_dimension_numbers<[1], [0], [0], [1], [0, 0, 1, 1], [], []>} : vector<28x224xf32>, vector<224x224xf32>, vector<28x224xf32> -> vector<28x224xf32>
    %70 = arith.addf %65, %69 : vector<28x224xf32>
    %c0_84 = arith.constant 0 : index
    %c0_85 = arith.constant 0 : index
    %71 = vector.load %arg4[%c0_84, %c0_85] : memref<1x224xf32, #tpu.memory_space<vmem>>, vector<1x224xf32>
    %72 = vector.broadcast %71 : vector<1x224xf32> to vector<28x224xf32>
    %73 = arith.addf %70, %72 : vector<28x224xf32>
    %cst_86 = arith.constant 0.000000e+00 : f32
    %74 = vector.broadcast %cst_86 : f32 to vector<28x224xf32>
    %75 = arith.cmpf ogt, %73, %74 : vector<28x224xf32>
    %cst_87 = arith.constant 2.000000e-01 : f32
    %76 = vector.broadcast %cst_87 : f32 to vector<28x224xf32>
    %77 = arith.mulf %76, %73 : vector<28x224xf32>
    %78 = arith.select %75, %73, %77 : vector<28x224xi1>, vector<28x224xf32>
    %c0_88 = arith.constant 0 : index
    %c0_89 = arith.constant 0 : index
    %79 = vector.load %arg27[%c0_88, %c0_89] : memref<28x224xf32, #tpu.memory_space<vmem>>, vector<28x224xf32>
    tpu.vector_store %arg27[%c0_88, %c0_89], %78 {strides = array<i32>} : memref<28x224xf32, #tpu.memory_space<vmem>>, vector<28x224xf32>,
    %c0_90 = arith.constant 0 : index
    %c0_91 = arith.constant 0 : index
    %80 = vector.load %arg27[%c0_90, %c0_91] : memref<28x224xf32, #tpu.memory_space<vmem>>, vector<2x224xf32>
    %c2_92 = arith.constant 2 : index
    %c0_93 = arith.constant 0 : index
    %81 = vector.load %arg31[%c2_92, %c0_93] : memref<18x224xf32, #tpu.memory_space<vmem>>, vector<2x224xf32>
    tpu.vector_store %arg31[%c2_92, %c0_93], %80 {strides = array<i32>} : memref<18x224xf32, #tpu.memory_space<vmem>>, vector<2x224xf32>,
    %c4_94 = arith.constant 4 : index
    %c0_95 = arith.constant 0 : index
    %82 = vector.load %arg27[%c4_94, %c0_95] : memref<28x224xf32, #tpu.memory_space<vmem>>, vector<2x224xf32>
    %c4_96 = arith.constant 4 : index
    %c0_97 = arith.constant 0 : index
    %83 = vector.load %arg31[%c4_96, %c0_97] : memref<18x224xf32, #tpu.memory_space<vmem>>, vector<2x224xf32>
    tpu.vector_store %arg31[%c4_96, %c0_97], %82 {strides = array<i32>} : memref<18x224xf32, #tpu.memory_space<vmem>>, vector<2x224xf32>,
    %c8_98 = arith.constant 8 : index
    %c0_99 = arith.constant 0 : index
    %84 = vector.load %arg27[%c8_98, %c0_99] : memref<28x224xf32, #tpu.memory_space<vmem>>, vector<2x224xf32>
    %c6_100 = arith.constant 6 : index
    %c0_101 = arith.constant 0 : index
    %85 = vector.load %arg31[%c6_100, %c0_101] : memref<18x224xf32, #tpu.memory_space<vmem>>, vector<2x224xf32>
    tpu.vector_store %arg31[%c6_100, %c0_101], %84 {strides = array<i32>} : memref<18x224xf32, #tpu.memory_space<vmem>>, vector<2x224xf32>,
    %c12_102 = arith.constant 12 : index
    %c0_103 = arith.constant 0 : index
    %86 = vector.load %arg27[%c12_102, %c0_103] : memref<28x224xf32, #tpu.memory_space<vmem>>, vector<2x224xf32>
    %c8_104 = arith.constant 8 : index
    %c0_105 = arith.constant 0 : index
    %87 = vector.load %arg31[%c8_104, %c0_105] : memref<18x224xf32, #tpu.memory_space<vmem>>, vector<2x224xf32>
    tpu.vector_store %arg31[%c8_104, %c0_105], %86 {strides = array<i32>} : memref<18x224xf32, #tpu.memory_space<vmem>>, vector<2x224xf32>,
    %c16_106 = arith.constant 16 : index
    %c0_107 = arith.constant 0 : index
    %88 = vector.load %arg27[%c16_106, %c0_107] : memref<28x224xf32, #tpu.memory_space<vmem>>, vector<2x224xf32>
    %c10_108 = arith.constant 10 : index
    %c0_109 = arith.constant 0 : index
    %89 = vector.load %arg31[%c10_108, %c0_109] : memref<18x224xf32, #tpu.memory_space<vmem>>, vector<2x224xf32>
    tpu.vector_store %arg31[%c10_108, %c0_109], %88 {strides = array<i32>} : memref<18x224xf32, #tpu.memory_space<vmem>>, vector<2x224xf32>,
    %c20_110 = arith.constant 20 : index
    %c0_111 = arith.constant 0 : index
    %90 = vector.load %arg27[%c20_110, %c0_111] : memref<28x224xf32, #tpu.memory_space<vmem>>, vector<2x224xf32>
    %c12_112 = arith.constant 12 : index
    %c0_113 = arith.constant 0 : index
    %91 = vector.load %arg31[%c12_112, %c0_113] : memref<18x224xf32, #tpu.memory_space<vmem>>, vector<2x224xf32>
    tpu.vector_store %arg31[%c12_112, %c0_113], %90 {strides = array<i32>} : memref<18x224xf32, #tpu.memory_space<vmem>>, vector<2x224xf32>,
    %c24_114 = arith.constant 24 : index
    %c0_115 = arith.constant 0 : index
    %92 = vector.load %arg27[%c24_114, %c0_115] : memref<28x224xf32, #tpu.memory_space<vmem>>, vector<2x224xf32>
    %c14_116 = arith.constant 14 : index
    %c0_117 = arith.constant 0 : index
    %93 = vector.load %arg31[%c14_116, %c0_117] : memref<18x224xf32, #tpu.memory_space<vmem>>, vector<2x224xf32>
    tpu.vector_store %arg31[%c14_116, %c0_117], %92 {strides = array<i32>} : memref<18x224xf32, #tpu.memory_space<vmem>>, vector<2x224xf32>,
    %c2_118 = arith.constant 2 : index
    %c0_119 = arith.constant 0 : index
    %94 = vector.load %arg31[%c2_118, %c0_119] : memref<18x224xf32, #tpu.memory_space<vmem>>, vector<14x224xf32>
    %cst_120 = arith.constant dense<0.000000e+00> : vector<224xf32>
    %95 = vector.multi_reduction <add>, %94, %cst_120 [0] : vector<14x224xf32> to vector<224xf32>
    %96 = vector.shape_cast %95 : vector<224xf32> to vector<1x224xf32>
    %97 = arith.mulf %94, %94 : vector<14x224xf32>
    %cst_121 = arith.constant dense<0.000000e+00> : vector<224xf32>
    %98 = vector.multi_reduction <add>, %97, %cst_121 [0] : vector<14x224xf32> to vector<224xf32>
    %99 = vector.shape_cast %98 : vector<224xf32> to vector<1x224xf32>
    %c0_122 = arith.constant 0 : index
    %c0_123 = arith.constant 0 : index
    %100 = vector.load %arg7[%c0_122, %c0_123] : memref<224x32xf32, #tpu.memory_space<vmem>>, vector<224x32xf32>
    %cst_124 = arith.constant dense<0.000000e+00> : vector<1x32xf32>
    %101 = tpu.matmul %96, %100, %cst_124 {dimension_numbers = #tpu.dot_dimension_numbers<[1], [0], [0], [1], [0, 0, 1, 1], [], []>} : vector<1x224xf32>, vector<224x32xf32>, vector<1x32xf32> -> vector<1x32xf32>
    %cst_125 = arith.constant 0.0102040814 : f32
    %102 = vector.broadcast %cst_125 : f32 to vector<1x32xf32>
    %103 = arith.mulf %101, %102 : vector<1x32xf32>
    %c0_126 = arith.constant 0 : index
    %c0_127 = arith.constant 0 : index
    %104 = vector.load %arg7[%c0_126, %c0_127] : memref<224x32xf32, #tpu.memory_space<vmem>>, vector<224x32xf32>
    %cst_128 = arith.constant dense<0.000000e+00> : vector<1x32xf32>
    %105 = tpu.matmul %99, %104, %cst_128 {dimension_numbers = #tpu.dot_dimension_numbers<[1], [0], [0], [1], [0, 0, 1, 1], [], []>} : vector<1x224xf32>, vector<224x32xf32>, vector<1x32xf32> -> vector<1x32xf32>
    %cst_129 = arith.constant 0.0102040814 : f32
    %106 = vector.broadcast %cst_129 : f32 to vector<1x32xf32>
    %107 = arith.mulf %105, %106 : vector<1x32xf32>
    %108 = arith.mulf %103, %103 : vector<1x32xf32>
    %109 = arith.subf %107, %108 : vector<1x32xf32>
    %c0_130 = arith.constant 0 : index
    %c0_131 = arith.constant 0 : index
    %110 = vector.load %arg5[%c0_130, %c0_131] : memref<1x32xf32, #tpu.memory_space<vmem>>, vector<1x32xf32>
    %cst_132 = arith.constant 8.000000e-01 : f32
    %111 = vector.broadcast %cst_132 : f32 to vector<1x32xf32>
    %112 = arith.addf %109, %111 : vector<1x32xf32>
    %113 = math.rsqrt %112 : vector<1x32xf32>
    %114 = arith.mulf %110, %113 : vector<1x32xf32>
    %c0_133 = arith.constant 0 : index
    %c0_134 = arith.constant 0 : index
    %115 = vector.load %arg6[%c0_133, %c0_134] : memref<1x32xf32, #tpu.memory_space<vmem>>, vector<1x32xf32>
    %116 = arith.mulf %103, %114 : vector<1x32xf32>
    %117 = arith.subf %115, %116 : vector<1x32xf32>
    %c0_135 = arith.constant 0 : index
    %c0_136 = arith.constant 0 : index
    %118 = vector.load %arg8[%c0_135, %c0_136] : memref<32x224xf32, #tpu.memory_space<vmem>>, vector<32x224xf32>
    %cst_137 = arith.constant dense<0.000000e+00> : vector<1x224xf32>
    %119 = tpu.matmul %114, %118, %cst_137 {dimension_numbers = #tpu.dot_dimension_numbers<[1], [0], [0], [1], [0, 0, 1, 1], [], []>} : vector<1x32xf32>, vector<32x224xf32>, vector<1x224xf32> -> vector<1x224xf32>
    %c0_138 = arith.constant 0 : index
    %c0_139 = arith.constant 0 : index
    %120 = vector.load %arg8[%c0_138, %c0_139] : memref<32x224xf32, #tpu.memory_space<vmem>>, vector<32x224xf32>
    %cst_140 = arith.constant dense<0.000000e+00> : vector<1x224xf32>
    %121 = tpu.matmul %117, %120, %cst_140 {dimension_numbers = #tpu.dot_dimension_numbers<[1], [0], [0], [1], [0, 0, 1, 1], [], []>} : vector<1x32xf32>, vector<32x224xf32>, vector<1x224xf32> -> vector<1x224xf32>
    %122 = vector.broadcast %119 : vector<1x224xf32> to vector<14x224xf32>
    %123 = arith.mulf %94, %122 : vector<14x224xf32>
    %124 = vector.broadcast %121 : vector<1x224xf32> to vector<14x224xf32>
    %125 = arith.addf %123, %124 : vector<14x224xf32>
    %c2_141 = arith.constant 2 : index
    %c0_142 = arith.constant 0 : index
    %126 = vector.load %arg31[%c2_141, %c0_142] : memref<18x224xf32, #tpu.memory_space<vmem>>, vector<14x224xf32>
    tpu.vector_store %arg31[%c2_141, %c0_142], %125 {strides = array<i32>} : memref<18x224xf32, #tpu.memory_space<vmem>>, vector<14x224xf32>,
    %c0_143 = arith.constant 0 : index
    %c0_144 = arith.constant 0 : index
    %127 = vector.load %arg31[%c0_143, %c0_144] : memref<18x224xf32, #tpu.memory_space<vmem>>, vector<14x224xf32>
    %c0_145 = arith.constant 0 : index
    %c0_146 = arith.constant 0 : index
    %c0_147 = arith.constant 0 : index
    %128 = vector.load %arg9[%c0_145, %c0_146, %c0_147] : memref<3x224x256xf32, #tpu.memory_space<vmem>>, vector<1x224x256xf32>
    %129 = vector.shape_cast %128 : vector<1x224x256xf32> to vector<224x256xf32>
    %cst_148 = arith.constant dense<0.000000e+00> : vector<14x256xf32>
    %130 = tpu.matmul %127, %129, %cst_148 {dimension_numbers = #tpu.dot_dimension_numbers<[1], [0], [0], [1], [0, 0, 1, 1], [], []>} : vector<14x224xf32>, vector<224x256xf32>, vector<14x256xf32> -> vector<14x256xf32>
    %c2_149 = arith.constant 2 : index
    %c0_150 = arith.constant 0 : index
    %131 = vector.load %arg31[%c2_149, %c0_150] : memref<18x224xf32, #tpu.memory_space<vmem>>, vector<14x224xf32>
    %c1_151 = arith.constant 1 : index
    %c0_152 = arith.constant 0 : index
    %c0_153 = arith.constant 0 : index
    %132 = vector.load %arg9[%c1_151, %c0_152, %c0_153] : memref<3x224x256xf32, #tpu.memory_space<vmem>>, vector<1x224x256xf32>
    %133 = vector.shape_cast %132 : vector<1x224x256xf32> to vector<224x256xf32>
    %cst_154 = arith.constant dense<0.000000e+00> : vector<14x256xf32>
    %134 = tpu.matmul %131, %133, %cst_154 {dimension_numbers = #tpu.dot_dimension_numbers<[1], [0], [0], [1], [0, 0, 1, 1], [], []>} : vector<14x224xf32>, vector<224x256xf32>, vector<14x256xf32> -> vector<14x256xf32>
    %135 = arith.addf %130, %134 : vector<14x256xf32>
    %c4_155 = arith.constant 4 : index
    %c0_156 = arith.constant 0 : index
    %136 = vector.load %arg31[%c4_155, %c0_156] : memref<18x224xf32, #tpu.memory_space<vmem>>, vector<14x224xf32>
    %c2_157 = arith.constant 2 : index
    %c0_158 = arith.constant 0 : index
    %c0_159 = arith.constant 0 : index
    %137 = vector.load %arg9[%c2_157, %c0_158, %c0_159] : memref<3x224x256xf32, #tpu.memory_space<vmem>>, vector<1x224x256xf32>
    %138 = vector.shape_cast %137 : vector<1x224x256xf32> to vector<224x256xf32>
    %cst_160 = arith.constant dense<0.000000e+00> : vector<14x256xf32>
    %139 = tpu.matmul %136, %138, %cst_160 {dimension_numbers = #tpu.dot_dimension_numbers<[1], [0], [0], [1], [0, 0, 1, 1], [], []>} : vector<14x224xf32>, vector<224x256xf32>, vector<14x256xf32> -> vector<14x256xf32>
    %140 = arith.addf %135, %139 : vector<14x256xf32>
    %c0_161 = arith.constant 0 : index
    %c0_162 = arith.constant 0 : index
    %141 = vector.load %arg10[%c0_161, %c0_162] : memref<1x256xf32, #tpu.memory_space<vmem>>, vector<1x256xf32>
    %142 = vector.broadcast %141 : vector<1x256xf32> to vector<14x256xf32>
    %143 = arith.addf %140, %142 : vector<14x256xf32>
    %cst_163 = arith.constant 0.000000e+00 : f32
    %144 = vector.broadcast %cst_163 : f32 to vector<14x256xf32>
    %145 = arith.cmpf ogt, %143, %144 : vector<14x256xf32>
    %cst_164 = arith.constant 2.000000e-01 : f32
    %146 = vector.broadcast %cst_164 : f32 to vector<14x256xf32>
    %147 = arith.mulf %146, %143 : vector<14x256xf32>
    %148 = arith.select %145, %143, %147 : vector<14x256xi1>, vector<14x256xf32>
    %c0_165 = arith.constant 0 : index
    %c0_166 = arith.constant 0 : index
    %149 = vector.load %arg28[%c0_165, %c0_166] : memref<14x256xf32, #tpu.memory_space<vmem>>, vector<14x256xf32>
    tpu.vector_store %arg28[%c0_165, %c0_166], %148 {strides = array<i32>} : memref<14x256xf32, #tpu.memory_space<vmem>>, vector<14x256xf32>,
    %c0_167 = arith.constant 0 : index
    %c0_168 = arith.constant 0 : index
    %150 = vector.load %arg28[%c0_167, %c0_168] : memref<14x256xf32, #tpu.memory_space<vmem>>, vector<2x256xf32>
    %c2_169 = arith.constant 2 : index
    %c0_170 = arith.constant 0 : index
    %151 = vector.load %arg32[%c2_169, %c0_170] : memref<12x256xf32, #tpu.memory_space<vmem>>, vector<2x256xf32>
    tpu.vector_store %arg32[%c2_169, %c0_170], %150 {strides = array<i32>} : memref<12x256xf32, #tpu.memory_space<vmem>>, vector<2x256xf32>,
    %c4_171 = arith.constant 4 : index
    %c0_172 = arith.constant 0 : index
    %152 = vector.load %arg28[%c4_171, %c0_172] : memref<14x256xf32, #tpu.memory_space<vmem>>, vector<2x256xf32>
    %c4_173 = arith.constant 4 : index
    %c0_174 = arith.constant 0 : index
    %153 = vector.load %arg32[%c4_173, %c0_174] : memref<12x256xf32, #tpu.memory_space<vmem>>, vector<2x256xf32>
    tpu.vector_store %arg32[%c4_173, %c0_174], %152 {strides = array<i32>} : memref<12x256xf32, #tpu.memory_space<vmem>>, vector<2x256xf32>,
    %c8_175 = arith.constant 8 : index
    %c0_176 = arith.constant 0 : index
    %154 = vector.load %arg28[%c8_175, %c0_176] : memref<14x256xf32, #tpu.memory_space<vmem>>, vector<2x256xf32>
    %c6_177 = arith.constant 6 : index
    %c0_178 = arith.constant 0 : index
    %155 = vector.load %arg32[%c6_177, %c0_178] : memref<12x256xf32, #tpu.memory_space<vmem>>, vector<2x256xf32>
    tpu.vector_store %arg32[%c6_177, %c0_178], %154 {strides = array<i32>} : memref<12x256xf32, #tpu.memory_space<vmem>>, vector<2x256xf32>,
    %c12_179 = arith.constant 12 : index
    %c0_180 = arith.constant 0 : index
    %156 = vector.load %arg28[%c12_179, %c0_180] : memref<14x256xf32, #tpu.memory_space<vmem>>, vector<2x256xf32>
    %c8_181 = arith.constant 8 : index
    %c0_182 = arith.constant 0 : index
    %157 = vector.load %arg32[%c8_181, %c0_182] : memref<12x256xf32, #tpu.memory_space<vmem>>, vector<2x256xf32>
    tpu.vector_store %arg32[%c8_181, %c0_182], %156 {strides = array<i32>} : memref<12x256xf32, #tpu.memory_space<vmem>>, vector<2x256xf32>,
    %c2_183 = arith.constant 2 : index
    %c0_184 = arith.constant 0 : index
    %158 = vector.load %arg32[%c2_183, %c0_184] : memref<12x256xf32, #tpu.memory_space<vmem>>, vector<8x256xf32>
    %cst_185 = arith.constant dense<0.000000e+00> : vector<256xf32>
    %159 = vector.multi_reduction <add>, %158, %cst_185 [0] : vector<8x256xf32> to vector<256xf32>
    %160 = vector.shape_cast %159 : vector<256xf32> to vector<1x256xf32>
    %161 = arith.mulf %158, %158 : vector<8x256xf32>
    %cst_186 = arith.constant dense<0.000000e+00> : vector<256xf32>
    %162 = vector.multi_reduction <add>, %161, %cst_186 [0] : vector<8x256xf32> to vector<256xf32>
    %163 = vector.shape_cast %162 : vector<256xf32> to vector<1x256xf32>
    %c0_187 = arith.constant 0 : index
    %c0_188 = arith.constant 0 : index
    %164 = vector.load %arg13[%c0_187, %c0_188] : memref<256x64xf32, #tpu.memory_space<vmem>>, vector<256x64xf32>
    %cst_189 = arith.constant dense<0.000000e+00> : vector<1x64xf32>
    %165 = tpu.matmul %160, %164, %cst_189 {dimension_numbers = #tpu.dot_dimension_numbers<[1], [0], [0], [1], [0, 0, 1, 1], [], []>} : vector<1x256xf32>, vector<256x64xf32>, vector<1x64xf32> -> vector<1x64xf32>
    %cst_190 = arith.constant 3.125000e-02 : f32
    %166 = vector.broadcast %cst_190 : f32 to vector<1x64xf32>
    %167 = arith.mulf %165, %166 : vector<1x64xf32>
    %c0_191 = arith.constant 0 : index
    %c0_192 = arith.constant 0 : index
    %168 = vector.load %arg13[%c0_191, %c0_192] : memref<256x64xf32, #tpu.memory_space<vmem>>, vector<256x64xf32>
    %cst_193 = arith.constant dense<0.000000e+00> : vector<1x64xf32>
    %169 = tpu.matmul %163, %168, %cst_193 {dimension_numbers = #tpu.dot_dimension_numbers<[1], [0], [0], [1], [0, 0, 1, 1], [], []>} : vector<1x256xf32>, vector<256x64xf32>, vector<1x64xf32> -> vector<1x64xf32>
    %cst_194 = arith.constant 3.125000e-02 : f32
    %170 = vector.broadcast %cst_194 : f32 to vector<1x64xf32>
    %171 = arith.mulf %169, %170 : vector<1x64xf32>
    %172 = arith.mulf %167, %167 : vector<1x64xf32>
    %173 = arith.subf %171, %172 : vector<1x64xf32>
    %c0_195 = arith.constant 0 : index
    %c0_196 = arith.constant 0 : index
    %174 = vector.load %arg11[%c0_195, %c0_196] : memref<1x64xf32, #tpu.memory_space<vmem>>, vector<1x64xf32>
    %cst_197 = arith.constant 8.000000e-01 : f32
    %175 = vector.broadcast %cst_197 : f32 to vector<1x64xf32>
    %176 = arith.addf %173, %175 : vector<1x64xf32>
    %177 = math.rsqrt %176 : vector<1x64xf32>
    %178 = arith.mulf %174, %177 : vector<1x64xf32>
    %c0_198 = arith.constant 0 : index
    %c0_199 = arith.constant 0 : index
    %179 = vector.load %arg12[%c0_198, %c0_199] : memref<1x64xf32, #tpu.memory_space<vmem>>, vector<1x64xf32>
    %180 = arith.mulf %167, %178 : vector<1x64xf32>
    %181 = arith.subf %179, %180 : vector<1x64xf32>
    %c0_200 = arith.constant 0 : index
    %c0_201 = arith.constant 0 : index
    %182 = vector.load %arg14[%c0_200, %c0_201] : memref<64x256xf32, #tpu.memory_space<vmem>>, vector<64x256xf32>
    %cst_202 = arith.constant dense<0.000000e+00> : vector<1x256xf32>
    %183 = tpu.matmul %178, %182, %cst_202 {dimension_numbers = #tpu.dot_dimension_numbers<[1], [0], [0], [1], [0, 0, 1, 1], [], []>} : vector<1x64xf32>, vector<64x256xf32>, vector<1x256xf32> -> vector<1x256xf32>
    %c0_203 = arith.constant 0 : index
    %c0_204 = arith.constant 0 : index
    %184 = vector.load %arg14[%c0_203, %c0_204] : memref<64x256xf32, #tpu.memory_space<vmem>>, vector<64x256xf32>
    %cst_205 = arith.constant dense<0.000000e+00> : vector<1x256xf32>
    %185 = tpu.matmul %181, %184, %cst_205 {dimension_numbers = #tpu.dot_dimension_numbers<[1], [0], [0], [1], [0, 0, 1, 1], [], []>} : vector<1x64xf32>, vector<64x256xf32>, vector<1x256xf32> -> vector<1x256xf32>
    %186 = vector.broadcast %183 : vector<1x256xf32> to vector<8x256xf32>
    %187 = arith.mulf %158, %186 : vector<8x256xf32>
    %188 = vector.broadcast %185 : vector<1x256xf32> to vector<8x256xf32>
    %189 = arith.addf %187, %188 : vector<8x256xf32>
    %c2_206 = arith.constant 2 : index
    %c0_207 = arith.constant 0 : index
    %190 = vector.load %arg32[%c2_206, %c0_207] : memref<12x256xf32, #tpu.memory_space<vmem>>, vector<8x256xf32>
    tpu.vector_store %arg32[%c2_206, %c0_207], %189 {strides = array<i32>} : memref<12x256xf32, #tpu.memory_space<vmem>>, vector<8x256xf32>,
    %c0_208 = arith.constant 0 : index
    %c0_209 = arith.constant 0 : index
    %191 = vector.load %arg32[%c0_208, %c0_209] : memref<12x256xf32, #tpu.memory_space<vmem>>, vector<8x256xf32>
    %c0_210 = arith.constant 0 : index
    %c0_211 = arith.constant 0 : index
    %c0_212 = arith.constant 0 : index
    %192 = vector.load %arg15[%c0_210, %c0_211, %c0_212] : memref<3x256x256xf32, #tpu.memory_space<vmem>>, vector<1x256x256xf32>
    %193 = vector.shape_cast %192 : vector<1x256x256xf32> to vector<256x256xf32>
    %cst_213 = arith.constant dense<0.000000e+00> : vector<8x256xf32>
    %194 = tpu.matmul %191, %193, %cst_213 {dimension_numbers = #tpu.dot_dimension_numbers<[1], [0], [0], [1], [0, 0, 1, 1], [], []>} : vector<8x256xf32>, vector<256x256xf32>, vector<8x256xf32> -> vector<8x256xf32>
    %c2_214 = arith.constant 2 : index
    %c0_215 = arith.constant 0 : index
    %195 = vector.load %arg32[%c2_214, %c0_215] : memref<12x256xf32, #tpu.memory_space<vmem>>, vector<8x256xf32>
    %c1_216 = arith.constant 1 : index
    %c0_217 = arith.constant 0 : index
    %c0_218 = arith.constant 0 : index
    %196 = vector.load %arg15[%c1_216, %c0_217, %c0_218] : memref<3x256x256xf32, #tpu.memory_space<vmem>>, vector<1x256x256xf32>
    %197 = vector.shape_cast %196 : vector<1x256x256xf32> to vector<256x256xf32>
    %cst_219 = arith.constant dense<0.000000e+00> : vector<8x256xf32>
    %198 = tpu.matmul %195, %197, %cst_219 {dimension_numbers = #tpu.dot_dimension_numbers<[1], [0], [0], [1], [0, 0, 1, 1], [], []>} : vector<8x256xf32>, vector<256x256xf32>, vector<8x256xf32> -> vector<8x256xf32>
    %199 = arith.addf %194, %198 : vector<8x256xf32>
    %c4_220 = arith.constant 4 : index
    %c0_221 = arith.constant 0 : index
    %200 = vector.load %arg32[%c4_220, %c0_221] : memref<12x256xf32, #tpu.memory_space<vmem>>, vector<8x256xf32>
    %c2_222 = arith.constant 2 : index
    %c0_223 = arith.constant 0 : index
    %c0_224 = arith.constant 0 : index
    %201 = vector.load %arg15[%c2_222, %c0_223, %c0_224] : memref<3x256x256xf32, #tpu.memory_space<vmem>>, vector<1x256x256xf32>
    %202 = vector.shape_cast %201 : vector<1x256x256xf32> to vector<256x256xf32>
    %cst_225 = arith.constant dense<0.000000e+00> : vector<8x256xf32>
    %203 = tpu.matmul %200, %202, %cst_225 {dimension_numbers = #tpu.dot_dimension_numbers<[1], [0], [0], [1], [0, 0, 1, 1], [], []>} : vector<8x256xf32>, vector<256x256xf32>, vector<8x256xf32> -> vector<8x256xf32>
    %204 = arith.addf %199, %203 : vector<8x256xf32>
    %c0_226 = arith.constant 0 : index
    %c0_227 = arith.constant 0 : index
    %205 = vector.load %arg16[%c0_226, %c0_227] : memref<1x256xf32, #tpu.memory_space<vmem>>, vector<1x256xf32>
    %206 = vector.broadcast %205 : vector<1x256xf32> to vector<8x256xf32>
    %207 = arith.addf %204, %206 : vector<8x256xf32>
    %cst_228 = arith.constant 0.000000e+00 : f32
    %208 = vector.broadcast %cst_228 : f32 to vector<8x256xf32>
    %209 = arith.cmpf ogt, %207, %208 : vector<8x256xf32>
    %cst_229 = arith.constant 2.000000e-01 : f32
    %210 = vector.broadcast %cst_229 : f32 to vector<8x256xf32>
    %211 = arith.mulf %210, %207 : vector<8x256xf32>
    %212 = arith.select %209, %207, %211 : vector<8x256xi1>, vector<8x256xf32>
    %c0_230 = arith.constant 0 : index
    %c0_231 = arith.constant 0 : index
    %213 = vector.load %arg29[%c0_230, %c0_231] : memref<8x256xf32, #tpu.memory_space<vmem>>, vector<8x256xf32>
    tpu.vector_store %arg29[%c0_230, %c0_231], %212 {strides = array<i32>} : memref<8x256xf32, #tpu.memory_space<vmem>>, vector<8x256xf32>,
    %c0_232 = arith.constant 0 : index
    %c0_233 = arith.constant 0 : index
    %214 = vector.load %arg29[%c0_232, %c0_233] : memref<8x256xf32, #tpu.memory_space<vmem>>, vector<2x256xf32>
    %c0_234 = arith.constant 0 : index
    %c0_235 = arith.constant 0 : index
    %215 = vector.load %arg33[%c0_234, %c0_235] : memref<4x256xf32, #tpu.memory_space<vmem>>, vector<2x256xf32>
    tpu.vector_store %arg33[%c0_234, %c0_235], %214 {strides = array<i32>} : memref<4x256xf32, #tpu.memory_space<vmem>>, vector<2x256xf32>,
    %c4_236 = arith.constant 4 : index
    %c0_237 = arith.constant 0 : index
    %216 = vector.load %arg29[%c4_236, %c0_237] : memref<8x256xf32, #tpu.memory_space<vmem>>, vector<2x256xf32>
    %c2_238 = arith.constant 2 : index
    %c0_239 = arith.constant 0 : index
    %217 = vector.load %arg33[%c2_238, %c0_239] : memref<4x256xf32, #tpu.memory_space<vmem>>, vector<2x256xf32>
    tpu.vector_store %arg33[%c2_238, %c0_239], %216 {strides = array<i32>} : memref<4x256xf32, #tpu.memory_space<vmem>>, vector<2x256xf32>,
    %c0_240 = arith.constant 0 : index
    %c0_241 = arith.constant 0 : index
    %218 = vector.load %arg33[%c0_240, %c0_241] : memref<4x256xf32, #tpu.memory_space<vmem>>, vector<4x256xf32>
    %cst_242 = arith.constant dense<0.000000e+00> : vector<256xf32>
    %219 = vector.multi_reduction <add>, %218, %cst_242 [0] : vector<4x256xf32> to vector<256xf32>
    %220 = vector.shape_cast %219 : vector<256xf32> to vector<1x256xf32>
    %221 = arith.mulf %218, %218 : vector<4x256xf32>
    %cst_243 = arith.constant dense<0.000000e+00> : vector<256xf32>
    %222 = vector.multi_reduction <add>, %221, %cst_243 [0] : vector<4x256xf32> to vector<256xf32>
    %223 = vector.shape_cast %222 : vector<256xf32> to vector<1x256xf32>
    %c0_244 = arith.constant 0 : index
    %c0_245 = arith.constant 0 : index
    %224 = vector.load %arg19[%c0_244, %c0_245] : memref<256x128xf32, #tpu.memory_space<vmem>>, vector<256x128xf32>
    %cst_246 = arith.constant dense<0.000000e+00> : vector<1x128xf32>
    %225 = tpu.matmul %220, %224, %cst_246 {dimension_numbers = #tpu.dot_dimension_numbers<[1], [0], [0], [1], [0, 0, 1, 1], [], []>} : vector<1x256xf32>, vector<256x128xf32>, vector<1x128xf32> -> vector<1x128xf32>
    %cst_247 = arith.constant 1.250000e-01 : f32
    %226 = vector.broadcast %cst_247 : f32 to vector<1x128xf32>
    %227 = arith.mulf %225, %226 : vector<1x128xf32>
    %c0_248 = arith.constant 0 : index
    %c0_249 = arith.constant 0 : index
    %228 = vector.load %arg19[%c0_248, %c0_249] : memref<256x128xf32, #tpu.memory_space<vmem>>, vector<256x128xf32>
    %cst_250 = arith.constant dense<0.000000e+00> : vector<1x128xf32>
    %229 = tpu.matmul %223, %228, %cst_250 {dimension_numbers = #tpu.dot_dimension_numbers<[1], [0], [0], [1], [0, 0, 1, 1], [], []>} : vector<1x256xf32>, vector<256x128xf32>, vector<1x128xf32> -> vector<1x128xf32>
    %cst_251 = arith.constant 1.250000e-01 : f32
    %230 = vector.broadcast %cst_251 : f32 to vector<1x128xf32>
    %231 = arith.mulf %229, %230 : vector<1x128xf32>
    %232 = arith.mulf %227, %227 : vector<1x128xf32>
    %233 = arith.subf %231, %232 : vector<1x128xf32>
    %c0_252 = arith.constant 0 : index
    %c0_253 = arith.constant 0 : index
    %234 = vector.load %arg17[%c0_252, %c0_253] : memref<1x128xf32, #tpu.memory_space<vmem>>, vector<1x128xf32>
    %cst_254 = arith.constant 8.000000e-01 : f32
    %235 = vector.broadcast %cst_254 : f32 to vector<1x128xf32>
    %236 = arith.addf %233, %235 : vector<1x128xf32>
    %237 = math.rsqrt %236 : vector<1x128xf32>
    %238 = arith.mulf %234, %237 : vector<1x128xf32>
    %c0_255 = arith.constant 0 : index
    %c0_256 = arith.constant 0 : index
    %239 = vector.load %arg18[%c0_255, %c0_256] : memref<1x128xf32, #tpu.memory_space<vmem>>, vector<1x128xf32>
    %240 = arith.mulf %227, %238 : vector<1x128xf32>
    %241 = arith.subf %239, %240 : vector<1x128xf32>
    %c0_257 = arith.constant 0 : index
    %c0_258 = arith.constant 0 : index
    %242 = vector.load %arg20[%c0_257, %c0_258] : memref<128x256xf32, #tpu.memory_space<vmem>>, vector<128x256xf32>
    %cst_259 = arith.constant dense<0.000000e+00> : vector<1x256xf32>
    %243 = tpu.matmul %238, %242, %cst_259 {dimension_numbers = #tpu.dot_dimension_numbers<[1], [0], [0], [1], [0, 0, 1, 1], [], []>} : vector<1x128xf32>, vector<128x256xf32>, vector<1x256xf32> -> vector<1x256xf32>
    %c0_260 = arith.constant 0 : index
    %c0_261 = arith.constant 0 : index
    %244 = vector.load %arg20[%c0_260, %c0_261] : memref<128x256xf32, #tpu.memory_space<vmem>>, vector<128x256xf32>
    %cst_262 = arith.constant dense<0.000000e+00> : vector<1x256xf32>
    %245 = tpu.matmul %241, %244, %cst_262 {dimension_numbers = #tpu.dot_dimension_numbers<[1], [0], [0], [1], [0, 0, 1, 1], [], []>} : vector<1x128xf32>, vector<128x256xf32>, vector<1x256xf32> -> vector<1x256xf32>
    %246 = vector.broadcast %243 : vector<1x256xf32> to vector<4x256xf32>
    %247 = arith.mulf %218, %246 : vector<4x256xf32>
    %248 = vector.broadcast %245 : vector<1x256xf32> to vector<4x256xf32>
    %249 = arith.addf %247, %248 : vector<4x256xf32>
    %c0_263 = arith.constant 0 : index
    %c0_264 = arith.constant 0 : index
    %250 = vector.load %arg33[%c0_263, %c0_264] : memref<4x256xf32, #tpu.memory_space<vmem>>, vector<4x256xf32>
    tpu.vector_store %arg33[%c0_263, %c0_264], %249 {strides = array<i32>} : memref<4x256xf32, #tpu.memory_space<vmem>>, vector<4x256xf32>,
    %c0_265 = arith.constant 0 : index
    %c0_266 = arith.constant 0 : index
    %251 = vector.load %arg33[%c0_265, %c0_266] : memref<4x256xf32, #tpu.memory_space<vmem>>, vector<2x256xf32>
    %c0_267 = arith.constant 0 : index
    %c0_268 = arith.constant 0 : index
    %252 = vector.load %arg21[%c0_267, %c0_268] : memref<256x128xf32, #tpu.memory_space<vmem>>, vector<256x128xf32>
    %cst_269 = arith.constant dense<0.000000e+00> : vector<2x128xf32>
    %253 = tpu.matmul %251, %252, %cst_269 {dimension_numbers = #tpu.dot_dimension_numbers<[1], [0], [0], [1], [0, 0, 1, 1], [], []>} : vector<2x256xf32>, vector<256x128xf32>, vector<2x128xf32> -> vector<2x128xf32>
    %c2_270 = arith.constant 2 : index
    %c0_271 = arith.constant 0 : index
    %254 = vector.load %arg33[%c2_270, %c0_271] : memref<4x256xf32, #tpu.memory_space<vmem>>, vector<2x256xf32>
    %c0_272 = arith.constant 0 : index
    %c0_273 = arith.constant 0 : index
    %255 = vector.load %arg22[%c0_272, %c0_273] : memref<256x128xf32, #tpu.memory_space<vmem>>, vector<256x128xf32>
    %cst_274 = arith.constant dense<0.000000e+00> : vector<2x128xf32>
    %256 = tpu.matmul %254, %255, %cst_274 {dimension_numbers = #tpu.dot_dimension_numbers<[1], [0], [0], [1], [0, 0, 1, 1], [], []>} : vector<2x256xf32>, vector<256x128xf32>, vector<2x128xf32> -> vector<2x128xf32>
    %257 = arith.addf %253, %256 : vector<2x128xf32>
    %c0_275 = arith.constant 0 : index
    %c0_276 = arith.constant 0 : index
    %258 = vector.load %arg23[%c0_275, %c0_276] : memref<1x128xf32, #tpu.memory_space<vmem>>, vector<1x128xf32>
    %259 = vector.broadcast %258 : vector<1x128xf32> to vector<2x128xf32>
    %260 = arith.addf %257, %259 : vector<2x128xf32>
    %c0_277 = arith.constant 0 : index
    %c0_278 = arith.constant 0 : index
    %261 = vector.load %arg25[%c0_277, %c0_278] : memref<2x128xf32, #tpu.memory_space<vmem>>, vector<2x128xf32>
    tpu.vector_store %arg25[%c0_277, %c0_278], %260 {strides = array<i32>} : memref<2x128xf32, #tpu.memory_space<vmem>>, vector<2x128xf32>,
    %262 = vector.extract_strided_slice %260 {offsets = [0, 0], sizes = [2, 10], strides = [1, 1]} : vector<2x128xf32> to vector<2x10xf32>
    %cst_279 = arith.constant dense<0xFF800000> : vector<2xf32>
    %263 = vector.multi_reduction <maximumf>, %262, %cst_279 [1] : vector<2x10xf32> to vector<2xf32>
    %264 = vector.shape_cast %263 : vector<2xf32> to vector<2x1xf32>
    %265 = vector.broadcast %264 : vector<2x1xf32> to vector<2x10xf32>
    %266 = arith.subf %262, %265 : vector<2x10xf32>
    %267 = math.exp %266 : vector<2x10xf32>
    %cst_280 = arith.constant dense<0.000000e+00> : vector<2xf32>
    %268 = vector.multi_reduction <add>, %267, %cst_280 [1] : vector<2x10xf32> to vector<2xf32>
    %269 = vector.shape_cast %268 : vector<2xf32> to vector<2x1xf32>
    %270 = tpu.reciprocal %269 {approx = true} : vector<2x1xf32> -> vector<2x1xf32>
    %271 = vector.broadcast %270 : vector<2x1xf32> to vector<2x10xf32>
    %272 = arith.mulf %267, %271 : vector<2x10xf32>
    %c0_281 = arith.constant 0 : index
    %c0_282 = arith.constant 0 : index
    %273 = vector.load %arg24[%c0_281, %c0_282] : memref<2x10xf32, #tpu.memory_space<vmem>>, vector<2x10xf32>
    tpu.vector_store %arg24[%c0_281, %c0_282], %272 {strides = array<i32>} : memref<2x10xf32, #tpu.memory_space<vmem>>, vector<2x10xf32>,
    return
  }
}

</mosaic_0001>

<bundles_post_ra>
// kernel: discriminator_forward.1
= control target key start
LH: loop header
LB: loop body
LE: loop exit
PB: predicated region body
PF: predicated region fallthrough
CT: control target
= control target key end

     0   :  { %s6186_s0 = inlined_call_operand.vmem [shape: f32[60,28], index: 0, kind: input, shape index: {}]   ;;  %s6187_s1 = inlined_call_operand.hbm [shape: f32[3,28,224], index: 1, kind: input, shape index: {}]   ;;  %s6188_s2 = inlined_call_operand.hbm [shape: f32[1,224], index: 2, kind: input, shape index: {}]   ;;  %s6189_s3 = inlined_call_operand.hbm [shape: f32[3,224,224], index: 3, kind: input, shape index: {}]   ;;  %s6190_s4 = inlined_call_operand.hbm [shape: f32[1,224], index: 4, kind: input, shape index: {}]   ;;  %s6191_s5 = inlined_call_operand.vmem [shape: f32[1,32], index: 5, kind: input, shape index: {}]   ;;  %s6192_s6 = inlined_call_operand.hbm [shape: f32[1,32], index: 6, kind: input, shape index: {}]   ;;  %s6193_s7 = inlined_call_operand.vmem [shape: f32[224,32], index: 7, kind: input, shape index: {}]   ;;  %s6194_s8 = inlined_call_operand.hbm [shape: f32[32,224], index: 8, kind: input, shape index: {}]   ;;  %s6195_s9 = inlined_call_operand.hbm [shape: f32[3,224,256], index: 9, kind: input, shape index: {}]   ;;  %s6196_s10 = inlined_call_operand.vmem [shape: f32[1,256], index: 10, kind: input, shape index: {}]   ;;  %s6197_s11 = inlined_call_operand.vmem [shape: f32[1,64], index: 11, kind: input, shape index: {}]   ;;  %s6198_s12 = inlined_call_operand.vmem [shape: f32[1,64], index: 12, kind: input, shape index: {}]   ;;  %s6199_s13 = inlined_call_operand.vmem [shape: f32[256,64], index: 13, kind: input, shape index: {}]   ;;  %s6200_s14 = inlined_call_operand.hbm [shape: f32[64,256], index: 14, kind: input, shape index: {}]   ;;  %s6201_s15 = inlined_call_operand.hbm [shape: f32[3,256,256], index: 15, kind: input, shape index: {}]   ;;  %s6202_s16 = inlined_call_operand.vmem [shape: f32[1,256], index: 16, kind: input, shape index: {}]   ;;  %s6203_s17 = inlined_call_operand.vmem [shape: f32[1,128], index: 17, kind: input, shape index: {}]   ;;  %s6204_s18 = inlined_call_operand.vmem [shape: f32[1,128], index: 18, kind: input, shape index: {}]   ;;  %s6205_s19 = inlined_call_operand.vmem [shape: f32[256,128], index: 19, kind: input, shape index: {}]   ;;  %s6206_s20 = inlined_call_operand.vmem [shape: f32[128,256], index: 20, kind: input, shape index: {}]   ;;  %s6207_s21 = inlined_call_operand.vmem [shape: f32[256,128], index: 21, kind: input, shape index: {}]   ;;  %s6208_s22 = inlined_call_operand.vmem [shape: f32[256,128], index: 22, kind: input, shape index: {}]   ;;  %s6209_s23 = inlined_call_operand.hbm [shape: f32[1,128], index: 23, kind: input, shape index: {}]   ;;  %s6210_s24 = inlined_call_operand.hbm [shape: f32[2,10], index: 24, kind: output, shape index: {0}]   ;;  %s6211_s25 = inlined_call_operand.vmem [shape: f32[2,128], index: 25, kind: output, shape index: {1}]  }
   0x1   :  { %6214 = sst [smem:[#allocation35_spill]] %s6186_s0 }
   0x2   :  { %6215 = sst [smem:[#allocation36_spill]] %s6187_s1 }
   0x3   :  { %6216 = sst [smem:[#allocation37_spill]] %s6188_s2 }
   0x4   :  { %6217 = sst [smem:[#allocation38_spill]] %s6189_s3 }
   0x5   :  { %6218 = sst [smem:[#allocation39_spill]] %s6190_s4 }
   0x6   :  { %6219 = sst [smem:[#allocation40_spill]] %s6191_s5 }
   0x7   :  { %6220 = sst [smem:[#allocation41_spill]] %s6192_s6 }
   0x8   :  { %6221 = sst [smem:[#allocation42_spill]] %s6193_s7 }
   0x9   :  { %6222 = sst [smem:[#allocation43_spill]] %s6194_s8 }
   0xa   :  { %6223 = sst [smem:[#allocation44_spill]] %s6195_s9 }
   0xb   :  { %31 = vsyncpa [#allocation11], 0 }
   0xc   :  { %32 = vsyncpa [#allocation14], 0 }
   0xd   :  { %33 = vsyncpa [#allocation17], 0 }
   0xe   :  { %34 = vsyncpa [#allocation20], 0 }
   0xf   :  { %35 = vsyncpa [#allocation23], 0 }
  0x10   :  { %36 = vsyncpa [#allocation26], 0 }
  0x11   :  { %37 = vsyncpa [#allocation12], 0  ;;  %s4630_s29 = smov [#allocation13]   ;;  %s4631_s6 = smov [#allocation16]  }
  0x12   :  { %s58_s2 = sshll.u32 %s4630_s29, 4  ;;  %s80_s30 = sshll.u32 %s4631_s6, 4  ;;  %s59_s2 = int_to_ptr.vmem [resolvable:$true] %s58_s2  ;;  %s81_s30 = int_to_ptr.vmem [resolvable:$true] %s80_s30 }
  0x13   :  { %s4404_s7 = scalar_lea.vmem %s59_s2, 32  ;;  %p4409_p1 = scmp.lt.s32.totalorder %s59_s2, %s59_s2 }
  0x14   :  { %p4405_p0 = scmp.ne.s32.totalorder %s59_s2, %s4404_s7  ;;  %p4410_p2 = scmp.lt.s32.totalorder %s4404_s7, %s4404_s7 }
  0x16   :  { %p4411_p3 = por %p4410_p2, %p4409_p1 }
  0x18   :  { %p4412_p4 = pnand %p4411_p3, %p4405_p0 }
  0x1a   :  { %4415 = shalt.err (!%p4412_p4)
}
  0x1b   :  { %s6224_s1 = sld [smem:[#allocation37_spill]]  ;;  %s4424_s8 = scalar_lea.vmem %s81_s30, 32 }
  0x1c   :  { %p4425_p5 = scmp.ne.s32.totalorder %s81_s30, %s4424_s8  ;;  %p4429_p6 = scmp.lt.s32.totalorder %s81_s30, %s81_s30 }
  0x1d   :  { %p4430_p7 = scmp.lt.s32.totalorder %s4424_s8, %s4424_s8 }
  0x1f   :  { %p4431_p8 = por %p4430_p7, %p4429_p6 }
  0x21   :  { %61 = dma.hbm_to_vmem [thread:$0]  %s6224_s1, 32, %s59_s2, [#allocation14]  }
  0x22   :  { %p4432_p9 = pnand %p4431_p8, %p4425_p5 }
  0x24   :  { %4435 = shalt.err (!%p4432_p9)
}
  0x25   :  { %s6225_s28 = sld [smem:[#allocation39_spill]]  ;;  %s4632_s9 = smov [#allocation19]  }
  0x26   :  { %s103_s5 = sshll.u32 %s4632_s9, 4  ;;  %s4633_s0 = smov [#allocation22]   ;;  %s104_s5 = int_to_ptr.vmem [resolvable:$true] %s103_s5 }
  0x27   :  { %s135_s29 = sshll.u32 %s4633_s0, 4  ;;  %s4444_s6 = scalar_lea.vmem %s104_s5, 1024  ;;  %s136_s29 = int_to_ptr.vmem [resolvable:$true] %s135_s29 }
  0x28   :  { %p4445_p10 = scmp.ne.s32.totalorder %s104_s5, %s4444_s6  ;;  %p4449_p11 = scmp.lt.s32.totalorder %s104_s5, %s104_s5 }
  0x29   :  { %p4450_p12 = scmp.lt.s32.totalorder %s4444_s6, %s4444_s6 }
  0x2b   :  { %83 = dma.hbm_to_vmem [thread:$0]  %s6225_s28, 32, %s81_s30, [#allocation17]  }
  0x2c   :  { %p4451_p13 = por %p4450_p12, %p4449_p11 }
  0x2e   :  { %p4452_p0 = pnand %p4451_p13, %p4445_p10 }
  0x30   :  { %4455 = shalt.err (!%p4452_p0)
}
  0x31   :  { %s4634_s2 = smov 256   ;;  %s4635_s7 = smov 16  }
  0x32   :  { %s6226_s26 = sld [smem:[#allocation43_spill]]  ;;  %s4464_s1 = scalar_lea.vmem %s136_s29, 2048 }
  0x33   :  { %p4465_p1 = scmp.ne.s32.totalorder %s136_s29, %s4464_s1  ;;  %p4469_p2 = scmp.lt.s32.totalorder %s136_s29, %s136_s29 }
  0x34   :  { %p4470_p3 = scmp.lt.s32.totalorder %s4464_s1, %s4464_s1 }
  0x36   :  { %p4471_p4 = por %p4470_p3, %p4469_p2 }
  0x38   :  { %109 = dma.hbm_to_vmem [thread:$0]  %s6226_s26, 1024, %s104_s5, [#allocation20], %s4634_s2, %s4634_s2, %s4635_s7  }
  0x39   :  { %p4472_p5 = pnand %p4471_p4, %p4465_p1 }
  0x3b   :  { %4475 = shalt.err (!%p4472_p5)
}
  0x3c   :  { %141 = dma.hbm_to_vmem [thread:$0]  %s6200_s14, 2048, %s136_s29, [#allocation23], %s4634_s2, %s4634_s2, %s4635_s7  }
  0x3d   :  { %s4636_s4 = smov [#allocation10]   ;;  %s4637_s9 = smov [#allocation15]  }
  0x3e   :  { %s45_s28 = sshll.u32 %s4636_s4, 4  ;;  %s67_s0 = sshll.u32 %s4637_s9, 4  ;;  %s46_s28 = int_to_ptr.vmem [resolvable:$true] %s45_s28  ;;  %s68_s0 = int_to_ptr.vmem [resolvable:$true] %s67_s0 }
  0x3f   :  { %s4484_s5 = scalar_lea.vmem %s46_s28, 3072  ;;  %p4489_p7 = scmp.lt.s32.totalorder %s46_s28, %s46_s28 }
  0x40   :  { %p4485_p6 = scmp.ne.s32.totalorder %s46_s28, %s4484_s5  ;;  %p4490_p8 = scmp.lt.s32.totalorder %s4484_s5, %s4484_s5 }
  0x42   :  { %p4491_p9 = por %p4490_p8, %p4489_p7 }
  0x44   :  { %p4492_p10 = pnand %p4491_p9, %p4485_p6 }
  0x46   :  { %4495 = shalt.err (!%p4492_p10)
}
  0x47   :  { %s6227_s30 = sld [smem:[#allocation36_spill]]  ;;  %s4504_s14 = scalar_lea.vmem %s68_s0, 21504 }
  0x48   :  { %p4505_p11 = scmp.ne.s32.totalorder %s68_s0, %s4504_s14  ;;  %p4509_p12 = scmp.lt.s32.totalorder %s68_s0, %s68_s0 }
  0x49   :  { %p4510_p13 = scmp.lt.s32.totalorder %s4504_s14, %s4504_s14 }
  0x4b   :  { %p4511_p0 = por %p4510_p13, %p4509_p12 }
  0x4d   :  { %51 = dma.hbm_to_vmem [thread:$0]  %s6227_s30, 3072, %s46_s28, [#allocation11], %s4634_s2, %s4634_s2, %s4635_s7  }
  0x4e   :  { %p4512_p1 = pnand %p4511_p0, %p4505_p11 }
  0x50   :  { %4515 = shalt.err (!%p4512_p1)
}
  0x51   :  { %s6228_s1 = sld [smem:[#allocation38_spill]]  ;;  %s4638_s8 = smov [#allocation18]  }
  0x52   :  { %s92_s27 = sshll.u32 %s4638_s8, 4  ;;  %s4639_s4 = smov [#allocation21]   ;;  %s93_s27 = int_to_ptr.vmem [resolvable:$true] %s92_s27 }
  0x53   :  { %s115_s9 = sshll.u32 %s4639_s4, 4  ;;  %s4524_s28 = scalar_lea.vmem %s93_s27, 16  ;;  %s116_s9 = int_to_ptr.vmem [resolvable:$true] %s115_s9 }
  0x54   :  { %p4525_p2 = scmp.ne.s32.totalorder %s93_s27, %s4524_s28  ;;  %s4528_s5 = scalar_lea.vmem %s93_s27, 32 }
  0x55   :  { %p4529_p3 = scmp.lt.s32.totalorder %s93_s27, %s93_s27  ;;  %p4530_p4 = scmp.lt.s32.totalorder %s4528_s5, %s4524_s28 }
  0x57   :  { %73 = dma.hbm_to_vmem [thread:$0]  %s6228_s1, 21504, %s68_s0, [#allocation14], %s4634_s2, %s4634_s2, %s4635_s7  }
  0x58   :  { %p4531_p5 = por %p4530_p4, %p4529_p3 }
  0x5a   :  { %p4532_p6 = pnand %p4531_p5, %p4525_p2 }
  0x5c   :  { %4535 = shalt.err (!%p4532_p6)
}
  0x5d   :  { %s6229_s30 = sld [smem:[#allocation41_spill]]  ;;  %s4544_s14 = scalar_lea.vmem %s116_s9, 21504 }
  0x5e   :  { %p4545_p7 = scmp.ne.s32.totalorder %s116_s9, %s4544_s14  ;;  %p4549_p8 = scmp.lt.s32.totalorder %s116_s9, %s116_s9 }
  0x5f   :  { %p4550_p9 = scmp.lt.s32.totalorder %s4544_s14, %s4544_s14 }
  0x61   :  { %p4551_p10 = por %p4550_p9, %p4549_p8 }
  0x63   :  { %95 = dma.hbm_to_vmem [thread:$0]  %s6229_s30, 16, %s93_s27, [#allocation17]  }
  0x64   :  { %p4552_p11 = pnand %p4551_p10, %p4545_p7 }
  0x66   :  { %4555 = shalt.err (!%p4552_p11)
}
  0x67   :  { %s6230_s26 = sld [smem:[#allocation44_spill]]  ;;  %s4640_s1 = smov [#allocation24]  }
  0x68   :  { %s147_s8 = sshll.u32 %s4640_s1, 4  ;;  %s4641_s4 = smov [#allocation25]   ;;  %s148_s8 = int_to_ptr.vmem [resolvable:$true] %s147_s8 }
  0x69   :  { %s174_s28 = sshll.u32 %s4641_s4, 4  ;;  %s4564_s27 = scalar_lea.vmem %s148_s8, 24576  ;;  %s175_s28 = int_to_ptr.vmem [resolvable:$true] %s174_s28 }
  0x6a   :  { %p4565_p12 = scmp.ne.s32.totalorder %s148_s8, %s4564_s27  ;;  %p4569_p13 = scmp.lt.s32.totalorder %s148_s8, %s148_s8 }
  0x6b   :  { %p4570_p0 = scmp.lt.s32.totalorder %s4564_s27, %s4564_s27 }
  0x6d   :  { %121 = dma.hbm_to_vmem [thread:$0]  %s6230_s26, 21504, %s116_s9, [#allocation20], %s4634_s2, %s4634_s2, %s4635_s7  }
  0x6e   :  { %p4571_p1 = por %p4570_p0, %p4569_p13 }
  0x70   :  { %p4572_p2 = pnand %p4571_p1, %p4565_p12 }
  0x72   :  { %4575 = shalt.err (!%p4572_p2)
}
  0x73   :  { %153 = dma.hbm_to_vmem [thread:$0]  %s6201_s15, 24576, %s148_s8, [#allocation23], %s4634_s2, %s4634_s2, %s4635_s7  }
  0x74   :  { %s4584_s9 = scalar_lea.vmem %s175_s28, 16  ;;  %s4588_s3 = scalar_lea.vmem %s175_s28, 32 }
  0x75   :  { %p4585_p3 = scmp.ne.s32.totalorder %s175_s28, %s4584_s9  ;;  %p4589_p4 = scmp.lt.s32.totalorder %s175_s28, %s175_s28 }
  0x76   :  { %p4590_p5 = scmp.lt.s32.totalorder %s4588_s3, %s4584_s9 }
  0x78   :  { %p4591_p6 = por %p4590_p5, %p4589_p4 }
  0x7a   :  { %p4592_p7 = pnand %p4591_p6, %p4585_p3 }
  0x7c   :  { %4595 = shalt.err (!%p4592_p7)
}
  0x7d   :  { %177 = dma.hbm_to_vmem [thread:$0]  %s6209_s23, 16, %s175_s28, [#allocation26]  }
  0x7e   :  { %4616 = dma.done.wait [#allocation11], 3072  }
  0x7f   :  { %4617 = vsyncadd [#allocation11], 4294964224 }
  0x80   :  { %4618 = dma.done.wait [#allocation14], 21536  }
  0x81   :  { %4619 = vsyncadd [#allocation14], 4294945760 }
  0x82   :  { %4620 = dma.done.wait [#allocation17], 48  }
  0x83   :  { %4621 = vsyncadd [#allocation17], 4294967248 }
  0x84   :  { %4622 = dma.done.wait [#allocation20], 22528  }
  0x85   :  { %4623 = vsyncadd [#allocation20], 4294944768 }
  0x86   :  { %4624 = dma.done.wait [#allocation23], 26624  }
  0x87   :  { %4625 = vsyncadd [#allocation23], 4294940672 }
  0x88   :  { %4626 = dma.done.wait [#allocation26], 16  }
  0x89   :  { %4627 = vsyncadd [#allocation26], 4294967280  ;;  %v4642_v0 = vmov 0.0   ;;  %vm281_vm0 = vcmask 1043456   ;;  %v258_v1 = vld [vmem:[#allocation10 + $0x78] sm:$0xf] }
  0x8a   :  { %352 = vmatprep.mubr.f32.mxu0 %v4642_v0  ;;  %208 = vst [vmem:[#allocation6] sm:$0xff] %v4642_v0  ;;  %211 = vst [vmem:[#allocation6 + $0x10] sm:$0xff] %v4642_v0  ;;  %486 = vmatprep.mubr.f32.mxu1 %v4642_v0  ;;  %v242_v2 = vld [vmem:[#allocation10 + $0x38] sm:$0xf]  ;;  %v257_v3 = vld [vmem:[#allocation10 + $0x70] sm:$0xf] }
  0x8b   :  { %213 = vst [vmem:[#allocation6 + $0x20] sm:$0xff] %v4642_v0  ;;  %215 = vst [vmem:[#allocation6 + $0x30] sm:$0xff] %v4642_v0  ;;  %4105 = vmatprep.subr.msk.mxu0 %vm281_vm0, %v258_v1  ;;  %4114 = vmatprep.subr.msk.mxu1 %vm281_vm0, %v242_v2  ;;  %v241_v4 = vld [vmem:[#allocation10 + $0x30] sm:$0xf]  ;;  %v256_v5 = vld [vmem:[#allocation10 + $0x68] sm:$0xff]  ;;  %s6231_s2 = sld [smem:[#allocation35_spill]] }
  0x8c   :  { %217 = vst [vmem:[#allocation7] sm:$0xff] %v4642_v0  ;;  %219 = vst [vmem:[#allocation7 + $0x10] sm:$0xff] %v4642_v0  ;;  %v240_v6 = vld [vmem:[#allocation10 + $0x28] sm:$0xff]  ;;  %4106 = vmatpush1.msk.msra.mxu0 %vm281_vm0, %v257_v3  ;;  %4115 = vmatpush1.msk.msra.mxu1 %vm281_vm0, %v241_v4  ;;  %v255_v7 = vld [vmem:[#allocation10 + $0x60] sm:$0xff]  ;;  %vm259_vm1 = vcmask 228352   ;;  %vm209_vm2 = vcmask 785408  }
  0x8d   :  { %221 = vst [vmem:[#allocation7 + $0x20] sm:$0x3] %v4642_v0  ;;  %224 = vst [vmem:[#allocation8 + $0x10] sm:$0xff] %v4642_v0  ;;  %v239_v8 = vld [vmem:[#allocation10 + $0x20] sm:$0xff]  ;;  %v254_v9 = vld [vmem:[#allocation10 + $0x58] sm:$0xff]  ;;  %314 = vmatprep.subr.mxu0 %v256_v5  ;;  %448 = vmatprep.subr.mxu1 %v240_v6  ;;  %vm222_vm3 = vcmask 779264  }
  0x8e   :  { %225 = vst [vmem:[#allocation8] sm:$0xff] %v4642_v0  ;;  %226 = vst [vmem:[#allocation8 + $0x8] sm:$0xf] %v4642_v0  ;;  %v238_v10 = vld [vmem:[#allocation10 + $0x18] sm:$0xff]  ;;  %v253_v11 = vld [vmem:[#allocation10 + $0x50] sm:$0xff]  ;;  %315 = vmatpush1.msra.mxu0 %v255_v7  ;;  %449 = vmatpush1.msra.mxu1 %v239_v8  ;;  %vm789_vm9 = vcmask 783364  }
  0x8f   :  { %227 = vst [vmem:[#allocation8 + $0x18] sm:$0xf] %v4642_v0  ;;  %v237_v12 = vld [vmem:[#allocation10 + $0x10] sm:$0xff]  ;;  %v252_v13 = vld [vmem:[#allocation10 + $0x48] sm:$0xff]  ;;  %316 = vmatprep.subr.mxu0 %v254_v9  ;;  %450 = vmatprep.subr.mxu1 %v238_v10  ;;  %v251_v15 = vld [vmem:[#allocation10 + $0x40] sm:$0xff]  ;;  %vm784_vm11 = vcmask 781314  }
  0x90   :  { %v236_v14 = vld [vmem:[#allocation10 + $0x8] sm:$0xff]  ;;  %v235_v16 = vld [vmem:[#allocation10] sm:$0xff]  ;;  %317 = vmatpush1.msra.mxu0 %v253_v11  ;;  %451 = vmatpush1.msra.mxu1 %v237_v12  ;;  %v544_v19 = vld [vmem:[#allocation10 + $0xb8] sm:$0xf]  ;;  %210 = vst.msk [vmem:[#allocation6 + $0x8] sm:$0xff] %vm209_vm2, %v4642_v0  ;;  %vm800_vm15 = vcmask 785414  }
  0x91   :  { %v243_v17 = vld [vmem:[%s6231_s2 + $0x2] sm:$0xff]  ;;  %318 = vmatprep.subr.mxu0 %v252_v13  ;;  %452 = vmatprep.subr.mxu1 %v236_v14  ;;  %v244_v22 = vld [vmem:[%s6231_s2 + $0xa] sm:$0xff]  ;;  %v541_v24 = vld [vmem:[#allocation10 + $0xa0] sm:$0xff]  ;;  %212 = vst.msk [vmem:[#allocation6 + $0x18] sm:$0xff] %vm209_vm2, %v4642_v0  ;;  %s6232_s28 = sld [smem:[#allocation42_spill]]  ;;  %s4643_s0 = smov [#allocation27]  }
  0x92   :  { %v228_v18 = vld [vmem:[%s6231_s2] sm:$0xff]  ;;  %319 = vmatpush1.msra.mxu0 %v251_v15  ;;  %453 = vmatpush1.msra.mxu1 %v235_v16  ;;  %v543_v20 = vld [vmem:[#allocation10 + $0xb0] sm:$0xf]  ;;  %v540_v25 = vld [vmem:[#allocation10 + $0x98] sm:$0xff]  ;;  %214 = vst.msk [vmem:[#allocation6 + $0x28] sm:$0xff] %vm209_vm2, %v4642_v0  ;;  %s6233_s3 = sld [smem:[#allocation40_spill]] }
  0x93   :  { %4107 = vmatmul.mubr.msk.f32.vlgmr.msra.gmra.mxu0 %vm259_vm1, %v243_v17  ;;  %4116 = vmatmul.mubr.msk.f32.vlgmr.msra.gmra.mxu1 %vm259_vm1, %v228_v18  ;;  %v542_v21 = vld [vmem:[#allocation10 + $0xa8] sm:$0xff]  ;;  %v229_v23 = vld [vmem:[%s6231_s2 + $0x8] sm:$0xff]  ;;  %v245_v26 = vld [vmem:[%s6231_s2 + $0x12] sm:$0xff]  ;;  %216 = vst.msk [vmem:[#allocation6 + $0x38] sm:$0xff] %vm209_vm2, %v4642_v0  ;;  %s4087_s29 = sshll.u32 %s4643_s0, 4  ;;  %s4088_s29 = int_to_ptr.vmem [resolvable:$true] %s4087_s29 }
  0x94   :  { %4123 = vmatprep.subr.msk.mxu0 %vm281_vm0, %v544_v19  ;;  %358 = vmatprep.mubr.f32.mxu0 %v4642_v0  ;;  %v230_v27 = vld [vmem:[%s6231_s2 + $0x10] sm:$0xff]  ;;  %v539_v28 = vld [vmem:[#allocation10 + $0x90] sm:$0xff]  ;;  %v538_v29 = vld [vmem:[#allocation10 + $0x88] sm:$0xff]  ;;  %218 = vst.msk [vmem:[#allocation7 + $0x8] sm:$0xff] %vm209_vm2, %v4642_v0  ;;  %s4596_s26 = scalar_lea.vmem %s4088_s29, 32  ;;  %p4601_p9 = scmp.lt.s32.totalorder %s4088_s29, %s4088_s29 }
  0x95   :  { %4124 = vmatpush1.msk.msra.mxu0 %vm281_vm0, %v543_v20  ;;  %492 = vmatprep.mubr.f32.mxu1 %v4642_v0  ;;  %v246_v30 = vld [vmem:[%s6231_s2 + $0x1a] sm:$0xff]  ;;  %v247_v33 = vld [vmem:[%s6231_s2 + $0x22] sm:$0xff]  ;;  %v248_v35 = vld [vmem:[%s6231_s2 + $0x2a] sm:$0xff]  ;;  %220 = vst.msk [vmem:[#allocation7 + $0x18] sm:$0xff] %vm209_vm2, %v4642_v0  ;;  %p4597_p8 = scmp.ne.s32.totalorder %s4088_s29, %s4596_s26  ;;  %p4602_p10 = scmp.lt.s32.totalorder %s4596_s26, %s4596_s26 }
  0x96   :  { %598 = vmatprep.subr.mxu0 %v542_v21  ;;  %v231_v31 = vld [vmem:[%s6231_s2 + $0x18] sm:$0xff]  ;;  %v232_v34 = vld [vmem:[%s6231_s2 + $0x20] sm:$0xff]  ;;  %v233_v36 = vld [vmem:[%s6231_s2 + $0x28] sm:$0xff]  ;;  %223 = vst.msk [vmem:[#allocation7 + $0x28] sm:$0x3] %vm222_vm3, %v4642_v0 }
  0x97   :  { %4108 = vmatmul.mubr.msk.f32.gmra.mxu0 %vm259_vm1, %v244_v22  ;;  %4117 = vmatmul.mubr.msk.f32.gmra.mxu1 %vm259_vm1, %v229_v23  ;;  %v537_v32 = vld [vmem:[#allocation10 + $0x80] sm:$0xff]  ;;  %v234_v38 = vld [vmem:[%s6231_s2 + $0x30] sm:$0xff]  ;;  %v529_v39 = vld [vmem:[%s6231_s2 + $0x4] sm:$0xff]  ;;  %p4603_p11 = por %p4602_p10, %p4601_p9 }
  0x98   :  { %364 = vmatprep.mubr.f32.mxu0 %v4642_v0  ;;  %498 = vmatprep.mubr.f32.mxu1 %v4642_v0  ;;  %v249_v37 = vld [vmem:[%s6231_s2 + $0x32] sm:$0xff]  ;;  %v532_v42 = vld [vmem:[%s6231_s2 + $0x1c] sm:$0xff]  ;;  %v533_v43 = vld [vmem:[%s6231_s2 + $0x24] sm:$0xff] }
  0x99   :  { %599 = vmatpush1.msra.mxu0 %v541_v24  ;;  %v530_v40 = vld [vmem:[%s6231_s2 + $0xc] sm:$0xff]  ;;  %v531_v41 = vld [vmem:[%s6231_s2 + $0x14] sm:$0xff]  ;;  %v931_v48 = vld [vmem:[#allocation15 + $0xe8] sm:$0xff]  ;;  %p4604_p12 = pnand %p4603_p11, %p4597_p8 }
  0x9a   :  { %600 = vmatprep.subr.mxu0 %v540_v25  ;;  %v534_v44 = vld [vmem:[%s6231_s2 + $0x2c] sm:$0xff]  ;;  %v535_v45 = vld [vmem:[%s6231_s2 + $0x34] sm:$0xff]  ;;  %v927_v52 = vld [vmem:[#allocation15 + $0xc8] sm:$0xff] }
  0x9b   :  { %4109 = vmatmul.mubr.msk.f32.gmra.mxu0 %vm259_vm1, %v245_v26  ;;  %4118 = vmatmul.mubr.msk.f32.gmra.mxu1 %vm259_vm1, %v230_v27  ;;  %v933_v46 = vld [vmem:[#allocation15 + $0xf8] sm:$0xff]  ;;  %v932_v47 = vld [vmem:[#allocation15 + $0xf0] sm:$0xff]  ;;  %v930_v49 = vld [vmem:[#allocation15 + $0xe0] sm:$0xff] }
  0x9c   :  { %370 = vmatprep.mubr.f32.mxu0 %v4642_v0  ;;  %504 = vmatprep.mubr.f32.mxu1 %v4642_v0  ;;  %v929_v50 = vld [vmem:[#allocation15 + $0xd8] sm:$0xff]  ;;  %v928_v51 = vld [vmem:[#allocation15 + $0xd0] sm:$0xff]  ;;  %v926_v53 = vld [vmem:[#allocation15 + $0xc0] sm:$0xff] }
  0x9d   :  { %601 = vmatpush1.msra.mxu0 %v539_v28  ;;  %v925_v54 = vld [vmem:[#allocation15 + $0xb8] sm:$0xff]  ;;  %v924_v55 = vld [vmem:[#allocation15 + $0xb0] sm:$0xff]  ;;  %v923_v57 = vld [vmem:[#allocation15 + $0xa8] sm:$0xff] }
  0x9e   :  { %602 = vmatprep.subr.mxu0 %v538_v29  ;;  %v994_v56 = vld [vmem:[#allocation15 + $0x2b8] sm:$0xff]  ;;  %v993_v58 = vld [vmem:[#allocation15 + $0x2b0] sm:$0xff]  ;;  %v922_v59 = vld [vmem:[#allocation15 + $0xa0] sm:$0xff] }
  0x9f   :  { %4110 = vmatmul.mubr.msk.f32.gmra.mxu0 %vm259_vm1, %v246_v30  ;;  %4119 = vmatmul.mubr.msk.f32.gmra.mxu1 %vm259_vm1, %v231_v31  ;;  %v992_v60 = vld [vmem:[#allocation15 + $0x2a8] sm:$0xff]  ;;  %v921_v61 = vld [vmem:[#allocation15 + $0x98] sm:$0xff]  ;;  %v991_v62 = vld [vmem:[#allocation15 + $0x2a0] sm:$0xff] }
  0xa0   :  { %376 = vmatprep.mubr.f32.mxu0 %v4642_v0  ;;  %510 = vmatprep.mubr.f32.mxu1 %v4642_v0  ;;  %v920_v63 = vld [vmem:[#allocation15 + $0x90] sm:$0xff]  ;;  %v990_v1 = vld [vmem:[#allocation15 + $0x298] sm:$0xff]  ;;  %v919_v2 = vld [vmem:[#allocation15 + $0x88] sm:$0xff] }
  0xa1   :  { %603 = vmatpush1.msra.mxu0 %v537_v32  ;;  %1054 = vmatprep.subr.mxu1 %v994_v56  ;;  %v989_v3 = vld [vmem:[#allocation15 + $0x290] sm:$0xff]  ;;  %v918_v4 = vld [vmem:[#allocation15 + $0x80] sm:$0xff]  ;;  %v988_v5 = vld [vmem:[#allocation15 + $0x288] sm:$0xff] }
  0xa2   :  { %1153 = vmatprep.subr.mxu0 %v933_v46  ;;  %1055 = vmatpush1.msra.mxu1 %v993_v58  ;;  %v917_v6 = vld [vmem:[#allocation15 + $0x78] sm:$0xff]  ;;  %v987_v7 = vld [vmem:[#allocation15 + $0x280] sm:$0xff]  ;;  %v916_v8 = vld [vmem:[#allocation15 + $0x70] sm:$0xff] }
  0xa3   :  { %4111 = vmatmul.mubr.msk.f32.gmra.mxu0 %vm259_vm1, %v247_v33  ;;  %4120 = vmatmul.mubr.msk.f32.gmra.mxu1 %vm259_vm1, %v232_v34  ;;  %v986_v9 = vld [vmem:[#allocation15 + $0x278] sm:$0xff]  ;;  %v915_v10 = vld [vmem:[#allocation15 + $0x68] sm:$0xff]  ;;  %v985_v11 = vld [vmem:[#allocation15 + $0x270] sm:$0xff] }
  0xa4   :  { %382 = vmatprep.mubr.f32.mxu0 %v4642_v0  ;;  %516 = vmatprep.mubr.f32.mxu1 %v4642_v0  ;;  %v914_v12 = vld [vmem:[#allocation15 + $0x60] sm:$0xff]  ;;  %v984_v13 = vld [vmem:[#allocation15 + $0x268] sm:$0xff]  ;;  %v913_v14 = vld [vmem:[#allocation15 + $0x58] sm:$0xff] }
  0xa5   :  { %1056 = vmatprep.subr.mxu1 %v992_v60  ;;  %v983_v15 = vld [vmem:[#allocation15 + $0x260] sm:$0xff]  ;;  %v912_v16 = vld [vmem:[#allocation15 + $0x50] sm:$0xff]  ;;  %v982_v17 = vld [vmem:[#allocation15 + $0x258] sm:$0xff] }
  0xa6   :  { %1057 = vmatpush1.msra.mxu1 %v991_v62  ;;  %v911_v18 = vld [vmem:[#allocation15 + $0x48] sm:$0xff]  ;;  %v981_v19 = vld [vmem:[#allocation15 + $0x250] sm:$0xff]  ;;  %v910_v20 = vld [vmem:[#allocation15 + $0x40] sm:$0xff] }
  0xa7   :  { %4112 = vmatmul.mubr.msk.f32.gmra.mxu0 %vm259_vm1, %v248_v35  ;;  %4121 = vmatmul.mubr.msk.f32.gmra.mxu1 %vm259_vm1, %v233_v36  ;;  %v980_v21 = vld [vmem:[#allocation15 + $0x248] sm:$0xff]  ;;  %v909_v22 = vld [vmem:[#allocation15 + $0x38] sm:$0xff]  ;;  %v979_v23 = vld [vmem:[#allocation15 + $0x240] sm:$0xff] }
  0xa8   :  { %388 = vmatprep.mubr.f32.mxu0 %v4642_v0  ;;  %522 = vmatprep.mubr.f32.mxu1 %v4642_v0  ;;  %v908_v24 = vld [vmem:[#allocation15 + $0x30] sm:$0xff]  ;;  %v978_v25 = vld [vmem:[#allocation15 + $0x238] sm:$0xff]  ;;  %v907_v26 = vld [vmem:[#allocation15 + $0x28] sm:$0xff] }
  0xa9   :  { %1058 = vmatprep.subr.mxu1 %v990_v1  ;;  %v977_v27 = vld [vmem:[#allocation15 + $0x230] sm:$0xff]  ;;  %v906_v28 = vld [vmem:[#allocation15 + $0x20] sm:$0xff]  ;;  %v976_v29 = vld [vmem:[#allocation15 + $0x228] sm:$0xff] }
  0xaa   :  { %1059 = vmatpush1.msra.mxu1 %v989_v3  ;;  %v905_v30 = vld [vmem:[#allocation15 + $0x18] sm:$0xff]  ;;  %v975_v31 = vld [vmem:[#allocation15 + $0x220] sm:$0xff]  ;;  %v904_v32 = vld [vmem:[#allocation15 + $0x10] sm:$0xff] }
  0xab   :  { %4113 = vmatmul.mubr.msk.f32.gmra.mxu0 %vm259_vm1, %v249_v37  ;;  %4122 = vmatmul.mubr.msk.f32.gmra.mxu1 %vm259_vm1, %v234_v38  ;;  %v974_v33 = vld [vmem:[#allocation15 + $0x218] sm:$0xff]  ;;  %v903_v34 = vld [vmem:[#allocation15 + $0x8] sm:$0xff]  ;;  %v973_v35 = vld [vmem:[#allocation15 + $0x210] sm:$0xff] }
  0xac   :  { %636 = vmatprep.mubr.f32.mxu0 %v4642_v0  ;;  %1060 = vmatprep.subr.mxu1 %v988_v5  ;;  %v902_v36 = vld [vmem:[#allocation15] sm:$0xff]  ;;  %v972_v37 = vld [vmem:[#allocation15 + $0x208] sm:$0xff]  ;;  %v957_v38 = vld [vmem:[#allocation15 + $0x1b8] sm:$0xff] }
  0xad   :  { %1061 = vmatpush1.msra.mxu1 %v987_v7  ;;  %v953_v46 = vld [vmem:[#allocation15 + $0x198] sm:$0xff]  ;;  %v948_v56 = vld [vmem:[#allocation15 + $0x170] sm:$0xff]  ;;  %v947_v58 = vld [vmem:[#allocation15 + $0x168] sm:$0xff] }
  0xae   :  { %1062 = vmatprep.subr.mxu1 %v986_v9  ;;  %v946_v60 = vld [vmem:[#allocation15 + $0x160] sm:$0xff]  ;;  %v945_v62 = vld [vmem:[#allocation15 + $0x158] sm:$0xff]  ;;  %v944_v1 = vld [vmem:[#allocation15 + $0x150] sm:$0xff] }
  0xaf   :  { %4125 = vmatmul.mubr.msk.f32.vlgmr.msra.gmra.mxu0 %vm259_vm1, %v529_v39  ;;  %1063 = vmatpush1.msra.mxu1 %v985_v11  ;;  %v971_v39 = vld [vmem:[#allocation15 + $0x200] sm:$0xff]  ;;  %v943_v3 = vld [vmem:[#allocation15 + $0x148] sm:$0xff]  ;;  %v941_v7 = vld [vmem:[#allocation15 + $0x138] sm:$0xff] }
  0xb0   :  { %642 = vmatprep.mubr.f32.mxu0 %v4642_v0  ;;  %1154 = vmatpush1.msra.mxu0 %v932_v47  ;;  %v967_v47 = vld [vmem:[#allocation15 + $0x1e0] sm:$0xff]  ;;  %v940_v9 = vld [vmem:[#allocation15 + $0x130] sm:$0xff]  ;;  %v939_v11 = vld [vmem:[#allocation15 + $0x128] sm:$0xff] }
  0xb1   :  { %1155 = vmatprep.subr.mxu0 %v931_v48  ;;  %1064 = vmatprep.subr.mxu1 %v984_v13  ;;  %v952_v48 = vld [vmem:[#allocation15 + $0x190] sm:$0xff]  ;;  %v942_v5 = vld [vmem:[#allocation15 + $0x140] sm:$0xff] }
  0xb2   :  { %1156 = vmatpush1.msra.mxu0 %v930_v49  ;;  %1065 = vmatpush1.msra.mxu1 %v983_v15  ;;  %v966_v49 = vld [vmem:[#allocation15 + $0x1d8] sm:$0xff]  ;;  %v938_v13 = vld [vmem:[#allocation15 + $0x120] sm:$0xff] }
  0xb3   :  { %4126 = vmatmul.mubr.msk.f32.gmra.mxu0 %vm259_vm1, %v530_v40  ;;  %1157 = vmatprep.subr.mxu0 %v929_v50  ;;  %v956_v40 = vld [vmem:[#allocation15 + $0x1b0] sm:$0xff]  ;;  %v951_v50 = vld [vmem:[#allocation15 + $0x188] sm:$0xff]  ;;  %v937_v15 = vld [vmem:[#allocation15 + $0x118] sm:$0xff] }
  0xb4   :  { %648 = vmatprep.mubr.f32.mxu0 %v4642_v0  ;;  %1158 = vmatpush1.msra.mxu0 %v928_v51  ;;  %v965_v51 = vld [vmem:[#allocation15 + $0x1d0] sm:$0xff] }
  0xb5   :  { %1159 = vmatprep.subr.mxu0 %v927_v52  ;;  %1066 = vmatprep.subr.mxu1 %v982_v17  ;;  %v950_v52 = vld [vmem:[#allocation15 + $0x180] sm:$0xff]  ;;  %v936_v17 = vld [vmem:[#allocation15 + $0x110] sm:$0xff] }
  0xb6   :  { %1160 = vmatpush1.msra.mxu0 %v926_v53  ;;  %1067 = vmatpush1.msra.mxu1 %v981_v19  ;;  %v964_v53 = vld [vmem:[#allocation15 + $0x1c8] sm:$0xff] }
  0xb7   :  { %4127 = vmatmul.mubr.msk.f32.gmra.mxu0 %vm259_vm1, %v531_v41  ;;  %1161 = vmatprep.subr.mxu0 %v925_v54  ;;  %v970_v41 = vld [vmem:[#allocation15 + $0x1f8] sm:$0xff]  ;;  %v935_v19 = vld [vmem:[#allocation15 + $0x108] sm:$0xff] }
  0xb8   :  { %654 = vmatprep.mubr.f32.mxu0 %v4642_v0  ;;  %1162 = vmatpush1.msra.mxu0 %v924_v55  ;;  %v949_v54 = vld [vmem:[#allocation15 + $0x178] sm:$0xff]  ;;  %v963_v55 = vld [vmem:[#allocation15 + $0x1c0] sm:$0xff] }
  0xb9   :  { %1163 = vmatprep.subr.mxu0 %v923_v57  ;;  %1068 = vmatprep.subr.mxu1 %v980_v21  ;;  %v1018_v57 = vld [vmem:[#allocation15 + $0x378] sm:$0xff]  ;;  %v934_v21 = vld [vmem:[#allocation15 + $0x100] sm:$0xff] }
  0xba   :  { %1164 = vmatpush1.msra.mxu0 %v922_v59  ;;  %1069 = vmatpush1.msra.mxu1 %v979_v23  ;;  %v1017_v59 = vld [vmem:[#allocation15 + $0x370] sm:$0xff]  ;;  %v1003_v23 = vld [vmem:[#allocation15 + $0x300] sm:$0xff] }
  0xbb   :  { %4128 = vmatmul.mubr.msk.f32.gmra.mxu0 %vm259_vm1, %v532_v42  ;;  %1165 = vmatprep.subr.mxu0 %v921_v61  ;;  %v955_v42 = vld [vmem:[#allocation15 + $0x1a8] sm:$0xff] }
  0xbc   :  { %660 = vmatprep.mubr.f32.mxu0 %v4642_v0  ;;  %1166 = vmatpush1.msra.mxu0 %v920_v63  ;;  %v1016_v61 = vld [vmem:[#allocation15 + $0x368] sm:$0xff]  ;;  %v1015_v63 = vld [vmem:[#allocation15 + $0x360] sm:$0xff] }
  0xbd   :  { %1167 = vmatprep.subr.mxu0 %v919_v2  ;;  %1070 = vmatprep.subr.mxu1 %v978_v25  ;;  %v1014_v2 = vld [vmem:[#allocation15 + $0x358] sm:$0xff]  ;;  %v1001_v25 = vld [vmem:[#allocation15 + $0x2f0] sm:$0xff] }
  0xbe   :  { %1168 = vmatpush1.msra.mxu0 %v918_v4  ;;  %1071 = vmatpush1.msra.mxu1 %v977_v27  ;;  %v1013_v4 = vld [vmem:[#allocation15 + $0x350] sm:$0xff]  ;;  %v999_v27 = vld [vmem:[#allocation15 + $0x2e0] sm:$0xff] }
  0xbf   :  { %4129 = vmatmul.mubr.msk.f32.gmra.mxu0 %vm259_vm1, %v533_v43  ;;  %1169 = vmatprep.subr.mxu0 %v917_v6  ;;  %v969_v43 = vld [vmem:[#allocation15 + $0x1f0] sm:$0xff]  ;;  %v1012_v6 = vld [vmem:[#allocation15 + $0x348] sm:$0xff] }
  0xc0   :  { %666 = vmatprep.mubr.f32.mxu0 %v4642_v0  ;;  %1170 = vmatpush1.msra.mxu0 %v916_v8  ;;  %v1011_v8 = vld [vmem:[#allocation15 + $0x340] sm:$0xff] }
  0xc1   :  { %1171 = vmatprep.subr.mxu0 %v915_v10  ;;  %1072 = vmatprep.subr.mxu1 %v976_v29  ;;  %v1010_v10 = vld [vmem:[#allocation15 + $0x338] sm:$0xff]  ;;  %v997_v29 = vld [vmem:[#allocation15 + $0x2d0] sm:$0xff] }
  0xc2   :  { %1172 = vmatpush1.msra.mxu0 %v914_v12  ;;  %1073 = vmatpush1.msra.mxu1 %v975_v31  ;;  %v1009_v12 = vld [vmem:[#allocation15 + $0x330] sm:$0xff]  ;;  %v995_v31 = vld [vmem:[#allocation15 + $0x2c0] sm:$0xff] }
  0xc3   :  { %4130 = vmatmul.mubr.msk.f32.gmra.mxu0 %vm259_vm1, %v534_v44  ;;  %1173 = vmatprep.subr.mxu0 %v913_v14  ;;  %v954_v44 = vld [vmem:[#allocation15 + $0x1a0] sm:$0xff]  ;;  %v1008_v14 = vld [vmem:[#allocation15 + $0x328] sm:$0xff] }
  0xc4   :  { %672 = vmatprep.mubr.f32.mxu0 %v4642_v0  ;;  %1174 = vmatpush1.msra.mxu0 %v912_v16  ;;  %v1007_v16 = vld [vmem:[#allocation15 + $0x320] sm:$0xff] }
  0xc5   :  { %1175 = vmatprep.subr.mxu0 %v911_v18  ;;  %1074 = vmatprep.subr.mxu1 %v974_v33  ;;  %v1006_v18 = vld [vmem:[#allocation15 + $0x318] sm:$0xff] }
  0xc6   :  { %1176 = vmatpush1.msra.mxu0 %v910_v20  ;;  %1075 = vmatpush1.msra.mxu1 %v973_v35  ;;  %v1005_v20 = vld [vmem:[#allocation15 + $0x310] sm:$0xff] }
  0xc7   :  { %4131 = vmatmul.mubr.msk.f32.gmra.mxu0 %vm259_vm1, %v535_v45  ;;  %1177 = vmatprep.subr.mxu0 %v909_v22  ;;  %v968_v45 = vld [vmem:[#allocation15 + $0x1e8] sm:$0xff] }
  0xc8   :  { %1178 = vmatpush1.msra.mxu0 %v908_v24  ;;  %1076 = vmatprep.subr.mxu1 %v972_v37  ;;  %v1004_v22 = vld [vmem:[#allocation15 + $0x308] sm:$0xff]  ;;  %v1002_v24 = vld [vmem:[#allocation15 + $0x2f8] sm:$0xff] }
  0xc9   :  { %1179 = vmatprep.subr.mxu0 %v907_v26  ;;  %1077 = vmatpush1.msra.mxu1 %v971_v39  ;;  %v1000_v26 = vld [vmem:[#allocation15 + $0x2e8] sm:$0xff] }
  0xca   :  { %1180 = vmatpush1.msra.mxu0 %v906_v28  ;;  %1078 = vmatprep.subr.mxu1 %v970_v41  ;;  %v998_v28 = vld [vmem:[#allocation15 + $0x2d8] sm:$0xff] }
  0xcb   :  { %1181 = vmatprep.subr.mxu0 %v905_v30  ;;  %1079 = vmatpush1.msra.mxu1 %v969_v43  ;;  %v996_v30 = vld [vmem:[#allocation15 + $0x2c8] sm:$0xff] }
  0xcc   :  { %1182 = vmatpush1.msra.mxu0 %v904_v32  ;;  %1080 = vmatprep.subr.mxu1 %v968_v45  ;;  %v1278_v32 = vld [vmem:[#allocation15 + $0x478] sm:$0xff]  ;;  %v695_v45 = vlaneseq }
  0xcd   :  { %1183 = vmatprep.subr.mxu0 %v903_v34  ;;  %1081 = vmatpush1.msra.mxu1 %v967_v47 }
  0xce   :  { %1184 = vmatpush1.msra.mxu0 %v902_v36  ;;  %1082 = vmatprep.subr.mxu1 %v966_v49  ;;  %v696_v49 = vshrl.u32 %v695_v45, 7 }
  0xcf   :  { %1193 = vmatprep.subr.mxu0 %v957_v38  ;;  %1083 = vmatpush1.msra.mxu1 %v965_v51 }
  0xd0   :  { %1194 = vmatpush2.msra.mxu0 %v956_v40  ;;  %1084 = vmatprep.subr.mxu1 %v964_v53  ;;  %v4967_v53 = vsub.s32 0, %v696_v49 }
  0xd1   :  { %1195 = vmatprep.subr.mxu0 %v955_v42  ;;  %1085 = vmatpush1.msra.mxu1 %v963_v55  ;;  %v693_v55 = vld [vmem:[#allocation13] sm:$0x3] }
  0xd2   :  { %1196 = vmatpush2.msra.mxu0 %v954_v44  ;;  %1094 = vmatprep.subr.mxu1 %v1018_v57 }
  0xd3   :  { %1197 = vmatprep.subr.mxu0 %v953_v46  ;;  %1095 = vmatpush2.msra.mxu1 %v1017_v59 }
  0xd4   :  { %1198 = vmatpush2.msra.mxu0 %v952_v48  ;;  %1096 = vmatprep.subr.mxu1 %v1016_v61 }
  0xd5   :  { %1199 = vmatprep.subr.mxu0 %v951_v50  ;;  %1097 = vmatpush2.msra.mxu1 %v1015_v63 }
  0xd6   :  { %1200 = vmatpush2.msra.mxu0 %v950_v52  ;;  %1098 = vmatprep.subr.mxu1 %v1014_v2 }
  0xd7   :  { %1201 = vmatprep.subr.mxu0 %v949_v54  ;;  %1099 = vmatpush2.msra.mxu1 %v1013_v4 }
  0xd8   :  { %1202 = vmatpush2.msra.mxu0 %v948_v56  ;;  %1100 = vmatprep.subr.mxu1 %v1012_v6  ;;  %v4971_v56 = vsub.s32 1, %v696_v49 }
  0xd9   :  { %1203 = vmatprep.subr.mxu0 %v947_v58  ;;  %1101 = vmatpush2.msra.mxu1 %v1011_v8 }
  0xda   :  { %1204 = vmatpush2.msra.mxu0 %v946_v60  ;;  %1102 = vmatprep.subr.mxu1 %v1010_v10  ;;  %v4976_v60 = vrot.slane %v693_v55, %v4967_v53 }
  0xdb   :  { %1205 = vmatprep.subr.mxu0 %v945_v62  ;;  %1103 = vmatpush2.msra.mxu1 %v1009_v12 }
  0xdc   :  { %1206 = vmatpush2.msra.mxu0 %v944_v1  ;;  %1104 = vmatprep.subr.mxu1 %v1008_v14  ;;  %v4979_v1 = vrot.slane %v693_v55, %v4971_v56 }
  0xdd   :  { %1207 = vmatprep.subr.mxu0 %v943_v3  ;;  %1105 = vmatpush2.msra.mxu1 %v1007_v16 }
  0xde   :  { %1208 = vmatpush2.msra.mxu0 %v942_v5  ;;  %1106 = vmatprep.subr.mxu1 %v1006_v18 }
  0xdf   :  { %1209 = vmatprep.subr.mxu0 %v941_v7  ;;  %1107 = vmatpush2.msra.mxu1 %v1005_v20 }
  0xe0   :  { %1210 = vmatpush2.msra.mxu0 %v940_v9  ;;  %1108 = vmatprep.subr.mxu1 %v1004_v22 }
  0xe1   :  { %1211 = vmatprep.subr.mxu0 %v939_v11  ;;  %1109 = vmatpush2.msra.mxu1 %v1003_v23 }
  0xe2   :  { %1212 = vmatpush2.msra.mxu0 %v938_v13  ;;  %1110 = vmatprep.subr.mxu1 %v1002_v24 }
  0xe3   :  { %1213 = vmatprep.subr.mxu0 %v937_v15  ;;  %1111 = vmatpush2.msra.mxu1 %v1001_v25 }
  0xe4   :  { %1214 = vmatpush2.msra.mxu0 %v936_v17  ;;  %1112 = vmatprep.subr.mxu1 %v1000_v26 }
  0xe5   :  { %1215 = vmatprep.subr.mxu0 %v935_v19  ;;  %1113 = vmatpush2.msra.mxu1 %v999_v27 }
  0xe6   :  { %1216 = vmatpush2.msra.mxu0 %v934_v21  ;;  %1114 = vmatprep.subr.mxu1 %v998_v28 }
  0xe7   :  { %1643 = vmatprep.subr.mxu0 %v4642_v0  ;;  %1115 = vmatpush2.msra.mxu1 %v997_v29 }
  0xe8   :  { %1116 = vmatprep.subr.mxu1 %v996_v30 }
  0xe9   :  { %1117 = vmatpush2.msra.mxu1 %v995_v31 }
  0xea   :  { %1333 = vmatprep.subr.mxu1 %v1278_v32 }
 0x153   :  { %v354_v0 = vpop.f32.mrf.mxu0  ;;  %v488_v33 = vpop.f32.mrf.mxu1 }
 0x154   :  { %v489_v59 = vadd.f32 %v488_v33, %v354_v0 }
 0x155   :  { %v356_v34 = vpop.f32.mrf.mxu0  ;;  %v490_v35 = vpop.f32.mrf.mxu1 }
 0x156   :  { %v491_v62 = vadd.f32 %v490_v35, %v356_v34 }
 0x157   :  { %v360_v36 = vpop.f32.mrf.mxu0  ;;  %v494_v37 = vpop.f32.mrf.mxu1 }
 0x158   :  { %v495_v4 = vadd.f32 %v494_v37, %v360_v36 }
 0x159   :  { %v362_v38 = vpop.f32.mrf.mxu0  ;;  %v496_v40 = vpop.f32.mrf.mxu1 }
 0x15a   :  { %v497_v11 = vadd.f32 %v496_v40, %v362_v38 }
 0x15b   :  { %v366_v39 = vpop.f32.mrf.mxu0  ;;  %v500_v43 = vpop.f32.mrf.mxu1 }
 0x15c   :  { %v501_v12 = vadd.f32 %v500_v43, %v366_v39 }
 0x15d   :  { %v368_v41 = vpop.f32.mrf.mxu0  ;;  %v502_v47 = vpop.f32.mrf.mxu1 }
 0x15e   :  { %v503_v18 = vadd.f32 %v502_v47, %v368_v41 }
 0x15f   :  { %v372_v42 = vpop.f32.mrf.mxu0  ;;  %v506_v51 = vpop.f32.mrf.mxu1 }
 0x160   :  { %v507_v27 = vadd.f32 %v506_v51, %v372_v42 }
 0x161   :  { %v4959_v44 = vpop.f32.mrf.mxu0  ;;  %v508_v57 = vpop.f32.mrf.mxu1 }
 0x162   :  { %v509_v35 = vadd.f32 %v508_v57, %v4959_v44 }
 0x163   :  { %v378_v46 = vpop.f32.mrf.mxu0  ;;  %v512_v2 = vpop.f32.mrf.mxu1 }
 0x164   :  { %v513_v36 = vadd.f32 %v512_v2, %v378_v46 }
 0x165   :  { %v4961_v48 = vpop.f32.mrf.mxu0  ;;  %v514_v13 = vpop.f32.mrf.mxu1 }
 0x166   :  { %v515_v45 = vadd.f32 %v514_v13, %v4961_v48 }
 0x167   :  { %v4963_v50 = vpop.f32.mrf.mxu0  ;;  %v518_v24 = vpop.f32.mrf.mxu1 }
 0x169   :  { %v4965_v52 = vpop.f32.mrf.mxu0  ;;  %v520_v37 = vpop.f32.mrf.mxu1 }
 0x16b   :  { %v4969_v54 = vpop.f32.mrf.mxu0 }
 0x16d   :  { %v4973_v58 = vpop.f32.mrf.mxu0 }
 0x16f   :  { %v638_v61 = vpop.f32.mrf.mxu0 }
 0x170   :  { %v679_v63 = vadd.f32 %v638_v61, %v489_v59  ;;  %v524_v61 = vpop.f32.mrf.mxu1 }
 0x171   :  { %v640_v3 = vpop.f32.mrf.mxu0 }
 0x172   :  { %v705_v5 = vadd.f32 %v4976_v60, %v679_v63  ;;  %v680_v6 = vadd.f32 %v640_v3, %v491_v62  ;;  %v519_v3 = vadd.f32 %v518_v24, %v4963_v50 }
 0x173   :  { %v644_v7 = vpop.f32.mrf.mxu0 }
 0x174   :  { %vm719_vm4 = vcmp.gt.f32.partialorder %v705_v5, 0.0  ;;  %v733_v8 = vmul.f32 0.2, %v705_v5  ;;  %v706_v9 = vadd.f32 %v4979_v1, %v680_v6  ;;  %v681_v10 = vadd.f32 %v644_v7, %v495_v4 }
 0x175   :  { %v646_v14 = vpop.f32.mrf.mxu0 }
 0x176   :  { %v747_v15 = vsel %vm719_vm4, %v705_v5, %v733_v8  ;;  %vm720_vm5 = vcmp.gt.f32.partialorder %v706_v9, 0.0  ;;  %v734_v16 = vmul.f32 0.2, %v706_v9  ;;  %v707_v17 = vadd.f32 %v4976_v60, %v681_v10 }
 0x177   :  { %761 = vst [vmem:[#allocation2] sm:$0xff] %v747_v15  ;;  %v682_v19 = vadd.f32 %v646_v14, %v497_v11  ;;  %v650_v20 = vpop.f32.mrf.mxu0  ;;  %v521_v15 = vadd.f32 %v520_v37, %v4965_v52 }
 0x178   :  { %v748_v21 = vsel %vm720_vm5, %v706_v9, %v734_v16  ;;  %vm721_vm6 = vcmp.gt.f32.partialorder %v707_v17, 0.0  ;;  %v735_v22 = vmul.f32 0.2, %v707_v17  ;;  %v683_v23 = vadd.f32 %v650_v20, %v501_v12 }
 0x179   :  { %762 = vst.msk [vmem:[#allocation2 + $0x8] sm:$0xff] %vm209_vm2, %v748_v21  ;;  %v708_v25 = vadd.f32 %v4979_v1, %v682_v19  ;;  %v652_v26 = vpop.f32.mrf.mxu0  ;;  %v525_v16 = vadd.f32 %v524_v61, %v4969_v54 }
 0x17a   :  { %v749_v28 = vsel %vm721_vm6, %v707_v17, %v735_v22  ;;  %v709_v29 = vadd.f32 %v4976_v60, %v683_v23  ;;  %v684_v30 = vadd.f32 %v652_v26, %v503_v18  ;;  %v526_v17 = vpop.f32.mrf.mxu1 }
 0x17b   :  { %763 = vst [vmem:[#allocation2 + $0x10] sm:$0xff] %v749_v28  ;;  %vm722_vm7 = vcmp.gt.f32.partialorder %v708_v25, 0.0  ;;  %v736_v31 = vmul.f32 0.2, %v708_v25  ;;  %v656_v32 = vpop.f32.mrf.mxu0 }
 0x17c   :  { %vm723_vm8 = vcmp.gt.f32.partialorder %v709_v29, 0.0  ;;  %v737_v0 = vmul.f32 0.2, %v709_v29  ;;  %v710_v33 = vadd.f32 %v4979_v1, %v684_v30  ;;  %v685_v34 = vadd.f32 %v656_v32, %v507_v27 }
 0x17d   :  { %v750_v38 = vsel %vm722_vm7, %v708_v25, %v736_v31  ;;  %v658_v39 = vpop.f32.mrf.mxu0  ;;  %v527_v30 = vadd.f32 %v526_v17, %v4973_v58 }
 0x17e   :  { %v775_v40 = vld [vmem:[#allocation2] sm:$0x3]  ;;  %764 = vst.msk [vmem:[#allocation2 + $0x18] sm:$0xff] %vm209_vm2, %v750_v38  ;;  %v751_v41 = vsel %vm723_vm8, %v709_v29, %v737_v0  ;;  %vm724_vm10 = vcmp.gt.f32.partialorder %v710_v33, 0.0  ;;  %v738_v42 = vmul.f32 0.2, %v710_v33  ;;  %v711_v43 = vadd.f32 %v4976_v60, %v685_v34 }
 0x17f   :  { %v779_v47 = vrot.slane %v775_v40, 6  ;;  %765 = vst [vmem:[#allocation2 + $0x20] sm:$0xff] %v751_v41  ;;  %v686_v49 = vadd.f32 %v658_v39, %v509_v35  ;;  %v662_v51 = vpop.f32.mrf.mxu0  ;;  %v786_v44 = vld [vmem:[#allocation2] sm:$0x30]  ;;  %vm1027_vm8 = vcmask 1045504  }
 0x180   :  { %v776_v46 = vld [vmem:[#allocation2 + $0x8] sm:$0x3]  ;;  %v752_v55 = vsel %vm724_vm10, %v710_v33, %v738_v42  ;;  %vm725_vm12 = vcmp.gt.f32.partialorder %v711_v43, 0.0  ;;  %v739_v57 = vmul.f32 0.2, %v711_v43  ;;  %v687_v59 = vadd.f32 %v662_v51, %v513_v36 }
 0x181   :  { %788 = vst [vmem:[#allocation6] sm:$0x30] %v786_v44  ;;  %783 = vst [vmem:[#allocation6] sm:$0xc] %v779_v47  ;;  %v780_v62 = vrot.slane %v776_v46, 6  ;;  %v712_v63 = vadd.f32 %v4979_v1, %v686_v49  ;;  %v664_v48 = vpop.f32.mrf.mxu0 }
 0x182   :  { %766 = vst.msk [vmem:[#allocation2 + $0x28] sm:$0xff] %vm209_vm2, %v752_v55  ;;  %v787_v2 = vld [vmem:[#allocation2 + $0x8] sm:$0x30]  ;;  %v791_v4 = vld [vmem:[#allocation2 + $0x10] sm:$0x3]  ;;  %v753_v5 = vsel %vm725_vm12, %v711_v43, %v739_v57  ;;  %v713_v6 = vadd.f32 %v4976_v60, %v687_v59  ;;  %v688_v7 = vadd.f32 %v664_v48, %v515_v45 }
 0x183   :  { %790 = vst.msk [vmem:[#allocation6 + $0x8] sm:$0x30] %vm789_vm9, %v787_v2  ;;  %v802_v8 = vld [vmem:[#allocation2 + $0x10] sm:$0x30]  ;;  %v795_v9 = vrot.slane %v791_v4, 2  ;;  %767 = vst [vmem:[#allocation2 + $0x30] sm:$0xff] %v753_v5  ;;  %v668_v11 = vpop.f32.mrf.mxu0 }
 0x184   :  { %vm726_vm13 = vcmp.gt.f32.partialorder %v712_v63, 0.0  ;;  %v740_v10 = vmul.f32 0.2, %v712_v63  ;;  %785 = vst.msk [vmem:[#allocation6 + $0x8] sm:$0xc] %vm784_vm11, %v780_v62  ;;  %v806_v12 = vrot.slane %v802_v8, 4  ;;  %v714_v50 = vadd.f32 %v4979_v1, %v688_v7 }
 0x185   :  { %vm727_vm14 = vcmp.gt.f32.partialorder %v713_v6, 0.0  ;;  %v741_v13 = vmul.f32 0.2, %v713_v6  ;;  %v689_v14 = vadd.f32 %v668_v11, %v519_v3  ;;  %799 = vst [vmem:[#allocation6] sm:$0xc0] %v795_v9  ;;  %v670_v21 = vpop.f32.mrf.mxu0 }
 0x186   :  { %v792_v18 = vld [vmem:[#allocation2 + $0x18] sm:$0x3]  ;;  %v803_v19 = vld [vmem:[#allocation2 + $0x18] sm:$0x30]  ;;  %v754_v20 = vsel %vm726_vm13, %v712_v63, %v740_v10  ;;  %810 = vst [vmem:[#allocation6 + $0x10] sm:$0x3] %v806_v12  ;;  %v690_v26 = vadd.f32 %v670_v21, %v521_v15 }
 0x187   :  { %v796_v22 = vrot.slane %v792_v18, 2  ;;  %v807_v23 = vrot.slane %v803_v19, 4  ;;  %768 = vst.msk [vmem:[#allocation2 + $0x38] sm:$0xff] %vm209_vm2, %v754_v20  ;;  %v755_v24 = vsel %vm727_vm14, %v713_v6, %v741_v13  ;;  %vm728_vm1 = vcmp.gt.f32.partialorder %v714_v50, 0.0  ;;  %v812_v25 = vld [vmem:[#allocation2 + $0x20] sm:$0x3]  ;;  %v674_v27 = vpop.f32.mrf.mxu0 }
 0x188   :  { %769 = vst [vmem:[#allocation2 + $0x40] sm:$0xff] %v755_v24  ;;  %v742_v52 = vmul.f32 0.2, %v714_v50  ;;  %v715_v54 = vadd.f32 %v4976_v60, %v689_v14  ;;  %v816_v28 = vrot.slane %v812_v25, 6  ;;  %v822_v29 = vld [vmem:[#allocation2 + $0x20] sm:$0x30]  ;;  %v691_v32 = vadd.f32 %v674_v27, %v525_v16 }
 0x189   :  { %v813_v31 = vld [vmem:[#allocation2 + $0x28] sm:$0x3]  ;;  %801 = vst.msk [vmem:[#allocation6 + $0x8] sm:$0xc0] %vm800_vm15, %v796_v22  ;;  %v823_v0 = vld [vmem:[#allocation2 + $0x28] sm:$0x30]  ;;  %v676_v36 = vpop.f32.mrf.mxu0  ;;  %v716_v58 = vadd.f32 %v4979_v1, %v690_v26 }
 0x18a   :  { %811 = vst.msk [vmem:[#allocation6 + $0x18] sm:$0x3] %vm222_vm3, %v807_v23  ;;  %824 = vst [vmem:[#allocation6 + $0x10] sm:$0x30] %v822_v29  ;;  %v817_v33 = vrot.slane %v813_v31, 6  ;;  %v756_v34 = vsel %vm728_vm1, %v714_v50, %v742_v52  ;;  %vm729_vm4 = vcmp.gt.f32.partialorder %v715_v54, 0.0  ;;  %v717_v37 = vadd.f32 %v4976_v60, %v691_v32 }
 0x18b   :  { %v743_v35 = vmul.f32 0.2, %v715_v54  ;;  %825 = vst.msk [vmem:[#allocation6 + $0x18] sm:$0x30] %vm789_vm9, %v823_v0  ;;  %820 = vst [vmem:[#allocation6 + $0x10] sm:$0xc] %v816_v28  ;;  %v692_v38 = vadd.f32 %v676_v36, %v527_v30 }
 0x18c   :  { %770 = vst.msk [vmem:[#allocation2 + $0x48] sm:$0xff] %vm209_vm2, %v756_v34  ;;  %v826_v39 = vld [vmem:[#allocation2 + $0x30] sm:$0x3]  ;;  %v836_v40 = vld [vmem:[#allocation2 + $0x30] sm:$0x30]  ;;  %vm730_vm5 = vcmp.gt.f32.partialorder %v716_v58, 0.0 }
 0x18d   :  { %v757_v41 = vsel %vm729_vm4, %v715_v54, %v743_v35  ;;  %821 = vst.msk [vmem:[#allocation6 + $0x18] sm:$0xc] %vm784_vm11, %v817_v33  ;;  %v830_v42 = vrot.slane %v826_v39, 2  ;;  %v840_v43 = vrot.slane %v836_v40, 4  ;;  %v744_v45 = vmul.f32 0.2, %v716_v58 }
 0x18e   :  { %771 = vst [vmem:[#allocation2 + $0x50] sm:$0xff] %v757_v41  ;;  %vm731_vm6 = vcmp.gt.f32.partialorder %v717_v37, 0.0  ;;  %v745_v47 = vmul.f32 0.2, %v717_v37  ;;  %v827_v49 = vld [vmem:[#allocation2 + $0x38] sm:$0x3]  ;;  %v718_v44 = vadd.f32 %v4979_v1, %v692_v38 }
 0x18f   :  { %v837_v51 = vld [vmem:[#allocation2 + $0x38] sm:$0x30]  ;;  %834 = vst [vmem:[#allocation6 + $0x10] sm:$0xc0] %v830_v42  ;;  %844 = vst [vmem:[#allocation6 + $0x20] sm:$0x3] %v840_v43  ;;  %v758_v55 = vsel %vm730_vm5, %v716_v58, %v744_v45 }
 0x190   :  { %v831_v60 = vrot.slane %v827_v49, 2  ;;  %v841_v46 = vrot.slane %v837_v51, 4  ;;  %v759_v57 = vsel %vm731_vm6, %v717_v37, %v745_v47  ;;  %v846_v59 = vld [vmem:[#allocation2 + $0x40] sm:$0x3]  ;;  %772 = vst.msk [vmem:[#allocation2 + $0x58] sm:$0xff] %vm209_vm2, %v758_v55  ;;  %vm732_vm7 = vcmp.gt.f32.partialorder %v718_v44, 0.0 }
 0x191   :  { %773 = vst [vmem:[#allocation2 + $0x60] sm:$0xff] %v759_v57  ;;  %v746_v61 = vmul.f32 0.2, %v718_v44  ;;  %v895_v62 = vld [vmem:[#allocation6 + $0x8] sm:$0xff]  ;;  %v894_v63 = vld [vmem:[#allocation6] sm:$0xff]  ;;  %v850_v1 = vrot.slane %v846_v59, 6 }
 0x192   :  { %4136 = vmatprep.mubr.msk.f32.mxu0 %vm209_vm2, %v895_v62  ;;  %835 = vst.msk [vmem:[#allocation6 + $0x18] sm:$0xc0] %vm800_vm15, %v831_v60  ;;  %v856_v48 = vld [vmem:[#allocation2 + $0x40] sm:$0x30]  ;;  %v959_v11 = vld [vmem:[#allocation6 + $0x8] sm:$0xfc] }
 0x193   :  { %845 = vst.msk [vmem:[#allocation6 + $0x28] sm:$0x3] %vm222_vm3, %v841_v46  ;;  %v847_v2 = vld [vmem:[#allocation2 + $0x48] sm:$0x3]  ;;  %v760_v3 = vsel %vm732_vm7, %v718_v44, %v746_v61  ;;  %1218 = vmatmul.mubr.f32.vlgmr.msra.gmra.mxu0 %v894_v63  ;;  %v857_v4 = vld [vmem:[#allocation2 + $0x48] sm:$0x30] }
 0x194   :  { %858 = vst [vmem:[#allocation6 + $0x20] sm:$0x30] %v856_v48  ;;  %v851_v5 = vrot.slane %v847_v2, 6  ;;  %774 = vst.msk [vmem:[#allocation2 + $0x68] sm:$0xff] %vm209_vm2, %v760_v3  ;;  %v958_v12 = vld [vmem:[#allocation6] sm:$0xfc] }
 0x195   :  { %859 = vst.msk [vmem:[#allocation6 + $0x28] sm:$0x30] %vm789_vm9, %v857_v4  ;;  %854 = vst [vmem:[#allocation6 + $0x20] sm:$0xc] %v850_v1  ;;  %v860_v6 = vld [vmem:[#allocation2 + $0x50] sm:$0x3] }
 0x196   :  { %v870_v7 = vld [vmem:[#allocation2 + $0x50] sm:$0x30]  ;;  %855 = vst.msk [vmem:[#allocation6 + $0x28] sm:$0xc] %vm784_vm11, %v851_v5  ;;  %v864_v9 = vrot.slane %v860_v6, 2  ;;  %v1031_v21 = vrot.slane %v959_v11, 2 }
 0x197   :  { %v5021_v8 = vld [vmem:[#allocation6 + $0x10] sm:$0xff]  ;;  %v874_v10 = vrot.slane %v870_v7, 4  ;;  %v861_v13 = vld [vmem:[#allocation2 + $0x58] sm:$0x3]  ;;  %v871_v50 = vld [vmem:[#allocation2 + $0x58] sm:$0x30] }
 0x198   :  { %v890_v14 = vld [vmem:[#allocation2 + $0x60] sm:$0x30]  ;;  %868 = vst [vmem:[#allocation6 + $0x20] sm:$0xc0] %v864_v9  ;;  %v865_v15 = vrot.slane %v861_v13, 2  ;;  %v875_v16 = vrot.slane %v871_v50, 4 }
 0x199   :  { %878 = vst [vmem:[#allocation6 + $0x30] sm:$0x3] %v874_v10  ;;  %892 = vst [vmem:[#allocation6 + $0x30] sm:$0x30] %v890_v14  ;;  %v5023_v17 = vld [vmem:[#allocation6 + $0x18] sm:$0xff]  ;;  %v1029_v18 = vrot.slane %v5021_v8, 2 }
 0x19a   :  { %v880_v19 = vld [vmem:[#allocation2 + $0x60] sm:$0x3]  ;;  %v1032_v20 = vrot.slane %v5023_v17, 2  ;;  %4137 = vmatprep.mubr.msk.f32.mxu0 %vm209_vm2, %v5023_v17  ;;  %869 = vst.msk [vmem:[#allocation6 + $0x28] sm:$0xc0] %vm800_vm15, %v865_v15  ;;  %v1028_v25 = vrot.slane %v958_v12, 2 }
 0x19b   :  { %v884_v22 = vrot.slane %v880_v19, 6  ;;  %v881_v23 = vld [vmem:[#allocation2 + $0x68] sm:$0x3]  ;;  %v891_v24 = vld [vmem:[#allocation2 + $0x68] sm:$0x30]  ;;  %1224 = vmatmul.mubr.f32.gmra.mxu0 %v5021_v8  ;;  %v1275_v29 = vld [vmem:[#allocation15 + $0x460] sm:$0xff] }
 0x19c   :  { %879 = vst.msk [vmem:[#allocation6 + $0x38] sm:$0x3] %vm222_vm3, %v875_v16  ;;  %v885_v52 = vrot.slane %v881_v23, 6  ;;  %v1033_v54 = vsel %vm1027_vm8, %v1031_v21, %v1032_v20  ;;  %v1277_v26 = vld [vmem:[#allocation15 + $0x470] sm:$0xff]  ;;  %v1030_v27 = vsel %vm1027_vm8, %v1028_v25, %v1029_v18  ;;  %v1276_v28 = vld [vmem:[#allocation15 + $0x468] sm:$0xff]  ;;  %v1274_v30 = vld [vmem:[#allocation15 + $0x458] sm:$0xff] }
 0x19d   :  { %893 = vst.msk [vmem:[#allocation6 + $0x38] sm:$0x30] %vm789_vm9, %v891_v24  ;;  %888 = vst [vmem:[#allocation6 + $0x30] sm:$0xc] %v884_v22  ;;  %4132 = vmatprep.mubr.msk.f32.mxu1 %vm209_vm2, %v1033_v54  ;;  %v1273_v32 = vld [vmem:[#allocation15 + $0x450] sm:$0xff]  ;;  %v1272_v0 = vld [vmem:[#allocation15 + $0x448] sm:$0xff] }
 0x19e   :  { %889 = vst.msk [vmem:[#allocation6 + $0x38] sm:$0xc] %vm784_vm11, %v885_v52  ;;  %1119 = vmatmul.mubr.f32.vlgmr.msra.gmra.mxu1 %v1030_v27  ;;  %v1271_v35 = vld [vmem:[#allocation15 + $0x440] sm:$0xff]  ;;  %v1270_v58 = vld [vmem:[#allocation15 + $0x438] sm:$0xff]  ;;  %v1269_v40 = vld [vmem:[#allocation15 + $0x430] sm:$0xff]  ;;  %v1311_v61 = vrot.slane %v5023_v17, 4 }
 0x19f   :  { %1334 = vmatpush1.msra.mxu1 %v1277_v26  ;;  %v5037_v31 = vld [vmem:[#allocation6 + $0x20] sm:$0xff]  ;;  %v1266_v60 = vld [vmem:[#allocation15 + $0x418] sm:$0xff]  ;;  %v1265_v46 = vld [vmem:[#allocation15 + $0x410] sm:$0xff]  ;;  %vm1481_vm7 = vcmask 781312  }
 0x1a0   :  { %1335 = vmatprep.subr.mxu1 %v1276_v28  ;;  %v1034_v34 = vrot.slane %v5037_v31, 2  ;;  %v1268_v43 = vld [vmem:[#allocation15 + $0x428] sm:$0xff]  ;;  %v1267_v51 = vld [vmem:[#allocation15 + $0x420] sm:$0xff]  ;;  %v1243_v59 = vld [vmem:[#allocation6 + $0x8] sm:$0xf0] }
 0x1a1   :  { %1336 = vmatpush1.msra.mxu1 %v1275_v29  ;;  %v5039_v33 = vld [vmem:[#allocation6 + $0x28] sm:$0xff]  ;;  %v1263_v62 = vld [vmem:[#allocation15 + $0x400] sm:$0xff]  ;;  %v1262_v63 = vld [vmem:[#allocation15 + $0x3f8] sm:$0xff]  ;;  %v1310_v48 = vrot.slane %v1243_v59, 4 }
 0x1a2   :  { %1337 = vmatprep.subr.mxu1 %v1274_v30  ;;  %v1036_v36 = vrot.slane %v5039_v33, 2  ;;  %4138 = vmatprep.mubr.msk.f32.mxu0 %vm209_vm2, %v5039_v33  ;;  %v1035_v42 = vsel %vm1027_vm8, %v1029_v18, %v1034_v34  ;;  %v1264_v57 = vld [vmem:[#allocation15 + $0x408] sm:$0xff]  ;;  %v1261_v1 = vld [vmem:[#allocation15 + $0x3f0] sm:$0xff]  ;;  %v1259_v4 = vld [vmem:[#allocation15 + $0x3e0] sm:$0xff] }
 0x1a3   :  { %1338 = vmatpush1.msra.mxu1 %v1273_v32  ;;  %1230 = vmatmul.mubr.f32.gmra.mxu0 %v5037_v31  ;;  %v1260_v2 = vld [vmem:[#allocation15 + $0x3e8] sm:$0xff]  ;;  %v1312_v3 = vsel %vm281_vm0, %v1310_v48, %v1311_v61  ;;  %v1258_v5 = vld [vmem:[#allocation15 + $0x3d8] sm:$0xff]  ;;  %v1257_v6 = vld [vmem:[#allocation15 + $0x3d0] sm:$0xff] }
 0x1a4   :  { %v960_v37 = vld [vmem:[#allocation6 + $0x30] sm:$0x3f]  ;;  %1339 = vmatprep.subr.mxu1 %v1272_v0  ;;  %v1037_v38 = vsel %vm1027_vm8, %v1032_v20, %v1036_v36  ;;  %v1256_v7 = vld [vmem:[#allocation15 + $0x3c8] sm:$0xff]  ;;  %v1255_v9 = vld [vmem:[#allocation15 + $0x3c0] sm:$0xff] }
 0x1a5   :  { %1340 = vmatpush1.msra.mxu1 %v1271_v35  ;;  %v901_v39 = vld [vmem:[#allocation6 + $0x38] sm:$0xf]  ;;  %4133 = vmatprep.mubr.msk.f32.mxu1 %vm209_vm2, %v1037_v38  ;;  %v1038_v47 = vrot.slane %v960_v37, 2  ;;  %v900_v49 = vld [vmem:[#allocation6 + $0x30] sm:$0xf]  ;;  %v1252_v12 = vld [vmem:[#allocation15 + $0x3a8] sm:$0xff] }
 0x1a6   :  { %v961_v41 = vld [vmem:[#allocation6 + $0x38] sm:$0x3f]  ;;  %1341 = vmatprep.subr.mxu1 %v1270_v58  ;;  %1125 = vmatmul.mubr.f32.gmra.mxu1 %v1035_v42  ;;  %v1253_v11 = vld [vmem:[#allocation15 + $0x3b0] sm:$0xff]  ;;  %v1248_v15 = vld [vmem:[#allocation15 + $0x388] sm:$0xff] }
 0x1a7   :  { %v1040_v45 = vrot.slane %v961_v41, 2  ;;  %4139 = vmatprep.mubr.msk.f32.mxu0 %vm209_vm2, %v901_v39  ;;  %1342 = vmatpush1.msra.mxu1 %v1269_v40  ;;  %v1039_v55 = vsel %vm1027_vm8, %v1034_v34, %v1038_v47  ;;  %v1254_v10 = vld [vmem:[#allocation15 + $0x3b8] sm:$0xff]  ;;  %v1251_v13 = vld [vmem:[#allocation15 + $0x3a0] sm:$0xff]  ;;  %v1249_v14 = vld [vmem:[#allocation15 + $0x390] sm:$0xff]  ;;  %v1308_v39 = vrot.slane %v5021_v8, 4  ;;  %v1315_v41 = vrot.slane %v5039_v33, 4 }
 0x1a8   :  { %1236 = vmatmul.mubr.f32.gmra.mxu0 %v900_v49  ;;  %1343 = vmatprep.subr.mxu1 %v1268_v43  ;;  %v1250_v50 = vld [vmem:[#allocation15 + $0x398] sm:$0xff]  ;;  %v1247_v16 = vld [vmem:[#allocation15 + $0x380] sm:$0xff]  ;;  %v1301_v19 = vld [vmem:[#allocation15 + $0x530] sm:$0xff] }
 0x1a9   :  { %v1041_v44 = vsel %vm1027_vm8, %v1036_v36, %v1040_v45  ;;  %1344 = vmatpush1.msra.mxu1 %v1267_v51  ;;  %v1302_v18 = vld [vmem:[#allocation15 + $0x538] sm:$0xff]  ;;  %v1300_v20 = vld [vmem:[#allocation15 + $0x528] sm:$0xff]  ;;  %v1299_v21 = vld [vmem:[#allocation15 + $0x520] sm:$0xff]  ;;  %v1316_v8 = vsel %vm281_vm0, %v1311_v61, %v1315_v41 }
 0x1aa   :  { %4134 = vmatprep.mubr.msk.f32.mxu1 %vm209_vm2, %v1041_v44  ;;  %1345 = vmatprep.subr.mxu1 %v1266_v60  ;;  %v1298_v22 = vld [vmem:[#allocation15 + $0x518] sm:$0xff]  ;;  %v1297_v23 = vld [vmem:[#allocation15 + $0x510] sm:$0xff]  ;;  %v1296_v24 = vld [vmem:[#allocation15 + $0x508] sm:$0xff] }
 0x1ab   :  { %1131 = vmatmul.mubr.f32.gmra.mxu1 %v1039_v55  ;;  %v1295_v25 = vld [vmem:[#allocation15 + $0x500] sm:$0xff]  ;;  %v1294_v52 = vld [vmem:[#allocation15 + $0x4f8] sm:$0xff]  ;;  %v1293_v54 = vld [vmem:[#allocation15 + $0x4f0] sm:$0xff] }
 0x1ac   :  { %1346 = vmatpush1.msra.mxu1 %v1265_v46  ;;  %4135 = vmatprep.mubr.msk.f32.mxu1 %vm209_vm2, %v1040_v45  ;;  %v1292_v26 = vld [vmem:[#allocation15 + $0x4e8] sm:$0xff]  ;;  %v1291_v27 = vld [vmem:[#allocation15 + $0x4e0] sm:$0xff]  ;;  %v1290_v28 = vld [vmem:[#allocation15 + $0x4d8] sm:$0xff] }
 0x1ad   :  { %1347 = vmatprep.subr.mxu1 %v1264_v57  ;;  %v1289_v29 = vld [vmem:[#allocation15 + $0x4d0] sm:$0xff]  ;;  %v1288_v30 = vld [vmem:[#allocation15 + $0x4c8] sm:$0xff]  ;;  %v1287_v32 = vld [vmem:[#allocation15 + $0x4c0] sm:$0xff] }
 0x1ae   :  { %1348 = vmatpush1.msra.mxu1 %v1263_v62  ;;  %v1286_v0 = vld [vmem:[#allocation15 + $0x4b8] sm:$0xff]  ;;  %v1285_v34 = vld [vmem:[#allocation15 + $0x4b0] sm:$0xff]  ;;  %v1284_v35 = vld [vmem:[#allocation15 + $0x4a8] sm:$0xff] }
 0x1af   :  { %1349 = vmatprep.subr.mxu1 %v1262_v63  ;;  %1137 = vmatmul.mubr.f32.gmra.mxu1 %v1038_v47  ;;  %v1283_v36 = vld [vmem:[#allocation15 + $0x4a0] sm:$0xff]  ;;  %v1282_v58 = vld [vmem:[#allocation15 + $0x498] sm:$0xff]  ;;  %v1281_v37 = vld [vmem:[#allocation15 + $0x490] sm:$0xff]  ;;  %v1313_v47 = vrot.slane %v5037_v31, 4 }
 0x1b0   :  { %1350 = vmatpush1.msra.mxu1 %v1261_v1  ;;  %4140 = vmatprep.mubr.msk.f32.mxu1 %vm209_vm2, %v1312_v3  ;;  %v1242_v38 = vld [vmem:[#allocation6] sm:$0xf0]  ;;  %v1279_v42 = vld [vmem:[#allocation15 + $0x480] sm:$0xff]  ;;  %v1244_v44 = vld [vmem:[#allocation6 + $0x30] sm:$0xff] }
 0x1b1   :  { %1351 = vmatprep.subr.mxu1 %v1260_v2  ;;  %v1280_v40 = vld [vmem:[#allocation15 + $0x488] sm:$0xff]  ;;  %v1307_v43 = vrot.slane %v1242_v38, 4  ;;  %v1245_v45 = vld [vmem:[#allocation6 + $0x38] sm:$0xff]  ;;  %v1314_v33 = vsel %vm281_vm0, %v1308_v39, %v1313_v47  ;;  %v1317_v46 = vrot.slane %v1244_v44, 4  ;;  %v1626_v57 = vld [vmem:[%s6232_s28 + $0x70] sm:$0xff] }
 0x1b2   :  { %1352 = vmatpush1.msra.mxu1 %v1259_v4  ;;  %v1319_v51 = vrot.slane %v1245_v45, 4  ;;  %v5066_v60 = vld [vmem:[#allocation7] sm:$0xff]  ;;  %v1627_v55 = vld [vmem:[%s6232_s28 + $0x78] sm:$0xff]  ;;  %v1625_v59 = vld [vmem:[%s6232_s28 + $0x68] sm:$0xff] }
 0x1b3   :  { %1353 = vmatprep.subr.mxu1 %v1258_v5  ;;  %v1309_v49 = vsel %vm281_vm0, %v1307_v43, %v1308_v39  ;;  %v1318_v17 = vsel %vm281_vm0, %v1313_v47, %v1317_v46  ;;  %1644 = vmatpush1.msra.mxu0 %v1627_v55  ;;  %v1624_v61 = vld [vmem:[%s6232_s28 + $0x60] sm:$0xff]  ;;  %v1623_v62 = vld [vmem:[%s6232_s28 + $0x58] sm:$0xff]  ;;  %v1622_v63 = vld [vmem:[%s6232_s28 + $0x50] sm:$0xff] }
 0x1b4   :  { %1354 = vmatpush1.msra.mxu1 %v1257_v6  ;;  %v1320_v31 = vsel %vm281_vm0, %v1315_v41, %v1319_v51  ;;  %1645 = vmatprep.subr.mxu0 %v5066_v60  ;;  %v1621_v1 = vld [vmem:[%s6232_s28 + $0x48] sm:$0xff]  ;;  %v1620_v48 = vld [vmem:[%s6232_s28 + $0x40] sm:$0xff]  ;;  %v1619_v2 = vld [vmem:[%s6232_s28 + $0x38] sm:$0xff] }
 0x1b5   :  { %1355 = vmatprep.subr.mxu1 %v1256_v7  ;;  %1646 = vmatpush1.msra.mxu0 %v1626_v57  ;;  %v1618_v3 = vld [vmem:[%s6232_s28 + $0x30] sm:$0xff]  ;;  %v1617_v4 = vld [vmem:[%s6232_s28 + $0x28] sm:$0xff]  ;;  %v1616_v5 = vld [vmem:[%s6232_s28 + $0x20] sm:$0xff] }
 0x1b6   :  { %1356 = vmatpush1.msra.mxu1 %v1255_v9  ;;  %1647 = vmatprep.subr.mxu0 %v5066_v60  ;;  %v1615_v6 = vld [vmem:[%s6232_s28 + $0x18] sm:$0xff]  ;;  %v1614_v7 = vld [vmem:[%s6232_s28 + $0x10] sm:$0xff]  ;;  %v1613_v9 = vld [vmem:[%s6232_s28 + $0x8] sm:$0xff] }
 0x1b7   :  { %1357 = vmatprep.subr.mxu1 %v1254_v10  ;;  %1648 = vmatpush1.msra.mxu0 %v1625_v59  ;;  %v1612_v10 = vld [vmem:[%s6232_s28] sm:$0xff] }
 0x1b8   :  { %1358 = vmatpush1.msra.mxu1 %v1253_v11  ;;  %1649 = vmatprep.subr.mxu0 %v5066_v60  ;;  %v1639_v11 = vld [vmem:[%s6232_s28 + $0xd8] sm:$0xff] }
 0x1b9   :  { %1359 = vmatprep.subr.mxu1 %v1252_v12  ;;  %1650 = vmatpush1.msra.mxu0 %v1624_v61  ;;  %v1638_v12 = vld [vmem:[%s6232_s28 + $0xd0] sm:$0xff] }
 0x1ba   :  { %1360 = vmatpush1.msra.mxu1 %v1251_v13  ;;  %1651 = vmatprep.subr.mxu0 %v5066_v60  ;;  %v1637_v13 = vld [vmem:[%s6232_s28 + $0xc8] sm:$0xff] }
 0x1bb   :  { %1361 = vmatprep.subr.mxu1 %v1250_v50  ;;  %1652 = vmatpush1.msra.mxu0 %v1623_v62  ;;  %v1636_v50 = vld [vmem:[%s6232_s28 + $0xc0] sm:$0xff] }
 0x1bc   :  { %1362 = vmatpush1.msra.mxu1 %v1249_v14  ;;  %1653 = vmatprep.subr.mxu0 %v5066_v60  ;;  %v1635_v14 = vld [vmem:[%s6232_s28 + $0xb8] sm:$0xff] }
 0x1bd   :  { %1363 = vmatprep.subr.mxu1 %v1248_v15  ;;  %1654 = vmatpush1.msra.mxu0 %v1622_v63  ;;  %v1634_v15 = vld [vmem:[%s6232_s28 + $0xb0] sm:$0xff] }
 0x1be   :  { %1364 = vmatpush1.msra.mxu1 %v1247_v16  ;;  %1655 = vmatprep.subr.mxu0 %v5066_v60  ;;  %v1633_v16 = vld [vmem:[%s6232_s28 + $0xa8] sm:$0xff] }
 0x1bf   :  { %1373 = vmatprep.subr.mxu1 %v1302_v18  ;;  %1656 = vmatpush1.msra.mxu0 %v1621_v1  ;;  %v1632_v18 = vld [vmem:[%s6232_s28 + $0xa0] sm:$0xff] }
 0x1c0   :  { %1374 = vmatpush2.msra.mxu1 %v1301_v19  ;;  %1657 = vmatprep.subr.mxu0 %v5066_v60  ;;  %v1631_v19 = vld [vmem:[%s6232_s28 + $0x98] sm:$0xff] }
 0x1c1   :  { %1375 = vmatprep.subr.mxu1 %v1300_v20  ;;  %1658 = vmatpush1.msra.mxu0 %v1620_v48  ;;  %v1630_v20 = vld [vmem:[%s6232_s28 + $0x90] sm:$0xff] }
 0x1c2   :  { %1376 = vmatpush2.msra.mxu1 %v1299_v21  ;;  %1659 = vmatprep.subr.mxu0 %v5066_v60  ;;  %v1629_v21 = vld [vmem:[%s6232_s28 + $0x88] sm:$0xff] }
 0x1c3   :  { %1377 = vmatprep.subr.mxu1 %v1298_v22  ;;  %1660 = vmatpush1.msra.mxu0 %v1619_v2  ;;  %v1628_v22 = vld [vmem:[%s6232_s28 + $0x80] sm:$0xff] }
 0x1c4   :  { %1378 = vmatpush2.msra.mxu1 %v1297_v23  ;;  %1661 = vmatprep.subr.mxu0 %v5066_v60 }
 0x1c5   :  { %1379 = vmatprep.subr.mxu1 %v1296_v24  ;;  %1662 = vmatpush1.msra.mxu0 %v1618_v3 }
 0x1c6   :  { %1380 = vmatpush2.msra.mxu1 %v1295_v25  ;;  %1663 = vmatprep.subr.mxu0 %v5066_v60 }
 0x1c7   :  { %1381 = vmatprep.subr.mxu1 %v1294_v52  ;;  %1664 = vmatpush1.msra.mxu0 %v1617_v4 }
 0x1c8   :  { %1382 = vmatpush2.msra.mxu1 %v1293_v54  ;;  %1665 = vmatprep.subr.mxu0 %v5066_v60 }
 0x1c9   :  { %1383 = vmatprep.subr.mxu1 %v1292_v26  ;;  %1666 = vmatpush1.msra.mxu0 %v1616_v5 }
 0x1ca   :  { %1384 = vmatpush2.msra.mxu1 %v1291_v27  ;;  %1667 = vmatprep.subr.mxu0 %v5066_v60 }
 0x1cb   :  { %1385 = vmatprep.subr.mxu1 %v1290_v28  ;;  %1668 = vmatpush1.msra.mxu0 %v1615_v6 }
 0x1cc   :  { %1386 = vmatpush2.msra.mxu1 %v1289_v29  ;;  %1669 = vmatprep.subr.mxu0 %v5066_v60 }
 0x1cd   :  { %1387 = vmatprep.subr.mxu1 %v1288_v30  ;;  %1670 = vmatpush1.msra.mxu0 %v1614_v7 }
 0x1ce   :  { %1388 = vmatpush2.msra.mxu1 %v1287_v32  ;;  %1671 = vmatprep.subr.mxu0 %v5066_v60  ;;  %v1430_v32 = vld [vmem:[#allocation16] sm:$0x3] }
 0x1cf   :  { %1389 = vmatprep.subr.mxu1 %v1286_v0  ;;  %1672 = vmatpush1.msra.mxu0 %v1613_v9 }
 0x1d0   :  { %1390 = vmatpush2.msra.mxu1 %v1285_v34  ;;  %1673 = vmatprep.subr.mxu0 %v5066_v60 }
 0x1d1   :  { %1391 = vmatprep.subr.mxu1 %v1284_v35  ;;  %1674 = vmatpush1.msra.mxu0 %v1612_v10 }
 0x1d2   :  { %1392 = vmatpush2.msra.mxu1 %v1283_v36  ;;  %1683 = vmatprep.subr.mxu0 %v5066_v60 }
 0x1d3   :  { %1393 = vmatprep.subr.mxu1 %v1282_v58  ;;  %1684 = vmatpush2.msra.mxu0 %v1639_v11  ;;  %v1435_v58 = vrot.slane %v1430_v32, %v4967_v53 }
 0x1d4   :  { %1394 = vmatpush2.msra.mxu1 %v1281_v37  ;;  %1685 = vmatprep.subr.mxu0 %v5066_v60 }
 0x1d5   :  { %1395 = vmatprep.subr.mxu1 %v1280_v40  ;;  %1686 = vmatpush2.msra.mxu0 %v1638_v12  ;;  %v1439_v40 = vrot.slane %v1430_v32, %v4971_v56 }
 0x1d6   :  { %1396 = vmatpush2.msra.mxu1 %v1279_v42  ;;  %1687 = vmatprep.subr.mxu0 %v5066_v60 }
 0x1d7   :  { %1398 = vmatmul.mubr.f32.vlgmr.msra.gmra.mxu1 %v1309_v49  ;;  %1717 = vmatprep.subr.mxu1 %v5066_v60 }
 0x1d8   :  { %4141 = vmatprep.mubr.msk.f32.mxu1 %vm209_vm2, %v1316_v8  ;;  %1718 = vmatpush1.msra.mxu1 %v1627_v55 }
 0x1d9   :  { %1719 = vmatprep.subr.mxu1 %v5066_v60  ;;  %1688 = vmatpush2.msra.mxu0 %v1637_v13 }
 0x1da   :  { %1720 = vmatpush1.msra.mxu1 %v1626_v57  ;;  %1689 = vmatprep.subr.mxu0 %v5066_v60 }
 0x1db   :  { %1404 = vmatmul.mubr.f32.gmra.mxu1 %v1314_v33  ;;  %1721 = vmatprep.subr.mxu1 %v5066_v60 }
 0x1dc   :  { %4142 = vmatprep.mubr.msk.f32.mxu1 %vm209_vm2, %v1320_v31  ;;  %1722 = vmatpush1.msra.mxu1 %v1625_v59 }
 0x1dd   :  { %1723 = vmatprep.subr.mxu1 %v5066_v60  ;;  %1690 = vmatpush2.msra.mxu0 %v1636_v50 }
 0x1de   :  { %1724 = vmatpush1.msra.mxu1 %v1624_v61  ;;  %1691 = vmatprep.subr.mxu0 %v5066_v60 }
 0x1df   :  { %1410 = vmatmul.mubr.f32.gmra.mxu1 %v1318_v17  ;;  %1725 = vmatprep.subr.mxu1 %v5066_v60 }
 0x1e0   :  { %4143 = vmatprep.mubr.msk.f32.mxu1 %vm209_vm2, %v1319_v51  ;;  %1726 = vmatpush1.msra.mxu1 %v1623_v62 }
 0x1e1   :  { %1727 = vmatprep.subr.mxu1 %v5066_v60  ;;  %1692 = vmatpush2.msra.mxu0 %v1635_v14 }
 0x1e2   :  { %1728 = vmatpush1.msra.mxu1 %v1622_v63  ;;  %1693 = vmatprep.subr.mxu0 %v5066_v60 }
 0x1e3   :  { %1416 = vmatmul.mubr.f32.gmra.mxu1 %v1317_v46  ;;  %1729 = vmatprep.subr.mxu1 %v5066_v60 }
 0x1e4   :  { %1730 = vmatpush1.msra.mxu1 %v1621_v1  ;;  %1694 = vmatpush2.msra.mxu0 %v1634_v15 }
 0x1e5   :  { %1731 = vmatprep.subr.mxu1 %v5066_v60  ;;  %1695 = vmatprep.subr.mxu0 %v5066_v60 }
 0x1e6   :  { %1732 = vmatpush1.msra.mxu1 %v1620_v48  ;;  %1696 = vmatpush2.msra.mxu0 %v1633_v16 }
 0x1e7   :  { %1733 = vmatprep.subr.mxu1 %v5066_v60  ;;  %1697 = vmatprep.subr.mxu0 %v5066_v60 }
 0x1e8   :  { %1734 = vmatpush1.msra.mxu1 %v1619_v2  ;;  %1698 = vmatpush2.msra.mxu0 %v1632_v18 }
 0x1e9   :  { %1735 = vmatprep.subr.mxu1 %v5066_v60  ;;  %1699 = vmatprep.subr.mxu0 %v5066_v60 }
 0x1ea   :  { %1736 = vmatpush1.msra.mxu1 %v1618_v3  ;;  %1700 = vmatpush2.msra.mxu0 %v1631_v19 }
 0x1eb   :  { %1737 = vmatprep.subr.mxu1 %v5066_v60  ;;  %1701 = vmatprep.subr.mxu0 %v5066_v60 }
 0x1ec   :  { %1738 = vmatpush1.msra.mxu1 %v1617_v4  ;;  %1702 = vmatpush2.msra.mxu0 %v1630_v20 }
 0x1ed   :  { %1739 = vmatprep.subr.mxu1 %v5066_v60  ;;  %1703 = vmatprep.subr.mxu0 %v5066_v60 }
 0x1ee   :  { %1740 = vmatpush1.msra.mxu1 %v1616_v5  ;;  %1704 = vmatpush2.msra.mxu0 %v1629_v21 }
 0x1ef   :  { %1741 = vmatprep.subr.mxu1 %v5066_v60  ;;  %1705 = vmatprep.subr.mxu0 %v5066_v60 }
 0x1f0   :  { %1742 = vmatpush1.msra.mxu1 %v1615_v6  ;;  %1706 = vmatpush2.msra.mxu0 %v1628_v22 }
 0x1f1   :  { %1743 = vmatprep.subr.mxu1 %v5066_v60 }
 0x1f2   :  { %1744 = vmatpush1.msra.mxu1 %v1614_v7 }
 0x1f3   :  { %1745 = vmatprep.subr.mxu1 %v5066_v60 }
 0x1f4   :  { %1746 = vmatpush1.msra.mxu1 %v1613_v9 }
 0x1f5   :  { %1747 = vmatprep.subr.mxu1 %v5066_v60 }
 0x1f6   :  { %1748 = vmatpush1.msra.mxu1 %v1612_v10 }
 0x1f7   :  { %1757 = vmatprep.subr.mxu1 %v5066_v60 }
 0x1f8   :  { %1758 = vmatpush2.msra.mxu1 %v1639_v11 }
 0x1f9   :  { %1759 = vmatprep.subr.mxu1 %v5066_v60 }
 0x1fa   :  { %1760 = vmatpush2.msra.mxu1 %v1638_v12 }
 0x1fb   :  { %1761 = vmatprep.subr.mxu1 %v5066_v60 }
 0x1fc   :  { %1762 = vmatpush2.msra.mxu1 %v1637_v13 }
 0x1fd   :  { %1763 = vmatprep.subr.mxu1 %v5066_v60 }
 0x1fe   :  { %1764 = vmatpush2.msra.mxu1 %v1636_v50 }
 0x1ff   :  { %1765 = vmatprep.subr.mxu1 %v5066_v60 }
 0x200   :  { %1766 = vmatpush2.msra.mxu1 %v1635_v14 }
 0x201   :  { %1767 = vmatprep.subr.mxu1 %v5066_v60 }
 0x202   :  { %1768 = vmatpush2.msra.mxu1 %v1634_v15 }
 0x203   :  { %1769 = vmatprep.subr.mxu1 %v5066_v60 }
 0x204   :  { %1770 = vmatpush2.msra.mxu1 %v1633_v16 }
 0x205   :  { %1771 = vmatprep.subr.mxu1 %v5066_v60 }
 0x206   :  { %1772 = vmatpush2.msra.mxu1 %v1632_v18 }
 0x207   :  { %1773 = vmatprep.subr.mxu1 %v5066_v60 }
 0x208   :  { %1774 = vmatpush2.msra.mxu1 %v1631_v19 }
 0x209   :  { %1775 = vmatprep.subr.mxu1 %v5066_v60 }
 0x20a   :  { %1776 = vmatpush2.msra.mxu1 %v1630_v20 }
 0x20b   :  { %1777 = vmatprep.subr.mxu1 %v5066_v60 }
 0x20c   :  { %1778 = vmatpush2.msra.mxu1 %v1629_v21 }
 0x20d   :  { %1779 = vmatprep.subr.mxu1 %v5066_v60 }
 0x20e   :  { %1780 = vmatpush2.msra.mxu1 %v1628_v22 }
 0x253   :  { %v1219_v26 = vpop.f32.mrf.mxu0 }
 0x255   :  { %v1221_v28 = vpop.f32.mrf.mxu0 }
 0x25b   :  { %v1225_v29 = vpop.f32.mrf.mxu0 }
 0x25d   :  { %v1227_v0 = vpop.f32.mrf.mxu0 }
 0x25e   :  { %v1120_v23 = vpop.f32.mrf.mxu1 }
 0x25f   :  { %v1220_v35 = vadd.f32 %v1219_v26, %v1120_v23 }
 0x260   :  { %v1122_v24 = vpop.f32.mrf.mxu1 }
 0x261   :  { %v1222_v38 = vadd.f32 %v1221_v28, %v1122_v24 }
 0x263   :  { %v1231_v36 = vpop.f32.mrf.mxu0 }
 0x265   :  { %v1233_v42 = vpop.f32.mrf.mxu0 }
 0x266   :  { %v1126_v25 = vpop.f32.mrf.mxu1 }
 0x267   :  { %v1226_v43 = vadd.f32 %v1225_v29, %v1126_v25 }
 0x268   :  { %v1128_v52 = vpop.f32.mrf.mxu1  ;;  %v1237_v17 = vpop.f32.mrf.mxu0 }
 0x269   :  { %v1228_v33 = vadd.f32 %v1227_v0, %v1128_v52 }
 0x26a   :  { %v1239_v5 = vpop.f32.mrf.mxu0 }
 0x26b   :  { %v1132_v54 = vpop.f32.mrf.mxu1 }
 0x26c   :  { %v1232_v46 = vadd.f32 %v1231_v36, %v1132_v54 }
 0x26d   :  { %v1134_v27 = vpop.f32.mrf.mxu1 }
 0x26e   :  { %v1234_v61 = vadd.f32 %v1233_v42, %v1134_v27 }
 0x26f   :  { %v1138_v30 = vpop.f32.mrf.mxu1 }
 0x270   :  { %v1238_v6 = vadd.f32 %v1237_v17, %v1138_v30 }
 0x271   :  { %v1140_v34 = vpop.f32.mrf.mxu1 }
 0x272   :  { %v1240_v11 = vadd.f32 %v1239_v5, %v1140_v34 }
 0x297   :  { %v1399_v37 = vpop.f32.mrf.mxu1 }
 0x298   :  { %v1422_v39 = vadd.f32 %v1399_v37, %v1220_v35 }
 0x299   :  { %v1401_v41 = vpop.f32.mrf.mxu1 }
 0x29a   :  { %v1442_v45 = vadd.f32 %v1435_v58, %v1422_v39  ;;  %v1423_v47 = vadd.f32 %v1401_v41, %v1222_v38 }
 0x29b   :  { %v1405_v49 = vpop.f32.mrf.mxu1 }
 0x29c   :  { %vm1450_vm10 = vcmp.gt.f32.partialorder %v1442_v45, 0.0  ;;  %v1458_v8 = vmul.f32 0.2, %v1442_v45  ;;  %v1443_v51 = vadd.f32 %v1439_v40, %v1423_v47  ;;  %v1424_v44 = vadd.f32 %v1405_v49, %v1226_v43 }
 0x29d   :  { %v1407_v31 = vpop.f32.mrf.mxu1 }
 0x29e   :  { %v1466_v55 = vsel %vm1450_vm10, %v1442_v45, %v1458_v8  ;;  %vm1451_vm12 = vcmp.gt.f32.partialorder %v1443_v51, 0.0  ;;  %v1459_v57 = vmul.f32 0.2, %v1443_v51  ;;  %v1444_v59 = vadd.f32 %v1435_v58, %v1424_v44 }
 0x29f   :  { %1474 = vst [vmem:[#allocation3] sm:$0xff] %v1466_v55  ;;  %v1425_v62 = vadd.f32 %v1407_v31, %v1228_v33  ;;  %v1411_v63 = vpop.f32.mrf.mxu1 }
 0x2a0   :  { %v1467_v1 = vsel %vm1451_vm12, %v1443_v51, %v1459_v57  ;;  %vm1452_vm13 = vcmp.gt.f32.partialorder %v1444_v59, 0.0  ;;  %v1460_v48 = vmul.f32 0.2, %v1444_v59  ;;  %v1426_v2 = vadd.f32 %v1411_v63, %v1232_v46 }
 0x2a1   :  { %1475 = vst.msk [vmem:[#allocation3 + $0x8] sm:$0xff] %vm209_vm2, %v1467_v1  ;;  %v1445_v3 = vadd.f32 %v1439_v40, %v1425_v62  ;;  %v1413_v4 = vpop.f32.mrf.mxu1 }
 0x2a2   :  { %v1468_v7 = vsel %vm1452_vm13, %v1444_v59, %v1460_v48  ;;  %v1446_v9 = vadd.f32 %v1435_v58, %v1426_v2  ;;  %v1427_v10 = vadd.f32 %v1413_v4, %v1234_v61  ;;  %vm2767_vm13 = vcmask 523264  }
 0x2a3   :  { %1476 = vst [vmem:[#allocation3 + $0x10] sm:$0xff] %v1468_v7  ;;  %vm1453_vm14 = vcmp.gt.f32.partialorder %v1445_v3, 0.0  ;;  %v1461_v12 = vmul.f32 0.2, %v1445_v3  ;;  %v1417_v13 = vpop.f32.mrf.mxu1 }
 0x2a4   :  { %vm1454_vm1 = vcmp.gt.f32.partialorder %v1446_v9, 0.0  ;;  %v1462_v50 = vmul.f32 0.2, %v1446_v9  ;;  %v1447_v14 = vadd.f32 %v1439_v40, %v1427_v10  ;;  %v1428_v15 = vadd.f32 %v1417_v13, %v1238_v6 }
 0x2a5   :  { %v1469_v16 = vsel %vm1453_vm14, %v1445_v3, %v1461_v12  ;;  %v1419_v18 = vpop.f32.mrf.mxu1 }
 0x2a6   :  { %v1483_v19 = vld [vmem:[#allocation3] sm:$0x3]  ;;  %v1493_v20 = vld [vmem:[#allocation3] sm:$0x30]  ;;  %1477 = vst.msk [vmem:[#allocation3 + $0x18] sm:$0xff] %vm209_vm2, %v1469_v16  ;;  %v1470_v21 = vsel %vm1454_vm1, %v1446_v9, %v1462_v50  ;;  %vm1455_vm4 = vcmp.gt.f32.partialorder %v1447_v14, 0.0  ;;  %v1448_v22 = vadd.f32 %v1435_v58, %v1428_v15  ;;  %v1429_v23 = vadd.f32 %v1419_v18, %v1240_v11 }
 0x2a7   :  { %v1487_v24 = vrot.slane %v1483_v19, 6  ;;  %1495 = vst [vmem:[#allocation7] sm:$0x30] %v1493_v20  ;;  %1478 = vst [vmem:[#allocation3 + $0x20] sm:$0xff] %v1470_v21  ;;  %v1463_v25 = vmul.f32 0.2, %v1447_v14 }
 0x2a8   :  { %v1484_v52 = vld [vmem:[#allocation3 + $0x8] sm:$0x3]  ;;  %v1494_v54 = vld [vmem:[#allocation3 + $0x8] sm:$0x30]  ;;  %vm1456_vm5 = vcmp.gt.f32.partialorder %v1448_v22, 0.0  ;;  %v1449_v26 = vadd.f32 %v1439_v40, %v1429_v23 }
 0x2a9   :  { %1491 = vst [vmem:[#allocation7] sm:$0xc] %v1487_v24  ;;  %v1488_v27 = vrot.slane %v1484_v52, 6  ;;  %1496 = vst.msk [vmem:[#allocation7 + $0x8] sm:$0x30] %vm789_vm9, %v1494_v54  ;;  %v1471_v28 = vsel %vm1455_vm4, %v1447_v14, %v1463_v25 }
 0x2aa   :  { %v1464_v29 = vmul.f32 0.2, %v1448_v22  ;;  %v1497_v30 = vld [vmem:[#allocation3 + $0x10] sm:$0x3]  ;;  %v1507_v32 = vld [vmem:[#allocation3 + $0x10] sm:$0x30] }
 0x2ab   :  { %1479 = vst.msk [vmem:[#allocation3 + $0x28] sm:$0xff] %vm209_vm2, %v1471_v28  ;;  %vm1457_vm6 = vcmp.gt.f32.partialorder %v1449_v26, 0.0  ;;  %v1501_v0 = vrot.slane %v1497_v30, 2  ;;  %v1511_v34 = vrot.slane %v1507_v32, 4  ;;  %v1465_v36 = vmul.f32 0.2, %v1449_v26 }
 0x2ac   :  { %1492 = vst.msk [vmem:[#allocation7 + $0x8] sm:$0xc] %vm784_vm11, %v1488_v27  ;;  %v1472_v35 = vsel %vm1456_vm5, %v1448_v22, %v1464_v29 }
 0x2ad   :  { %1480 = vst [vmem:[#allocation3 + $0x30] sm:$0xf] %v1472_v35  ;;  %1505 = vst [vmem:[#allocation7] sm:$0xc0] %v1501_v0  ;;  %v1498_v58 = vld [vmem:[#allocation3 + $0x18] sm:$0x3]  ;;  %v1473_v38 = vsel %vm1457_vm6, %v1449_v26, %v1465_v36 }
 0x2ae   :  { %1515 = vst [vmem:[#allocation7 + $0x10] sm:$0x3] %v1511_v34  ;;  %v1508_v37 = vld [vmem:[#allocation3 + $0x18] sm:$0x30]  ;;  %v1502_v39 = vrot.slane %v1498_v58, 2 }
 0x2af   :  { %v1512_v40 = vrot.slane %v1508_v37, 4  ;;  %v1517_v41 = vld [vmem:[#allocation3 + $0x20] sm:$0x3]  ;;  %v1527_v42 = vld [vmem:[#allocation3 + $0x20] sm:$0x30] }
 0x2b0   :  { %1482 = vst.msk [vmem:[#allocation3 + $0x38] sm:$0xf] %vm1481_vm7, %v1473_v38  ;;  %v1521_v43 = vrot.slane %v1517_v41, 6  ;;  %1529 = vst [vmem:[#allocation7 + $0x10] sm:$0x30] %v1527_v42 }
 0x2b1   :  { %1506 = vst.msk [vmem:[#allocation7 + $0x8] sm:$0xc0] %vm800_vm15, %v1502_v39 }
 0x2b2   :  { %1516 = vst.msk [vmem:[#allocation7 + $0x18] sm:$0x3] %vm222_vm3, %v1512_v40  ;;  %1525 = vst [vmem:[#allocation7 + $0x10] sm:$0xc] %v1521_v43  ;;  %v1518_v45 = vld [vmem:[#allocation3 + $0x28] sm:$0x3] }
 0x2b3   :  { %v1528_v47 = vld [vmem:[#allocation3 + $0x28] sm:$0x30]  ;;  %v1522_v49 = vrot.slane %v1518_v45, 6  ;;  %vm1568_vm3 = vcmask 783360  }
 0x2b4   :  { %1530 = vst.msk [vmem:[#allocation7 + $0x18] sm:$0x30] %vm789_vm9, %v1528_v47  ;;  %v1531_v8 = vld [vmem:[#allocation3 + $0x30] sm:$0x3]  ;;  %v5226_v46 = vld [vmem:[#allocation7] sm:$0xfc] }
 0x2b5   :  { %1526 = vst.msk [vmem:[#allocation7 + $0x18] sm:$0xc] %vm784_vm11, %v1522_v49  ;;  %v1535_v51 = vrot.slane %v1531_v8, 2  ;;  %v1577_v55 = vmul.f32 %v5226_v46, %v5226_v46  ;;  %v1549_v57 = vrot.slane %v5226_v46, 2  ;;  %v1804_v45 = vld [vmem:[#allocation19 + $0x38] sm:$0xff]  ;;  %v1803_v47 = vld [vmem:[#allocation19 + $0x30] sm:$0xff] }
 0x2b6   :  { %v1802_v49 = vld [vmem:[#allocation19 + $0x28] sm:$0xff]  ;;  %1833 = vmatprep.subr.mxu1 %v1804_v45  ;;  %v1801_v8 = vld [vmem:[#allocation19 + $0x20] sm:$0xff]  ;;  %1907 = vmatprep.subr.mxu0 %v1804_v45  ;;  %vm1805_vm9 = vcmask 261120   ;;  %vm1979_vm11 = vcmask 785410  }
 0x2b7   :  { %v1532_v44 = vld [vmem:[#allocation3 + $0x38] sm:$0x3]  ;;  %1539 = vst [vmem:[#allocation7 + $0x10] sm:$0xc0] %v1535_v51  ;;  %v1585_v6 = vrot.slane %v1577_v55, 2  ;;  %v1800_v51 = vld [vmem:[#allocation19 + $0x18] sm:$0xff] }
 0x2b8   :  { %v1536_v33 = vrot.slane %v1532_v44, 2  ;;  %v5228_v31 = vld [vmem:[#allocation7 + $0x8] sm:$0xfc]  ;;  %v1797_v55 = vld [vmem:[#allocation19] sm:$0xff] }
 0x2b9   :  { %v1578_v61 = vmul.f32 %v5228_v31, %v5228_v31  ;;  %v1552_v1 = vrot.slane %v5228_v31, 2  ;;  %v1799_v44 = vld [vmem:[#allocation19 + $0x10] sm:$0xff]  ;;  %v1999_v45 = vld [vmem:[#allocation21 + $0x60] sm:$0xff] }
 0x2ba   :  { %1540 = vst.msk [vmem:[#allocation7 + $0x18] sm:$0xc0] %vm800_vm15, %v1536_v33  ;;  %v1798_v33 = vld [vmem:[#allocation19 + $0x8] sm:$0xff] }
 0x2bb   :  { %v1588_v11 = vrot.slane %v1578_v61, 2 }
 0x2be   :  { %v5230_v17 = vld [vmem:[#allocation7 + $0x10] sm:$0xff] }
 0x2bf   :  { %v1550_v59 = vrot.slane %v5230_v17, 2  ;;  %v1579_v62 = vmul.f32 %v5230_v17, %v5230_v17 }
 0x2c1   :  { %v5240_v63 = vld [vmem:[#allocation7 + $0x18] sm:$0xff]  ;;  %v1551_v2 = vsel %vm1027_vm8, %v1549_v57, %v1550_v59  ;;  %v1559_v3 = vsel %vm1027_vm8, %v1550_v59, 0.0  ;;  %v1586_v7 = vrot.slane %v1579_v62, 2 }
 0x2c2   :  { %v1553_v48 = vrot.slane %v5240_v63, 2  ;;  %v1580_v4 = vmul.f32 %v5240_v63, %v5240_v63  ;;  %v1560_v5 = vadd.f32 %v1559_v3, %v1551_v2  ;;  %v2079_v57 = vld [vmem:[#allocation21 + $0x2b8] sm:$0xff] }
 0x2c3   :  { %v1587_v14 = vsel %vm1027_vm8, %v1585_v6, %v1586_v7  ;;  %v1595_v15 = vsel %vm1027_vm8, %v1586_v7, 0.0  ;;  %v1790_v6 = vld [vmem:[%s6233_s3] sm:$0x1] }
 0x2c4   :  { %v1554_v9 = vsel %vm1027_vm8, %v1552_v1, %v1553_v48  ;;  %v1569_v10 = vsel %vm1568_vm3, %v1553_v48, 0.0  ;;  %v1589_v12 = vrot.slane %v1580_v4, 2  ;;  %v1561_v50 = vrot.slane %v1560_v5, 4 }
 0x2c5   :  { %v1567_v13 = vsel %vm209_vm2, %v1554_v9, 0.0  ;;  %v1596_v20 = vadd.f32 %v1595_v15, %v1587_v14  ;;  %v2014_v14 = vld [vmem:[#allocation21 + $0xd8] sm:$0xff] }
 0x2c6   :  { %v1570_v16 = vadd.f32 %v1569_v10, %v1567_v13  ;;  %v1590_v18 = vsel %vm1027_vm8, %v1588_v11, %v1589_v12  ;;  %v1604_v19 = vsel %vm1568_vm3, %v1589_v12, 0.0  ;;  %v1562_v21 = vadd.f32 %v1561_v50, %v1560_v5  ;;  %v2017_v10 = vld [vmem:[#allocation21 + $0xf0] sm:$0xff]  ;;  %v1794_v11 = vld [vmem:[#allocation18] sm:$0x1]  ;;  %v2016_v12 = vld [vmem:[#allocation21 + $0xe8] sm:$0xff] }
 0x2c7   :  { %v1603_v22 = vsel %vm209_vm2, %v1590_v18, 0.0  ;;  %v1597_v25 = vrot.slane %v1596_v20, 4  ;;  %v2015_v50 = vld [vmem:[#allocation21 + $0xe0] sm:$0xff]  ;;  %v2013_v18 = vld [vmem:[#allocation21 + $0xd0] sm:$0xff] }
 0x2c8   :  { %v1571_v23 = vrot.slane %v1570_v16, 4  ;;  %v1605_v24 = vadd.f32 %v1604_v19, %v1603_v22  ;;  %v1563_v52 = vrot.slane %v1562_v21, 2  ;;  %v2077_v19 = vld [vmem:[#allocation21 + $0x2a8] sm:$0xff]  ;;  %v2011_v22 = vld [vmem:[#allocation21 + $0xc0] sm:$0xff] }
 0x2c9   :  { %v1598_v27 = vadd.f32 %v1597_v25, %v1596_v20  ;;  %v2012_v20 = vld [vmem:[#allocation21 + $0xc8] sm:$0xff]  ;;  %v2074_v25 = vld [vmem:[#allocation21 + $0x290] sm:$0xff] }
 0x2ca   :  { %v1572_v54 = vadd.f32 %v1571_v23, %v1570_v16  ;;  %v1606_v26 = vrot.slane %v1605_v24, 4  ;;  %v1564_v28 = vadd.f32 %v1563_v52, %v1562_v21  ;;  %v2078_v16 = vld [vmem:[#allocation21 + $0x2b0] sm:$0xff]  ;;  %v2076_v21 = vld [vmem:[#allocation21 + $0x2a0] sm:$0xff]  ;;  %v2075_v23 = vld [vmem:[#allocation21 + $0x298] sm:$0xff] }
 0x2cb   :  { %v1599_v32 = vrot.slane %v1598_v27, 2  ;;  %v2009_v52 = vld [vmem:[#allocation21 + $0xb0] sm:$0xff] }
 0x2cc   :  { %v1573_v29 = vrot.slane %v1572_v54, 2  ;;  %v1607_v30 = vadd.f32 %v1606_v26, %v1605_v24  ;;  %v1565_v36 = vrot.slane %v1564_v28, 1  ;;  %v2010_v24 = vld [vmem:[#allocation21 + $0xb8] sm:$0xff]  ;;  %v2008_v26 = vld [vmem:[#allocation21 + $0xa8] sm:$0xff] }
 0x2cd   :  { %v1600_v35 = vadd.f32 %v1599_v32, %v1598_v27  ;;  %v2072_v27 = vld [vmem:[#allocation21 + $0x280] sm:$0xff]  ;;  %v2070_v32 = vld [vmem:[#allocation21 + $0x270] sm:$0xff] }
 0x2ce   :  { %v1574_v0 = vadd.f32 %v1573_v29, %v1572_v54  ;;  %v1608_v34 = vrot.slane %v1607_v30, 2  ;;  %v1566_v41 = vadd.f32 %v1565_v36, %v1564_v28  ;;  %v2073_v54 = vld [vmem:[#allocation21 + $0x288] sm:$0xff]  ;;  %v2007_v28 = vld [vmem:[#allocation21 + $0xa0] sm:$0xff]  ;;  %v2071_v29 = vld [vmem:[#allocation21 + $0x278] sm:$0xff] }
 0x2cf   :  { %v1601_v38 = vrot.slane %v1600_v35, 1  ;;  %v2068_v36 = vld [vmem:[#allocation21 + $0x260] sm:$0xff] }
 0x2d0   :  { %v1575_v58 = vrot.slane %v1574_v0, 1  ;;  %v1609_v37 = vadd.f32 %v1608_v34, %v1607_v30  ;;  %v2006_v30 = vld [vmem:[#allocation21 + $0x98] sm:$0xff]  ;;  %v2069_v34 = vld [vmem:[#allocation21 + $0x268] sm:$0xff] }
 0x2d1   :  { %v1602_v43 = vadd.f32 %v1601_v38, %v1600_v35  ;;  %v2004_v35 = vld [vmem:[#allocation21 + $0x88] sm:$0xff]  ;;  %v2002_v38 = vld [vmem:[#allocation21 + $0x78] sm:$0xff] }
 0x2d2   :  { %v1576_v39 = vadd.f32 %v1575_v58, %v1574_v0  ;;  %v1610_v40 = vrot.slane %v1609_v37, 1  ;;  %v2005_v0 = vld [vmem:[#allocation21 + $0x90] sm:$0xff]  ;;  %v2003_v58 = vld [vmem:[#allocation21 + $0x80] sm:$0xff] }
 0x2d4   :  { %4144 = vmatprep.mubr.msk.f32.mxu0 %vm209_vm2, %v1576_v39  ;;  %v1611_v42 = vadd.f32 %v1610_v40, %v1609_v37  ;;  %v2067_v37 = vld [vmem:[#allocation21 + $0x258] sm:$0xff]  ;;  %v2066_v39 = vld [vmem:[#allocation21 + $0x250] sm:$0xff] }
 0x2d5   :  { %1708 = vmatmul.mubr.f32.vlgmr.msra.gmra.mxu0 %v1566_v41  ;;  %v2001_v40 = vld [vmem:[#allocation21 + $0x70] sm:$0xff]  ;;  %v2065_v41 = vld [vmem:[#allocation21 + $0x248] sm:$0xff] }
 0x2d6   :  { %4145 = vmatprep.mubr.msk.f32.mxu1 %vm209_vm2, %v1611_v42  ;;  %1947 = vmatprep.mubr.f32.mxu0 %v5066_v60  ;;  %v2000_v42 = vld [vmem:[#allocation21 + $0x68] sm:$0xff] }
 0x2d7   :  { %1782 = vmatmul.mubr.f32.vlgmr.msra.gmra.mxu1 %v1602_v43  ;;  %1908 = vmatpush1.msra.mxu0 %v1803_v47  ;;  %v2064_v43 = vld [vmem:[#allocation21 + $0x240] sm:$0xff] }
 0x2d8   :  { %1873 = vmatprep.mubr.f32.mxu1 %v5066_v60  ;;  %1834 = vmatpush1.msra.mxu1 %v1803_v47  ;;  %v2018_v60 = vld [vmem:[#allocation21 + $0xf8] sm:$0xff] }
 0x2d9   :  { %1835 = vmatprep.subr.mxu1 %v1802_v49  ;;  %1909 = vmatprep.subr.mxu0 %v1802_v49  ;;  %v2063_v47 = vld [vmem:[#allocation21 + $0x238] sm:$0xff] }
 0x2da   :  { %1836 = vmatpush1.msra.mxu1 %v1801_v8  ;;  %1910 = vmatpush1.msra.mxu0 %v1801_v8  ;;  %v1998_v49 = vld [vmem:[#allocation21 + $0x58] sm:$0xff]  ;;  %v2062_v8 = vld [vmem:[#allocation21 + $0x230] sm:$0xff] }
 0x2db   :  { %1837 = vmatprep.subr.mxu1 %v1800_v51  ;;  %1911 = vmatprep.subr.mxu0 %v1800_v51  ;;  %v1997_v51 = vld [vmem:[#allocation21 + $0x50] sm:$0xff] }
 0x2dc   :  { %1838 = vmatpush1.msra.mxu1 %v1799_v44  ;;  %1912 = vmatpush1.msra.mxu0 %v1799_v44  ;;  %v2061_v44 = vld [vmem:[#allocation21 + $0x228] sm:$0xff] }
 0x2dd   :  { %1839 = vmatprep.subr.mxu1 %v1798_v33  ;;  %1913 = vmatprep.subr.mxu0 %v1798_v33  ;;  %v1996_v33 = vld [vmem:[#allocation21 + $0x48] sm:$0xff] }
 0x2de   :  { %1840 = vmatpush1.msra.mxu1 %v1797_v55  ;;  %1914 = vmatpush1.msra.mxu0 %v1797_v55  ;;  %v2060_v55 = vld [vmem:[#allocation21 + $0x220] sm:$0xff] }
 0x2df   :  { %2203 = vmatprep.subr.mxu1 %v2018_v60  ;;  %2120 = vmatprep.subr.mxu0 %v2079_v57  ;;  %v1995_v60 = vld [vmem:[#allocation21 + $0x40] sm:$0xff]  ;;  %v2059_v57 = vld [vmem:[#allocation21 + $0x218] sm:$0xff] }
 0x395   :  { %v1709_v59 = vpop.f32.mrf.mxu0 }
 0x396   :  { %v1713_v61 = vmul.f32 0.010204081, %v1709_v59  ;;  %v1994_v59 = vld [vmem:[#allocation21 + $0x38] sm:$0xff] }
 0x397   :  { %v1711_v62 = vpop.f32.mrf.mxu0  ;;  %v1783_v1 = vpop.f32.mrf.mxu1 }
 0x398   :  { %v1788_v48 = vmul.f32 %v1713_v61, %v1713_v61  ;;  %v1787_v2 = vmul.f32 0.010204081, %v1783_v1  ;;  %v1993_v62 = vld [vmem:[#allocation21 + $0x30] sm:$0xff]  ;;  %v2057_v1 = vld [vmem:[#allocation21 + $0x208] sm:$0xff] }
 0x399   :  { %v1785_v3 = vpop.f32.mrf.mxu1 }
 0x39a   :  { %v1789_v4 = vsub.f32 %v1787_v2, %v1788_v48  ;;  %v1992_v48 = vld [vmem:[#allocation21 + $0x28] sm:$0xff]  ;;  %v2056_v2 = vld [vmem:[#allocation21 + $0x200] sm:$0xff] }
 0x39b   :  { %v1991_v3 = vld [vmem:[#allocation21 + $0x20] sm:$0xff] }
 0x39c   :  { %v1791_v5 = vadd.f32 0.8, %v1789_v4  ;;  %v2055_v4 = vld [vmem:[#allocation21 + $0x1f8] sm:$0xff] }
 0x39e   :  { %4384 = vrsqrt.f32 %v1791_v5  ;;  %v1990_v5 = vld [vmem:[#allocation21 + $0x18] sm:$0xff] }
 0x3ab   :  { %v4385_v7 = vpop.eup %4384 }
 0x3ac   :  { %v1793_v9 = vmul.f32 %v4385_v7, %v1790_v6  ;;  %v2054_v6 = vld [vmem:[#allocation21 + $0x1f0] sm:$0xff] }
 0x3ad   :  { %v1989_v7 = vld [vmem:[#allocation21 + $0x10] sm:$0xff] }
 0x3ae   :  { %4146 = vmatmul.mubr.msk.f32.vlgmr.msra.gmra.mxu1 %vm1805_vm9, %v1793_v9  ;;  %v1795_v13 = vmul.f32 %v1793_v9, %v1713_v61  ;;  %v2058_v61 = vld [vmem:[#allocation21 + $0x210] sm:$0xff]  ;;  %v2053_v9 = vld [vmem:[#allocation21 + $0x1e8] sm:$0xff] }
 0x3af   :  { %2204 = vmatpush1.msra.mxu1 %v2017_v10  ;;  %v1988_v10 = vld [vmem:[#allocation21 + $0x8] sm:$0xff] }
 0x3b0   :  { %v1796_v15 = vsub.f32 %v1794_v11, %v1795_v13  ;;  %2205 = vmatprep.subr.mxu1 %v2016_v12  ;;  %v2052_v11 = vld [vmem:[#allocation21 + $0x1e0] sm:$0xff]  ;;  %v2051_v13 = vld [vmem:[#allocation21 + $0x1d8] sm:$0xff] }
 0x3b1   :  { %2206 = vmatpush1.msra.mxu1 %v2015_v50  ;;  %v1987_v12 = vld [vmem:[#allocation21] sm:$0xff]  ;;  %v2042_v50 = vld [vmem:[#allocation21 + $0x1b8] sm:$0xff] }
 0x3b2   :  { %4147 = vmatmul.mubr.msk.f32.vlgmr.msra.gmra.mxu0 %vm1805_vm9, %v1796_v15  ;;  %2207 = vmatprep.subr.mxu1 %v2014_v14  ;;  %v2050_v14 = vld [vmem:[#allocation21 + $0x1d0] sm:$0xff] }
 0x3b3   :  { %2121 = vmatpush1.msra.mxu0 %v2078_v16  ;;  %2208 = vmatpush1.msra.mxu1 %v2013_v18  ;;  %v2041_v15 = vld [vmem:[#allocation21 + $0x1b0] sm:$0xff]  ;;  %v2049_v16 = vld [vmem:[#allocation21 + $0x1c8] sm:$0xff] }
 0x3b4   :  { %2122 = vmatprep.subr.mxu0 %v2077_v19  ;;  %2209 = vmatprep.subr.mxu1 %v2012_v20  ;;  %v2040_v18 = vld [vmem:[#allocation21 + $0x1a8] sm:$0xff]  ;;  %v2048_v19 = vld [vmem:[#allocation21 + $0x1c0] sm:$0xff] }
 0x3b5   :  { %2123 = vmatpush1.msra.mxu0 %v2076_v21  ;;  %2210 = vmatpush1.msra.mxu1 %v2011_v22  ;;  %v2039_v20 = vld [vmem:[#allocation21 + $0x1a0] sm:$0xff]  ;;  %v2103_v21 = vld [vmem:[#allocation21 + $0x378] sm:$0xff]  ;;  %v2102_v22 = vld [vmem:[#allocation21 + $0x370] sm:$0xff] }
 0x3b6   :  { %2124 = vmatprep.subr.mxu0 %v2075_v23  ;;  %2211 = vmatprep.subr.mxu1 %v2010_v24  ;;  %v2101_v23 = vld [vmem:[#allocation21 + $0x368] sm:$0xff]  ;;  %v2038_v24 = vld [vmem:[#allocation21 + $0x198] sm:$0xff] }
 0x3b7   :  { %2125 = vmatpush1.msra.mxu0 %v2074_v25  ;;  %2212 = vmatpush1.msra.mxu1 %v2009_v52  ;;  %v2100_v25 = vld [vmem:[#allocation21 + $0x360] sm:$0xff]  ;;  %v2037_v52 = vld [vmem:[#allocation21 + $0x190] sm:$0xff] }
 0x3b8   :  { %2126 = vmatprep.subr.mxu0 %v2073_v54  ;;  %2213 = vmatprep.subr.mxu1 %v2008_v26  ;;  %v2099_v54 = vld [vmem:[#allocation21 + $0x358] sm:$0xff]  ;;  %v2036_v26 = vld [vmem:[#allocation21 + $0x188] sm:$0xff] }
 0x3b9   :  { %2127 = vmatpush1.msra.mxu0 %v2072_v27  ;;  %2214 = vmatpush1.msra.mxu1 %v2007_v28  ;;  %v2098_v27 = vld [vmem:[#allocation21 + $0x350] sm:$0xff]  ;;  %v2035_v28 = vld [vmem:[#allocation21 + $0x180] sm:$0xff] }
 0x3ba   :  { %2128 = vmatprep.subr.mxu0 %v2071_v29  ;;  %2215 = vmatprep.subr.mxu1 %v2006_v30  ;;  %v2097_v29 = vld [vmem:[#allocation21 + $0x348] sm:$0xff]  ;;  %v2034_v30 = vld [vmem:[#allocation21 + $0x178] sm:$0xff] }
 0x3bb   :  { %2129 = vmatpush1.msra.mxu0 %v2070_v32  ;;  %2216 = vmatpush1.msra.mxu1 %v2005_v0  ;;  %v2096_v32 = vld [vmem:[#allocation21 + $0x340] sm:$0xff]  ;;  %v2033_v0 = vld [vmem:[#allocation21 + $0x170] sm:$0xff] }
 0x3bc   :  { %2130 = vmatprep.subr.mxu0 %v2069_v34  ;;  %2217 = vmatprep.subr.mxu1 %v2004_v35  ;;  %v2095_v34 = vld [vmem:[#allocation21 + $0x338] sm:$0xff]  ;;  %v2032_v35 = vld [vmem:[#allocation21 + $0x168] sm:$0xff] }
 0x3bd   :  { %2131 = vmatpush1.msra.mxu0 %v2068_v36  ;;  %2218 = vmatpush1.msra.mxu1 %v2003_v58  ;;  %v2094_v36 = vld [vmem:[#allocation21 + $0x330] sm:$0xff]  ;;  %v2031_v58 = vld [vmem:[#allocation21 + $0x160] sm:$0xff] }
 0x3be   :  { %2132 = vmatprep.subr.mxu0 %v2067_v37  ;;  %2219 = vmatprep.subr.mxu1 %v2002_v38  ;;  %v2093_v37 = vld [vmem:[#allocation21 + $0x328] sm:$0xff]  ;;  %v2030_v38 = vld [vmem:[#allocation21 + $0x158] sm:$0xff] }
 0x3bf   :  { %2133 = vmatpush1.msra.mxu0 %v2066_v39  ;;  %2220 = vmatpush1.msra.mxu1 %v2001_v40  ;;  %v2092_v39 = vld [vmem:[#allocation21 + $0x320] sm:$0xff]  ;;  %v2029_v40 = vld [vmem:[#allocation21 + $0x150] sm:$0xff] }
 0x3c0   :  { %2134 = vmatprep.subr.mxu0 %v2065_v41  ;;  %2221 = vmatprep.subr.mxu1 %v2000_v42  ;;  %v2091_v41 = vld [vmem:[#allocation21 + $0x318] sm:$0xff]  ;;  %v2028_v42 = vld [vmem:[#allocation21 + $0x148] sm:$0xff] }
 0x3c1   :  { %2135 = vmatpush1.msra.mxu0 %v2064_v43  ;;  %2222 = vmatpush1.msra.mxu1 %v1999_v45  ;;  %v2090_v43 = vld [vmem:[#allocation21 + $0x310] sm:$0xff]  ;;  %v2027_v45 = vld [vmem:[#allocation21 + $0x140] sm:$0xff] }
 0x3c2   :  { %2136 = vmatprep.subr.mxu0 %v2063_v47  ;;  %2223 = vmatprep.subr.mxu1 %v1998_v49  ;;  %v2089_v47 = vld [vmem:[#allocation21 + $0x308] sm:$0xff]  ;;  %v2026_v49 = vld [vmem:[#allocation21 + $0x138] sm:$0xff] }
 0x3c3   :  { %2137 = vmatpush1.msra.mxu0 %v2062_v8  ;;  %2224 = vmatpush1.msra.mxu1 %v1997_v51  ;;  %v2088_v8 = vld [vmem:[#allocation21 + $0x300] sm:$0xff]  ;;  %v2025_v51 = vld [vmem:[#allocation21 + $0x130] sm:$0xff] }
 0x3c4   :  { %2138 = vmatprep.subr.mxu0 %v2061_v44  ;;  %2225 = vmatprep.subr.mxu1 %v1996_v33  ;;  %v2087_v44 = vld [vmem:[#allocation21 + $0x2f8] sm:$0xff]  ;;  %v2024_v33 = vld [vmem:[#allocation21 + $0x128] sm:$0xff] }
 0x3c5   :  { %2139 = vmatpush1.msra.mxu0 %v2060_v55  ;;  %2226 = vmatpush1.msra.mxu1 %v1995_v60  ;;  %v2086_v55 = vld [vmem:[#allocation21 + $0x2f0] sm:$0xff]  ;;  %v2023_v60 = vld [vmem:[#allocation21 + $0x120] sm:$0xff] }
 0x3c6   :  { %2140 = vmatprep.subr.mxu0 %v2059_v57  ;;  %2227 = vmatprep.subr.mxu1 %v1994_v59  ;;  %v2085_v57 = vld [vmem:[#allocation21 + $0x2e8] sm:$0xff]  ;;  %v2022_v59 = vld [vmem:[#allocation21 + $0x118] sm:$0xff] }
 0x3c7   :  { %2141 = vmatpush1.msra.mxu0 %v2058_v61  ;;  %2228 = vmatpush1.msra.mxu1 %v1993_v62  ;;  %v2084_v61 = vld [vmem:[#allocation21 + $0x2e0] sm:$0xff]  ;;  %v2021_v62 = vld [vmem:[#allocation21 + $0x110] sm:$0xff] }
 0x3c8   :  { %2142 = vmatprep.subr.mxu0 %v2057_v1  ;;  %2229 = vmatprep.subr.mxu1 %v1992_v48  ;;  %v2083_v1 = vld [vmem:[#allocation21 + $0x2d8] sm:$0xff]  ;;  %v2020_v48 = vld [vmem:[#allocation21 + $0x108] sm:$0xff] }
 0x3c9   :  { %2143 = vmatpush1.msra.mxu0 %v2056_v2  ;;  %2230 = vmatpush1.msra.mxu1 %v1991_v3  ;;  %v2082_v2 = vld [vmem:[#allocation21 + $0x2d0] sm:$0xff]  ;;  %v2019_v3 = vld [vmem:[#allocation21 + $0x100] sm:$0xff] }
 0x3ca   :  { %2144 = vmatprep.subr.mxu0 %v2055_v4  ;;  %2231 = vmatprep.subr.mxu1 %v1990_v5  ;;  %v2081_v4 = vld [vmem:[#allocation21 + $0x2c8] sm:$0xff]  ;;  %v2080_v5 = vld [vmem:[#allocation21 + $0x2c0] sm:$0xff] }
 0x3cb   :  { %2145 = vmatpush1.msra.mxu0 %v2054_v6  ;;  %2232 = vmatpush1.msra.mxu1 %v1989_v7  ;;  %v2318_v6 = vld [vmem:[#allocation21 + $0x478] sm:$0xff] }
 0x3cc   :  { %2146 = vmatprep.subr.mxu0 %v2053_v9  ;;  %2233 = vmatprep.subr.mxu1 %v1988_v10 }
 0x3cd   :  { %2147 = vmatpush1.msra.mxu0 %v2052_v11  ;;  %2234 = vmatpush1.msra.mxu1 %v1987_v12 }
 0x3ce   :  { %2148 = vmatprep.subr.mxu0 %v2051_v13  ;;  %2243 = vmatprep.subr.mxu1 %v2042_v50 }
 0x3cf   :  { %2149 = vmatpush1.msra.mxu0 %v2050_v14  ;;  %2244 = vmatpush2.msra.mxu1 %v2041_v15 }
 0x3d0   :  { %2150 = vmatprep.subr.mxu0 %v2049_v16  ;;  %2245 = vmatprep.subr.mxu1 %v2040_v18 }
 0x3d1   :  { %2151 = vmatpush1.msra.mxu0 %v2048_v19  ;;  %2246 = vmatpush2.msra.mxu1 %v2039_v20 }
 0x3d2   :  { %2160 = vmatprep.subr.mxu0 %v2103_v21  ;;  %2247 = vmatprep.subr.mxu1 %v2038_v24 }
 0x3d3   :  { %2161 = vmatpush2.msra.mxu0 %v2102_v22  ;;  %2248 = vmatpush2.msra.mxu1 %v2037_v52 }
 0x3d4   :  { %2162 = vmatprep.subr.mxu0 %v2101_v23  ;;  %2249 = vmatprep.subr.mxu1 %v2036_v26 }
 0x3d5   :  { %2163 = vmatpush2.msra.mxu0 %v2100_v25  ;;  %2250 = vmatpush2.msra.mxu1 %v2035_v28 }
 0x3d6   :  { %2164 = vmatprep.subr.mxu0 %v2099_v54  ;;  %2251 = vmatprep.subr.mxu1 %v2034_v30  ;;  %v2317_v30 = vld [vmem:[#allocation21 + $0x470] sm:$0xff] }
 0x3d7   :  { %2165 = vmatpush2.msra.mxu0 %v2098_v27  ;;  %2252 = vmatpush2.msra.mxu1 %v2033_v0 }
 0x3d8   :  { %2166 = vmatprep.subr.mxu0 %v2097_v29  ;;  %2253 = vmatprep.subr.mxu1 %v2032_v35  ;;  %v2315_v35 = vld [vmem:[#allocation21 + $0x460] sm:$0xff] }
 0x3d9   :  { %2167 = vmatpush2.msra.mxu0 %v2096_v32  ;;  %2254 = vmatpush2.msra.mxu1 %v2031_v58 }
 0x3da   :  { %2168 = vmatprep.subr.mxu0 %v2095_v34  ;;  %2255 = vmatprep.subr.mxu1 %v2030_v38  ;;  %v2316_v34 = vld [vmem:[#allocation21 + $0x468] sm:$0xff]  ;;  %v2313_v38 = vld [vmem:[#allocation21 + $0x450] sm:$0xff] }
 0x3db   :  { %2169 = vmatpush2.msra.mxu0 %v2094_v36  ;;  %2256 = vmatpush2.msra.mxu1 %v2029_v40 }
 0x3dc   :  { %2170 = vmatprep.subr.mxu0 %v2093_v37  ;;  %2257 = vmatprep.subr.mxu1 %v2028_v42  ;;  %v2314_v37 = vld [vmem:[#allocation21 + $0x458] sm:$0xff] }
 0x3dd   :  { %2171 = vmatpush2.msra.mxu0 %v2092_v39  ;;  %2258 = vmatpush2.msra.mxu1 %v2027_v45  ;;  %v2312_v39 = vld [vmem:[#allocation21 + $0x448] sm:$0xff]  ;;  %v2310_v42 = vld [vmem:[#allocation21 + $0x438] sm:$0xff] }
 0x3de   :  { %2172 = vmatprep.subr.mxu0 %v2091_v41  ;;  %2259 = vmatprep.subr.mxu1 %v2026_v49  ;;  %v2311_v41 = vld [vmem:[#allocation21 + $0x440] sm:$0xff]  ;;  %v2308_v45 = vld [vmem:[#allocation21 + $0x428] sm:$0xff]  ;;  %v2306_v49 = vld [vmem:[#allocation21 + $0x418] sm:$0xff] }
 0x3df   :  { %2173 = vmatpush2.msra.mxu0 %v2090_v43  ;;  %2260 = vmatpush2.msra.mxu1 %v2025_v51  ;;  %v2309_v43 = vld [vmem:[#allocation21 + $0x430] sm:$0xff]  ;;  %v2304_v51 = vld [vmem:[#allocation21 + $0x408] sm:$0xff] }
 0x3e0   :  { %2174 = vmatprep.subr.mxu0 %v2089_v47  ;;  %2261 = vmatprep.subr.mxu1 %v2024_v33  ;;  %v2307_v47 = vld [vmem:[#allocation21 + $0x420] sm:$0xff]  ;;  %v2302_v33 = vld [vmem:[#allocation21 + $0x3f8] sm:$0xff] }
 0x3e1   :  { %2175 = vmatpush2.msra.mxu0 %v2088_v8  ;;  %2262 = vmatpush2.msra.mxu1 %v2023_v60  ;;  %v2305_v8 = vld [vmem:[#allocation21 + $0x410] sm:$0xff]  ;;  %v2300_v60 = vld [vmem:[#allocation21 + $0x3e8] sm:$0xff] }
 0x3e2   :  { %2176 = vmatprep.subr.mxu0 %v2087_v44  ;;  %2263 = vmatprep.subr.mxu1 %v2022_v59  ;;  %v2303_v44 = vld [vmem:[#allocation21 + $0x400] sm:$0xff]  ;;  %v2298_v59 = vld [vmem:[#allocation21 + $0x3d8] sm:$0xff] }
 0x3e3   :  { %2177 = vmatpush2.msra.mxu0 %v2086_v55  ;;  %2264 = vmatpush2.msra.mxu1 %v2021_v62  ;;  %v2301_v55 = vld [vmem:[#allocation21 + $0x3f0] sm:$0xff]  ;;  %v2296_v62 = vld [vmem:[#allocation21 + $0x3c8] sm:$0xff] }
 0x3e4   :  { %2178 = vmatprep.subr.mxu0 %v2085_v57  ;;  %2265 = vmatprep.subr.mxu1 %v2020_v48  ;;  %v2299_v57 = vld [vmem:[#allocation21 + $0x3e0] sm:$0xff]  ;;  %v2294_v48 = vld [vmem:[#allocation21 + $0x3b8] sm:$0xff] }
 0x3e5   :  { %2179 = vmatpush2.msra.mxu0 %v2084_v61  ;;  %2266 = vmatpush2.msra.mxu1 %v2019_v3  ;;  %v2297_v61 = vld [vmem:[#allocation21 + $0x3d0] sm:$0xff]  ;;  %v2292_v3 = vld [vmem:[#allocation21 + $0x3a8] sm:$0xff] }
 0x3e6   :  { %2180 = vmatprep.subr.mxu0 %v2083_v1  ;;  %v2295_v1 = vld [vmem:[#allocation21 + $0x3c0] sm:$0xff] }
 0x3e7   :  { %2181 = vmatpush2.msra.mxu0 %v2082_v2  ;;  %v2293_v2 = vld [vmem:[#allocation21 + $0x3b0] sm:$0xff] }
 0x3e8   :  { %2182 = vmatprep.subr.mxu0 %v2081_v4  ;;  %v2291_v4 = vld [vmem:[#allocation21 + $0x3a0] sm:$0xff] }
 0x3e9   :  { %2183 = vmatpush2.msra.mxu0 %v2080_v5  ;;  %v2290_v5 = vld [vmem:[#allocation21 + $0x398] sm:$0xff] }
 0x3ea   :  { %2365 = vmatprep.subr.mxu0 %v2318_v6  ;;  %v2289_v6 = vld [vmem:[#allocation21 + $0x390] sm:$0xff] }
 0x46e   :  { %v1875_v7 = vpop.f32.mrf.mxu1 }
 0x46f   :  { %v1957_v9 = vrot.slane %v1875_v7, %v4967_v53  ;;  %v2288_v7 = vld [vmem:[#allocation21 + $0x388] sm:$0xff] }
 0x470   :  { %v1877_v10 = vpop.f32.mrf.mxu1 }
 0x471   :  { %v1961_v11 = vrot.slane %v1877_v10, %v4967_v53  ;;  %v1962_v13 = vmul.f32 %v1957_v9, %v5226_v46  ;;  %v1964_v50 = vmul.f32 %v1957_v9, %v5230_v17  ;;  %v2287_v9 = vld [vmem:[#allocation21 + $0x380] sm:$0xff]  ;;  %v2342_v10 = vld [vmem:[#allocation21 + $0x538] sm:$0xff] }
 0x472   :  { %v1949_v12 = vpop.f32.mrf.mxu0 }
 0x473   :  { %v1969_v14 = vrot.slane %v1949_v12, %v4967_v53  ;;  %v1963_v15 = vmul.f32 %v1961_v11, %v5228_v31  ;;  %v1965_v18 = vmul.f32 %v1961_v11, %v5240_v63  ;;  %v2341_v11 = vld [vmem:[#allocation21 + $0x530] sm:$0xff]  ;;  %v2340_v12 = vld [vmem:[#allocation21 + $0x528] sm:$0xff] }
 0x474   :  { %v1951_v16 = vpop.f32.mrf.mxu0 }
 0x475   :  { %v1974_v19 = vadd.f32 %v1969_v14, %v1962_v13  ;;  %v5272_v20 = vadd.f32 %v1969_v14, %v1964_v50  ;;  %v1973_v21 = vrot.slane %v1951_v16, %v4967_v53  ;;  %v2339_v13 = vld [vmem:[#allocation21 + $0x520] sm:$0xff]  ;;  %v2338_v50 = vld [vmem:[#allocation21 + $0x518] sm:$0xff]  ;;  %v2337_v14 = vld [vmem:[#allocation21 + $0x510] sm:$0xff] }
 0x476   :  { %v2335_v16 = vld [vmem:[#allocation21 + $0x500] sm:$0xff] }
 0x477   :  { %1978 = vst [vmem:[#allocation7] sm:$0xfc] %v1974_v19  ;;  %1981 = vst [vmem:[#allocation7 + $0x10] sm:$0xff] %v5272_v20  ;;  %v1975_v22 = vadd.f32 %v1973_v21, %v1963_v15  ;;  %v1977_v46 = vadd.f32 %v1973_v21, %v1965_v18  ;;  %v2109_v27 = vrot.slane %v5272_v20, 2  ;;  %v2336_v15 = vld [vmem:[#allocation21 + $0x508] sm:$0xff]  ;;  %v2334_v18 = vld [vmem:[#allocation21 + $0x4f8] sm:$0xff] }
 0x478   :  { %v2333_v19 = vld [vmem:[#allocation21 + $0x4f0] sm:$0xff]  ;;  %v2332_v21 = vld [vmem:[#allocation21 + $0x4e8] sm:$0xff] }
 0x479   :  { %1980 = vst.msk [vmem:[#allocation7 + $0x8] sm:$0xfc] %vm1979_vm11, %v1975_v22  ;;  %v2331_v22 = vld [vmem:[#allocation21 + $0x4e0] sm:$0xff] }
 0x47a   :  { %1982 = vst.msk [vmem:[#allocation7 + $0x18] sm:$0xff] %vm209_vm2, %v1977_v46  ;;  %v2330_v46 = vld [vmem:[#allocation21 + $0x4d8] sm:$0xff] }
 0x47e   :  { %v2043_v17 = vld [vmem:[#allocation7] sm:$0xfc]  ;;  %v1985_v0 = vld [vmem:[#allocation7 + $0x10] sm:$0x3f] }
 0x47f   :  { %v1983_v63 = vld [vmem:[#allocation7] sm:$0xff]  ;;  %v2108_v52 = vrot.slane %v2043_v17, 2  ;;  %v2329_v17 = vld [vmem:[#allocation21 + $0x4d0] sm:$0xff] }
 0x480   :  { %v1984_v23 = vld [vmem:[#allocation7 + $0x8] sm:$0xff] }
 0x481   :  { %v2044_v31 = vld [vmem:[#allocation7 + $0x8] sm:$0xfc]  ;;  %4150 = vmatprep.mubr.msk.f32.mxu1 %vm209_vm2, %v1984_v23  ;;  %v5278_v24 = vld [vmem:[#allocation7 + $0x18] sm:$0xff]  ;;  %v2110_v32 = vsel %vm1027_vm8, %v2108_v52, %v2109_v27 }
 0x482   :  { %v2111_v25 = vrot.slane %v2044_v31, 2  ;;  %2268 = vmatmul.mubr.f32.vlgmr.msra.gmra.mxu1 %v1983_v63  ;;  %v1986_v54 = vld [vmem:[#allocation7 + $0x18] sm:$0x3f]  ;;  %v2112_v26 = vrot.slane %v5278_v24, 2  ;;  %v2281_v28 = vld [vmem:[#allocation7 + $0x8] sm:$0xf0] }
 0x483   :  { %4151 = vmatprep.mubr.msk.f32.mxu1 %vm209_vm2, %v1986_v54  ;;  %v2352_v36 = vrot.slane %v2281_v28, 4  ;;  %v2353_v58 = vrot.slane %v5278_v24, 4  ;;  %v2328_v23 = vld [vmem:[#allocation21 + $0x4c8] sm:$0xff]  ;;  %v2327_v31 = vld [vmem:[#allocation21 + $0x4c0] sm:$0xff]  ;;  %v2326_v63 = vld [vmem:[#allocation21 + $0x4b8] sm:$0xff] }
 0x484   :  { %v2113_v29 = vsel %vm1027_vm8, %v2111_v25, %v2112_v26  ;;  %v2325_v25 = vld [vmem:[#allocation21 + $0x4b0] sm:$0xff]  ;;  %v2324_v52 = vld [vmem:[#allocation21 + $0x4a8] sm:$0xff]  ;;  %v2323_v54 = vld [vmem:[#allocation21 + $0x4a0] sm:$0xff] }
 0x485   :  { %4148 = vmatprep.mubr.msk.f32.mxu0 %vm209_vm2, %v2113_v29  ;;  %v2354_v40 = vsel %vm281_vm0, %v2352_v36, %v2353_v58  ;;  %v2285_v28 = vld [vmem:[#allocation7 + $0x28] sm:$0x3]  ;;  %v2321_v29 = vld [vmem:[#allocation21 + $0x490] sm:$0xff]  ;;  %v2350_v36 = vrot.slane %v5272_v20, 4  ;;  %v5305_v20 = vld [vmem:[%s6199_s13 + $0xf8] sm:$0xff] }
 0x486   :  { %2185 = vmatmul.mubr.f32.vlgmr.msra.gmra.mxu0 %v2110_v32  ;;  %2274 = vmatmul.mubr.f32.gmra.mxu1 %v1985_v0  ;;  %v2319_v0 = vld [vmem:[#allocation21 + $0x480] sm:$0xff] }
 0x487   :  { %2366 = vmatpush1.msra.mxu0 %v2317_v30  ;;  %4149 = vmatprep.mubr.msk.f32.mxu0 %vm209_vm2, %v2112_v26  ;;  %v2280_v26 = vld [vmem:[#allocation7] sm:$0xf0]  ;;  %v5311_v24 = vld [vmem:[%s6199_s13 + $0x78] sm:$0xff] }
 0x488   :  { %2367 = vmatprep.subr.mxu0 %v2316_v34  ;;  %v2320_v30 = vld [vmem:[#allocation21 + $0x488] sm:$0xff]  ;;  %v2349_v32 = vrot.slane %v2280_v26, 4  ;;  %v2357_v34 = vrot.slane %v2285_v28, 4  ;;  %4157 = vmatprep.subr.mxu1 %v5305_v20 }
 0x489   :  { %2368 = vmatpush1.msra.mxu0 %v2315_v35  ;;  %v2284_v35 = vld [vmem:[#allocation7 + $0x20] sm:$0x3]  ;;  %4158 = vmatpush3.msra.mxu1 %v5311_v24 }
 0x48a   :  { %2369 = vmatprep.subr.mxu0 %v2314_v37  ;;  %2191 = vmatmul.mubr.f32.gmra.mxu0 %v2109_v27  ;;  %v2322_v27 = vld [vmem:[#allocation21 + $0x498] sm:$0xff]  ;;  %v2351_v37 = vsel %vm281_vm0, %v2349_v32, %v2350_v36 }
 0x48b   :  { %2370 = vmatpush1.msra.mxu0 %v2313_v38  ;;  %4152 = vmatprep.mubr.msk.f32.mxu0 %vm209_vm2, %v2354_v40  ;;  %v2355_v38 = vrot.slane %v2284_v35, 4 }
 0x48c   :  { %2371 = vmatprep.subr.mxu0 %v2312_v39  ;;  %v2358_v39 = vsel %vm281_vm0, %v2353_v58, %v2357_v34  ;;  %v5317_v58 = vld [vmem:[%s6199_s13 + $0xf0] sm:$0xff] }
 0x48d   :  { %2372 = vmatpush1.msra.mxu0 %v2311_v41  ;;  %v2356_v40 = vsel %vm281_vm0, %v2350_v36, %v2355_v38  ;;  %v5299_v41 = vld [vmem:[#allocation8 + $0x10] sm:$0xff]  ;;  %4159 = vmatprep.subr.mxu1 %v5317_v58 }
 0x48e   :  { %2373 = vmatprep.subr.mxu0 %v2310_v42  ;;  %v5323_v42 = vld [vmem:[%s6199_s13 + $0x70] sm:$0xff] }
 0x48f   :  { %2374 = vmatpush1.msra.mxu0 %v2309_v43  ;;  %4160 = vmatpush3.msra.mxu1 %v5323_v42  ;;  %v5329_v43 = vld [vmem:[%s6199_s13 + $0xe8] sm:$0xff] }
 0x490   :  { %2375 = vmatprep.subr.mxu0 %v2308_v45  ;;  %4161 = vmatprep.subr.mxu1 %v5329_v43  ;;  %v5335_v45 = vld [vmem:[%s6199_s13 + $0x68] sm:$0xff] }
 0x491   :  { %2376 = vmatpush1.msra.mxu0 %v2307_v47  ;;  %4162 = vmatpush3.msra.mxu1 %v5335_v45  ;;  %v5341_v47 = vld [vmem:[%s6199_s13 + $0xe0] sm:$0xff] }
 0x492   :  { %2377 = vmatprep.subr.mxu0 %v2306_v49  ;;  %4163 = vmatprep.subr.mxu1 %v5341_v47  ;;  %v5347_v49 = vld [vmem:[%s6199_s13 + $0x60] sm:$0xff] }
 0x493   :  { %2378 = vmatpush1.msra.mxu0 %v2305_v8  ;;  %4164 = vmatpush3.msra.mxu1 %v5347_v49  ;;  %v5353_v8 = vld [vmem:[%s6199_s13 + $0xd8] sm:$0xff] }
 0x494   :  { %2379 = vmatprep.subr.mxu0 %v2304_v51  ;;  %4165 = vmatprep.subr.mxu1 %v5353_v8  ;;  %v5359_v51 = vld [vmem:[%s6199_s13 + $0x58] sm:$0xff] }
 0x495   :  { %2380 = vmatpush1.msra.mxu0 %v2303_v44  ;;  %4166 = vmatpush3.msra.mxu1 %v5359_v51  ;;  %v5365_v44 = vld [vmem:[%s6199_s13 + $0xd0] sm:$0xff] }
 0x496   :  { %2381 = vmatprep.subr.mxu0 %v2302_v33  ;;  %v5370_v33 = vld [vmem:[%s6199_s13 + $0x50] sm:$0xff]  ;;  %4167 = vmatprep.subr.mxu1 %v5365_v44 }
 0x497   :  { %2382 = vmatpush1.msra.mxu0 %v2301_v55  ;;  %v5375_v55 = vld [vmem:[%s6199_s13 + $0xc8] sm:$0xff]  ;;  %4168 = vmatpush3.msra.mxu1 %v5370_v33 }
 0x498   :  { %2383 = vmatprep.subr.mxu0 %v2300_v60  ;;  %v5381_v60 = vld [vmem:[%s6199_s13 + $0x48] sm:$0xff]  ;;  %4169 = vmatprep.subr.mxu1 %v5375_v55 }
 0x499   :  { %2384 = vmatpush1.msra.mxu0 %v2299_v57  ;;  %v5387_v57 = vld [vmem:[%s6199_s13 + $0xc0] sm:$0xff]  ;;  %4170 = vmatpush3.msra.mxu1 %v5381_v60 }
 0x49a   :  { %2385 = vmatprep.subr.mxu0 %v2298_v59  ;;  %v5393_v59 = vld [vmem:[%s6199_s13 + $0x40] sm:$0xff]  ;;  %4171 = vmatprep.subr.mxu1 %v5387_v57 }
 0x49b   :  { %2386 = vmatpush1.msra.mxu0 %v2297_v61  ;;  %v5399_v61 = vld [vmem:[%s6199_s13 + $0xb8] sm:$0xff]  ;;  %4172 = vmatpush3.msra.mxu1 %v5393_v59 }
 0x49c   :  { %2387 = vmatprep.subr.mxu0 %v2296_v62  ;;  %v5405_v62 = vld [vmem:[%s6199_s13 + $0x38] sm:$0xff]  ;;  %4173 = vmatprep.subr.mxu1 %v5399_v61 }
 0x49d   :  { %2388 = vmatpush1.msra.mxu0 %v2295_v1  ;;  %v5411_v1 = vld [vmem:[%s6199_s13 + $0xb0] sm:$0xff]  ;;  %4174 = vmatpush3.msra.mxu1 %v5405_v62 }
 0x49e   :  { %2389 = vmatprep.subr.mxu0 %v2294_v48  ;;  %v5417_v48 = vld [vmem:[%s6199_s13 + $0x30] sm:$0xff]  ;;  %4175 = vmatprep.subr.mxu1 %v5411_v1 }
 0x49f   :  { %2390 = vmatpush1.msra.mxu0 %v2293_v2  ;;  %v5423_v2 = vld [vmem:[%s6199_s13 + $0xa8] sm:$0xff]  ;;  %4176 = vmatpush3.msra.mxu1 %v5417_v48 }
 0x4a0   :  { %2391 = vmatprep.subr.mxu0 %v2292_v3  ;;  %v5429_v3 = vld [vmem:[%s6199_s13 + $0x28] sm:$0xff]  ;;  %4177 = vmatprep.subr.mxu1 %v5423_v2 }
 0x4a1   :  { %2392 = vmatpush1.msra.mxu0 %v2291_v4  ;;  %v5435_v4 = vld [vmem:[%s6199_s13 + $0xa0] sm:$0xff]  ;;  %4178 = vmatpush3.msra.mxu1 %v5429_v3 }
 0x4a2   :  { %2393 = vmatprep.subr.mxu0 %v2290_v5  ;;  %v5441_v5 = vld [vmem:[%s6199_s13 + $0x20] sm:$0xff]  ;;  %4179 = vmatprep.subr.mxu1 %v5435_v4 }
 0x4a3   :  { %2394 = vmatpush1.msra.mxu0 %v2289_v6  ;;  %v5447_v6 = vld [vmem:[%s6199_s13 + $0x98] sm:$0xff]  ;;  %4180 = vmatpush3.msra.mxu1 %v5441_v5 }
 0x4a4   :  { %2395 = vmatprep.subr.mxu0 %v2288_v7  ;;  %v5453_v7 = vld [vmem:[%s6199_s13 + $0x18] sm:$0xff]  ;;  %4181 = vmatprep.subr.mxu1 %v5447_v6 }
 0x4a5   :  { %2396 = vmatpush1.msra.mxu0 %v2287_v9  ;;  %v5459_v9 = vld [vmem:[%s6199_s13 + $0x90] sm:$0xff]  ;;  %4182 = vmatpush3.msra.mxu1 %v5453_v7 }
 0x4a6   :  { %2405 = vmatprep.subr.mxu0 %v2342_v10  ;;  %v5465_v10 = vld [vmem:[%s6199_s13 + $0x10] sm:$0xff]  ;;  %4183 = vmatprep.subr.mxu1 %v5459_v9 }
 0x4a7   :  { %2406 = vmatpush2.msra.mxu0 %v2341_v11  ;;  %v5471_v11 = vld [vmem:[%s6199_s13 + $0x88] sm:$0xff]  ;;  %4184 = vmatpush3.msra.mxu1 %v5465_v10 }
 0x4a8   :  { %2407 = vmatprep.subr.mxu0 %v2340_v12  ;;  %v5477_v12 = vld [vmem:[%s6199_s13 + $0x8] sm:$0xff]  ;;  %4185 = vmatprep.subr.mxu1 %v5471_v11 }
 0x4a9   :  { %2408 = vmatpush2.msra.mxu0 %v2339_v13  ;;  %v5483_v13 = vld [vmem:[%s6199_s13 + $0x80] sm:$0xff]  ;;  %4186 = vmatpush3.msra.mxu1 %v5477_v12 }
 0x4aa   :  { %2409 = vmatprep.subr.mxu0 %v2338_v50  ;;  %v5489_v50 = vld [vmem:[%s6199_s13] sm:$0xff]  ;;  %4187 = vmatprep.subr.mxu1 %v5483_v13 }
 0x4ab   :  { %2410 = vmatpush2.msra.mxu0 %v2337_v14  ;;  %4188 = vmatpush3.msra.mxu1 %v5489_v50 }
 0x4ac   :  { %2411 = vmatprep.subr.mxu0 %v2336_v15  ;;  %4192 = vmatprep.subr.mxu1 %v5305_v20 }
 0x4ad   :  { %2412 = vmatpush2.msra.mxu0 %v2335_v16 }
 0x4ae   :  { %2413 = vmatprep.subr.mxu0 %v2334_v18 }
 0x4af   :  { %2414 = vmatpush2.msra.mxu0 %v2333_v19  ;;  %v2446_v19 = vld [vmem:[%s6196_s10] sm:$0x3] }
 0x4b0   :  { %2415 = vmatprep.subr.mxu0 %v2332_v21 }
 0x4b1   :  { %2416 = vmatpush2.msra.mxu0 %v2331_v22 }
 0x4b2   :  { %2417 = vmatprep.subr.mxu0 %v2330_v46 }
 0x4b3   :  { %2418 = vmatpush2.msra.mxu0 %v2329_v17  ;;  %v2451_v17 = vrot.slane %v2446_v19, %v4967_v53 }
 0x4b4   :  { %2419 = vmatprep.subr.mxu0 %v2328_v23 }
 0x4b5   :  { %2420 = vmatpush2.msra.mxu0 %v2327_v31 }
 0x4b6   :  { %2421 = vmatprep.subr.mxu0 %v2326_v63 }
 0x4b7   :  { %2422 = vmatpush2.msra.mxu0 %v2325_v25 }
 0x4b8   :  { %2423 = vmatprep.subr.mxu0 %v2324_v52  ;;  %v2455_v52 = vrot.slane %v2446_v19, %v4971_v56 }
 0x4b9   :  { %2424 = vmatpush2.msra.mxu0 %v2323_v54 }
 0x4ba   :  { %2425 = vmatprep.subr.mxu0 %v2322_v27 }
 0x4bb   :  { %2426 = vmatpush2.msra.mxu0 %v2321_v29 }
 0x4bc   :  { %2427 = vmatprep.subr.mxu0 %v2320_v30 }
 0x4bd   :  { %2428 = vmatpush2.msra.mxu0 %v2319_v0 }
 0x4be   :  { %2430 = vmatmul.mubr.f32.vlgmr.msra.gmra.mxu0 %v2351_v37 }
 0x4bf   :  { %4153 = vmatprep.mubr.msk.f32.mxu0 %vm209_vm2, %v2358_v39 }
 0x4c2   :  { %2436 = vmatmul.mubr.f32.gmra.mxu0 %v2356_v40 }
 0x4c3   :  { %2835 = vmatprep.mubr.f32.mxu0 %v5299_v41 }
 0x542   :  { %v2269_v16 = vpop.f32.mrf.mxu1 }
 0x544   :  { %v2271_v21 = vpop.f32.mrf.mxu1 }
 0x546   :  { %v2186_v14 = vpop.f32.mrf.mxu0  ;;  %v2275_v31 = vpop.f32.mrf.mxu1 }
 0x547   :  { %v2270_v46 = vadd.f32 %v2269_v16, %v2186_v14 }
 0x548   :  { %v2188_v15 = vpop.f32.mrf.mxu0  ;;  %v2277_v30 = vpop.f32.mrf.mxu1 }
 0x549   :  { %v2272_v63 = vadd.f32 %v2271_v21, %v2188_v15 }
 0x54a   :  { %v2192_v18 = vpop.f32.mrf.mxu0 }
 0x54b   :  { %v2276_v26 = vadd.f32 %v2275_v31, %v2192_v18 }
 0x54c   :  { %v2194_v22 = vpop.f32.mrf.mxu0 }
 0x54d   :  { %v2278_v35 = vadd.f32 %v2277_v30, %v2194_v22 }
 0x57e   :  { %v2431_v23 = vpop.f32.mrf.mxu0 }
 0x57f   :  { %v2442_v25 = vadd.f32 %v2431_v23, %v2270_v46 }
 0x580   :  { %v2433_v54 = vpop.f32.mrf.mxu0 }
 0x581   :  { %v2458_v27 = vadd.f32 %v2451_v17, %v2442_v25  ;;  %v2443_v28 = vadd.f32 %v2433_v54, %v2272_v63 }
 0x582   :  { %v2437_v29 = vpop.f32.mrf.mxu0 }
 0x583   :  { %vm2462_vm2 = vcmp.gt.f32.partialorder %v2458_v27, 0.0  ;;  %v2466_v32 = vmul.f32 0.2, %v2458_v27  ;;  %v2459_v0 = vadd.f32 %v2455_v52, %v2443_v28  ;;  %v2444_v34 = vadd.f32 %v2437_v29, %v2276_v26 }
 0x584   :  { %v2439_v36 = vpop.f32.mrf.mxu0 }
 0x585   :  { %v2470_v37 = vsel %vm2462_vm2, %v2458_v27, %v2466_v32  ;;  %vm2463_vm15 = vcmp.gt.f32.partialorder %v2459_v0, 0.0  ;;  %v2467_v38 = vmul.f32 0.2, %v2459_v0  ;;  %v2460_v39 = vadd.f32 %v2451_v17, %v2444_v34 }
 0x586   :  { %2474 = vst [vmem:[#allocation4 + $0x10] sm:$0xff] %v2470_v37  ;;  %v2445_v40 = vadd.f32 %v2439_v36, %v2278_v35 }
 0x587   :  { %v2471_v20 = vsel %vm2463_vm15, %v2459_v0, %v2467_v38  ;;  %vm2464_vm10 = vcmp.gt.f32.partialorder %v2460_v39, 0.0  ;;  %v2468_v14 = vmul.f32 0.2, %v2460_v39 }
 0x588   :  { %2475 = vst [vmem:[#allocation4] sm:$0xff] %v2471_v20  ;;  %v2461_v15 = vadd.f32 %v2455_v52, %v2445_v40 }
 0x589   :  { %v2472_v16 = vsel %vm2464_vm10, %v2460_v39, %v2468_v14 }
 0x58a   :  { %2476 = vst [vmem:[#allocation4 + $0x18] sm:$0x3f] %v2472_v16  ;;  %vm2465_vm12 = vcmp.gt.f32.partialorder %v2461_v15, 0.0  ;;  %v2469_v18 = vmul.f32 0.2, %v2461_v15 }
 0x58c   :  { %v2473_v19 = vsel %vm2465_vm12, %v2461_v15, %v2469_v18 }
 0x58d   :  { %v2478_v21 = vld [vmem:[#allocation4 + $0x10] sm:$0x3]  ;;  %v2488_v46 = vld [vmem:[#allocation4 + $0x10] sm:$0x30]  ;;  %2477 = vst [vmem:[#allocation4 + $0x8] sm:$0x3f] %v2473_v19 }
 0x58e   :  { %v2482_v22 = vrot.slane %v2478_v21, 6  ;;  %2490 = vst [vmem:[#allocation8 + $0x10] sm:$0x30] %v2488_v46 }
 0x58f   :  { %v2479_v23 = vld [vmem:[#allocation4] sm:$0x3]  ;;  %v2489_v31 = vld [vmem:[#allocation4] sm:$0x30] }
 0x590   :  { %2486 = vst [vmem:[#allocation8 + $0x10] sm:$0xc] %v2482_v22  ;;  %v2483_v17 = vrot.slane %v2479_v23, 6  ;;  %2491 = vst [vmem:[#allocation8] sm:$0x30] %v2489_v31 }
 0x591   :  { %v2492_v63 = vld [vmem:[#allocation4 + $0x18] sm:$0x3]  ;;  %v2502_v25 = vld [vmem:[#allocation4 + $0x18] sm:$0x30] }
 0x592   :  { %2487 = vst [vmem:[#allocation8] sm:$0xc] %v2483_v17  ;;  %v2496_v54 = vrot.slane %v2492_v63, 2  ;;  %v2506_v52 = vrot.slane %v2502_v25, 4 }
 0x594   :  { %2500 = vst [vmem:[#allocation8 + $0x10] sm:$0xc0] %v2496_v54  ;;  %2510 = vst [vmem:[#allocation8 + $0x8] sm:$0x3] %v2506_v52  ;;  %v2493_v26 = vld [vmem:[#allocation4 + $0x8] sm:$0x3] }
 0x595   :  { %v2503_v27 = vld [vmem:[#allocation4 + $0x8] sm:$0x30]  ;;  %v2497_v28 = vrot.slane %v2493_v26, 2 }
 0x596   :  { %v2507_v29 = vrot.slane %v2503_v27, 4 }
 0x597   :  { %2501 = vst [vmem:[#allocation8] sm:$0xc0] %v2497_v28 }
 0x598   :  { %2511 = vst [vmem:[#allocation8 + $0x18] sm:$0x3] %v2507_v29 }
 0x59b   :  { %v5500_v30 = vld [vmem:[#allocation8 + $0x10] sm:$0xfc]  ;;  %v5502_v32 = vld [vmem:[#allocation8 + $0x8] sm:$0x3] }
 0x59c   :  { %v2520_v0 = vrot.slane %v5500_v30, 2  ;;  %v2521_v34 = vrot.slane %v5502_v32, 2 }
 0x59e   :  { %v5506_v35 = vld [vmem:[#allocation8] sm:$0xfc]  ;;  %v2522_v37 = vsel %vm1027_vm8, %v2520_v0, %v2521_v34 }
 0x59f   :  { %v5508_v36 = vld [vmem:[#allocation8 + $0x18] sm:$0x3]  ;;  %v2523_v38 = vrot.slane %v5506_v35, 2  ;;  %v2528_v40 = vrot.slane %v2522_v37, 4  ;;  %v2541_v20 = vmul.f32 %v5506_v35, %v5506_v35 }
 0x5a0   :  { %v2524_v39 = vrot.slane %v5508_v36, 2  ;;  %v2543_v14 = vmul.f32 %v5508_v36, %v5508_v36 }
 0x5a1   :  { %v2529_v16 = vadd.f32 %v2528_v40, %v2522_v37  ;;  %v2551_v18 = vrot.slane %v2541_v20, 2  ;;  %v2540_v37 = vmul.f32 %v5500_v30, %v5500_v30 }
 0x5a2   :  { %v2525_v15 = vsel %vm1027_vm8, %v2523_v38, %v2524_v39  ;;  %v2552_v21 = vrot.slane %v2543_v14, 2  ;;  %v2542_v38 = vmul.f32 %v5502_v32, %v5502_v32 }
 0x5a3   :  { %v2534_v19 = vrot.slane %v2525_v15, 4  ;;  %v2530_v46 = vrot.slane %v2529_v16, 2  ;;  %v2548_v40 = vrot.slane %v2540_v37, 2  ;;  %v3017_v37 = vld [vmem:[#allocation24 + $0x210] sm:$0xff] }
 0x5a4   :  { %v2553_v23 = vsel %vm1027_vm8, %v2551_v18, %v2552_v21  ;;  %v2549_v20 = vrot.slane %v2542_v38, 2  ;;  %v3035_v18 = vld [vmem:[#allocation24 + $0x2a0] sm:$0xff]  ;;  %v3033_v21 = vld [vmem:[#allocation24 + $0x290] sm:$0xff]  ;;  %v3016_v38 = vld [vmem:[#allocation24 + $0x208] sm:$0xff] }
 0x5a5   :  { %v2535_v22 = vadd.f32 %v2534_v19, %v2525_v15  ;;  %v2531_v31 = vadd.f32 %v2530_v46, %v2529_v16  ;;  %v2562_v17 = vrot.slane %v2553_v23, 4  ;;  %v3037_v15 = vld [vmem:[#allocation24 + $0x2b0] sm:$0xff]  ;;  %v3036_v16 = vld [vmem:[#allocation24 + $0x2a8] sm:$0xff]  ;;  %v3034_v19 = vld [vmem:[#allocation24 + $0x298] sm:$0xff] }
 0x5a6   :  { %v2550_v14 = vsel %vm1027_vm8, %v2548_v40, %v2549_v20  ;;  %v3032_v46 = vld [vmem:[#allocation24 + $0x288] sm:$0xff] }
 0x5a7   :  { %v2536_v63 = vrot.slane %v2535_v22, 2  ;;  %v2563_v25 = vadd.f32 %v2562_v17, %v2553_v23  ;;  %v2532_v52 = vrot.slane %v2531_v31, 1  ;;  %v3030_v23 = vld [vmem:[#allocation24 + $0x278] sm:$0xff]  ;;  %v3028_v17 = vld [vmem:[#allocation24 + $0x268] sm:$0xff] }
 0x5a9   :  { %v2537_v54 = vadd.f32 %v2536_v63, %v2535_v22  ;;  %v2564_v26 = vrot.slane %v2563_v25, 2  ;;  %v2533_v0 = vadd.f32 %v2532_v52, %v2531_v31  ;;  %v3031_v22 = vld [vmem:[#allocation24 + $0x280] sm:$0xff]  ;;  %v3029_v31 = vld [vmem:[#allocation24 + $0x270] sm:$0xff]  ;;  %v3024_v52 = vld [vmem:[#allocation24 + $0x248] sm:$0xff] }
 0x5aa   :  { %v3027_v63 = vld [vmem:[#allocation24 + $0x260] sm:$0xff] }
 0x5ab   :  { %v2538_v27 = vrot.slane %v2537_v54, 1  ;;  %v2565_v28 = vadd.f32 %v2564_v26, %v2563_v25  ;;  %v3026_v25 = vld [vmem:[#allocation24 + $0x258] sm:$0xff]  ;;  %v3023_v26 = vld [vmem:[#allocation24 + $0x240] sm:$0xff] }
 0x5ad   :  { %v2539_v29 = vadd.f32 %v2538_v27, %v2537_v54  ;;  %v2566_v34 = vrot.slane %v2565_v28, 1  ;;  %v3025_v54 = vld [vmem:[#allocation24 + $0x250] sm:$0xff]  ;;  %v3022_v27 = vld [vmem:[#allocation24 + $0x238] sm:$0xff] }
 0x5af   :  { %2664 = vmatprep.mubr.f32.mxu1 %v2539_v29  ;;  %v2567_v39 = vadd.f32 %v2566_v34, %v2565_v28  ;;  %v3021_v28 = vld [vmem:[#allocation24 + $0x230] sm:$0xff]  ;;  %v3020_v29 = vld [vmem:[#allocation24 + $0x228] sm:$0xff]  ;;  %v3018_v34 = vld [vmem:[#allocation24 + $0x218] sm:$0xff] }
 0x5b0   :  { %2665 = vmatmul.mubr.f32.vlgmr.msra.gmra.mxu1 %v2533_v0  ;;  %v3019_v0 = vld [vmem:[#allocation24 + $0x220] sm:$0xff] }
 0x5b1   :  { %4193 = vmatpush3.msra.mxu1 %v5311_v24  ;;  %2735 = vmatprep.mubr.f32.mxu1 %v2567_v39  ;;  %v2556_v24 = vrot.slane %v2550_v14, 4 }
 0x5b2   :  { %4194 = vmatprep.subr.mxu1 %v5317_v58 }
 0x5b3   :  { %4195 = vmatpush3.msra.mxu1 %v5323_v42  ;;  %v2557_v58 = vadd.f32 %v2556_v24, %v2550_v14 }
 0x5b4   :  { %4196 = vmatprep.subr.mxu1 %v5329_v43 }
 0x5b5   :  { %4197 = vmatpush3.msra.mxu1 %v5335_v45  ;;  %v2558_v42 = vrot.slane %v2557_v58, 2 }
 0x5b6   :  { %4198 = vmatprep.subr.mxu1 %v5341_v47 }
 0x5b7   :  { %4199 = vmatpush3.msra.mxu1 %v5347_v49  ;;  %v2559_v43 = vadd.f32 %v2558_v42, %v2557_v58  ;;  %v2766_v49 = vld [vmem:[#allocation22 + $0x78] sm:$0xff] }
 0x5b8   :  { %4200 = vmatprep.subr.mxu1 %v5353_v8  ;;  %2787 = vmatprep.subr.mxu0 %v2766_v49  ;;  %v5555_v8 = vld [vmem:[#allocation22 + $0x70] sm:$0xff] }
 0x5b9   :  { %4201 = vmatpush3.msra.mxu1 %v5359_v51  ;;  %v2560_v45 = vrot.slane %v2559_v43, 1  ;;  %2788 = vmatpush1.msra.mxu0 %v5555_v8  ;;  %v5558_v51 = vld [vmem:[#allocation22 + $0x68] sm:$0xff] }
 0x5ba   :  { %4202 = vmatprep.subr.mxu1 %v5365_v44  ;;  %v5560_v44 = vld [vmem:[#allocation22 + $0x60] sm:$0xff]  ;;  %2789 = vmatprep.subr.mxu0 %v5558_v51 }
 0x5bb   :  { %4203 = vmatpush3.msra.mxu1 %v5370_v33  ;;  %v2561_v47 = vadd.f32 %v2560_v45, %v2559_v43  ;;  %v5562_v33 = vld [vmem:[#allocation22 + $0x58] sm:$0xff]  ;;  %2790 = vmatpush1.msra.mxu0 %v5560_v44 }
 0x5bc   :  { %4204 = vmatprep.subr.mxu1 %v5375_v55  ;;  %v5565_v55 = vld [vmem:[#allocation22 + $0x50] sm:$0xff]  ;;  %2791 = vmatprep.subr.mxu0 %v5562_v33 }
 0x5bd   :  { %4205 = vmatpush3.msra.mxu1 %v5381_v60  ;;  %v5568_v60 = vld [vmem:[#allocation22 + $0x48] sm:$0xff]  ;;  %2792 = vmatpush1.msra.mxu0 %v5565_v55 }
 0x5be   :  { %4206 = vmatprep.subr.mxu1 %v5387_v57  ;;  %v5571_v57 = vld [vmem:[#allocation22 + $0x40] sm:$0xff]  ;;  %2793 = vmatprep.subr.mxu0 %v5568_v60 }
 0x5bf   :  { %4207 = vmatpush3.msra.mxu1 %v5393_v59  ;;  %v5574_v59 = vld [vmem:[#allocation22 + $0x38] sm:$0xff]  ;;  %2794 = vmatpush1.msra.mxu0 %v5571_v57 }
 0x5c0   :  { %4208 = vmatprep.subr.mxu1 %v5399_v61  ;;  %v5577_v61 = vld [vmem:[#allocation22 + $0x30] sm:$0xff]  ;;  %2795 = vmatprep.subr.mxu0 %v5574_v59 }
 0x5c1   :  { %4209 = vmatpush3.msra.mxu1 %v5405_v62  ;;  %v5580_v62 = vld [vmem:[#allocation22 + $0x28] sm:$0xff]  ;;  %2796 = vmatpush1.msra.mxu0 %v5577_v61 }
 0x5c2   :  { %4210 = vmatprep.subr.mxu1 %v5411_v1  ;;  %v5583_v1 = vld [vmem:[#allocation22 + $0x20] sm:$0xff]  ;;  %2797 = vmatprep.subr.mxu0 %v5580_v62 }
 0x5c3   :  { %4211 = vmatpush3.msra.mxu1 %v5417_v48  ;;  %v5586_v48 = vld [vmem:[#allocation22 + $0x18] sm:$0xff]  ;;  %2798 = vmatpush1.msra.mxu0 %v5583_v1 }
 0x5c4   :  { %4212 = vmatprep.subr.mxu1 %v5423_v2  ;;  %v5589_v2 = vld [vmem:[#allocation22 + $0x10] sm:$0xff]  ;;  %2799 = vmatprep.subr.mxu0 %v5586_v48 }
 0x5c5   :  { %4213 = vmatpush3.msra.mxu1 %v5429_v3  ;;  %v5592_v3 = vld [vmem:[#allocation22 + $0x8] sm:$0xff]  ;;  %2800 = vmatpush1.msra.mxu0 %v5589_v2 }
 0x5c6   :  { %4214 = vmatprep.subr.mxu1 %v5435_v4  ;;  %v5595_v4 = vld [vmem:[#allocation22] sm:$0xff]  ;;  %2801 = vmatprep.subr.mxu0 %v5592_v3 }
 0x5c7   :  { %4215 = vmatpush3.msra.mxu1 %v5441_v5  ;;  %2802 = vmatpush1.msra.mxu0 %v5595_v4  ;;  %v3046_v5 = vld [vmem:[#allocation24 + $0x2f8] sm:$0xff] }
 0x5c8   :  { %4216 = vmatprep.subr.mxu1 %v5447_v6  ;;  %2861 = vmatprep.subr.mxu0 %v2766_v49  ;;  %v3045_v6 = vld [vmem:[#allocation24 + $0x2f0] sm:$0xff] }
 0x5c9   :  { %4217 = vmatpush3.msra.mxu1 %v5453_v7  ;;  %v3044_v7 = vld [vmem:[#allocation24 + $0x2e8] sm:$0xff] }
 0x5ca   :  { %4218 = vmatprep.subr.mxu1 %v5459_v9  ;;  %v3043_v9 = vld [vmem:[#allocation24 + $0x2e0] sm:$0xff] }
 0x5cb   :  { %4219 = vmatpush3.msra.mxu1 %v5465_v10  ;;  %v3042_v10 = vld [vmem:[#allocation24 + $0x2d8] sm:$0xff] }
 0x5cc   :  { %4220 = vmatprep.subr.mxu1 %v5471_v11  ;;  %v3041_v11 = vld [vmem:[#allocation24 + $0x2d0] sm:$0xff] }
 0x5cd   :  { %4221 = vmatpush3.msra.mxu1 %v5477_v12  ;;  %v3040_v12 = vld [vmem:[#allocation24 + $0x2c8] sm:$0xff] }
 0x5ce   :  { %4222 = vmatprep.subr.mxu1 %v5483_v13  ;;  %v3039_v13 = vld [vmem:[#allocation24 + $0x2c0] sm:$0xff] }
 0x5cf   :  { %4223 = vmatpush3.msra.mxu1 %v5489_v50  ;;  %v3038_v50 = vld [vmem:[#allocation24 + $0x2b8] sm:$0xff] }
 0x5d0   :  { %2736 = vmatmul.mubr.f32.vlgmr.msra.gmra.mxu1 %v2561_v47  ;;  %3091 = vmatprep.subr.mxu1 %v3046_v5  ;;  %v2744_v5 = vld [vmem:[%s6197_s11] sm:$0x1] }
 0x5d1   :  { %3092 = vmatpush1.msra.mxu1 %v3045_v6 }
 0x5d2   :  { %3093 = vmatprep.subr.mxu1 %v3044_v7 }
 0x5d3   :  { %3094 = vmatpush1.msra.mxu1 %v3043_v9  ;;  %v2965_v9 = vld [vmem:[#allocation24 + $0x98] sm:$0xff] }
 0x5d4   :  { %3095 = vmatprep.subr.mxu1 %v3042_v10  ;;  %v2964_v10 = vld [vmem:[#allocation24 + $0x90] sm:$0xff] }
 0x5d5   :  { %3096 = vmatpush1.msra.mxu1 %v3041_v11  ;;  %v2963_v11 = vld [vmem:[#allocation24 + $0x88] sm:$0xff] }
 0x5d6   :  { %3097 = vmatprep.subr.mxu1 %v3040_v12  ;;  %v2962_v12 = vld [vmem:[#allocation24 + $0x80] sm:$0xff] }
 0x5d7   :  { %3098 = vmatpush1.msra.mxu1 %v3039_v13  ;;  %v2961_v13 = vld [vmem:[#allocation24 + $0x78] sm:$0xff] }
 0x5d8   :  { %3099 = vmatprep.subr.mxu1 %v3038_v50  ;;  %v2960_v50 = vld [vmem:[#allocation24 + $0x70] sm:$0xff] }
 0x5d9   :  { %3100 = vmatpush1.msra.mxu1 %v3037_v15  ;;  %v2959_v15 = vld [vmem:[#allocation24 + $0x68] sm:$0xff] }
 0x5da   :  { %3101 = vmatprep.subr.mxu1 %v3036_v16  ;;  %v2958_v16 = vld [vmem:[#allocation24 + $0x60] sm:$0xff] }
 0x5db   :  { %3102 = vmatpush1.msra.mxu1 %v3035_v18  ;;  %v2957_v18 = vld [vmem:[#allocation24 + $0x58] sm:$0xff] }
 0x5dc   :  { %3103 = vmatprep.subr.mxu1 %v3034_v19  ;;  %v2956_v19 = vld [vmem:[#allocation24 + $0x50] sm:$0xff] }
 0x5dd   :  { %3104 = vmatpush1.msra.mxu1 %v3033_v21  ;;  %v2955_v21 = vld [vmem:[#allocation24 + $0x48] sm:$0xff] }
 0x5de   :  { %3105 = vmatprep.subr.mxu1 %v3032_v46  ;;  %v2954_v46 = vld [vmem:[#allocation24 + $0x40] sm:$0xff] }
 0x5df   :  { %3106 = vmatpush1.msra.mxu1 %v3031_v22  ;;  %v2953_v22 = vld [vmem:[#allocation24 + $0x38] sm:$0xff] }
 0x5e0   :  { %3107 = vmatprep.subr.mxu1 %v3030_v23  ;;  %v2952_v23 = vld [vmem:[#allocation24 + $0x30] sm:$0xff] }
 0x5e1   :  { %3108 = vmatpush1.msra.mxu1 %v3029_v31  ;;  %v2951_v31 = vld [vmem:[#allocation24 + $0x28] sm:$0xff] }
 0x5e2   :  { %3109 = vmatprep.subr.mxu1 %v3028_v17  ;;  %v2950_v17 = vld [vmem:[#allocation24 + $0x20] sm:$0xff] }
 0x5e3   :  { %3110 = vmatpush1.msra.mxu1 %v3027_v63  ;;  %v2949_v63 = vld [vmem:[#allocation24 + $0x18] sm:$0xff] }
 0x5e4   :  { %3111 = vmatprep.subr.mxu1 %v3026_v25  ;;  %v2948_v25 = vld [vmem:[#allocation24 + $0x10] sm:$0xff] }
 0x5e5   :  { %3112 = vmatpush1.msra.mxu1 %v3025_v54  ;;  %v2947_v54 = vld [vmem:[#allocation24 + $0x8] sm:$0xff] }
 0x5e6   :  { %3113 = vmatprep.subr.mxu1 %v3024_v52  ;;  %v2946_v52 = vld [vmem:[#allocation24] sm:$0xff] }
 0x5e7   :  { %3114 = vmatpush1.msra.mxu1 %v3023_v26  ;;  %v3009_v26 = vld [vmem:[#allocation24 + $0x1f8] sm:$0xff] }
 0x5e8   :  { %3115 = vmatprep.subr.mxu1 %v3022_v27  ;;  %v3015_v27 = vld [vmem:[#allocation24 + $0x200] sm:$0xff] }
 0x5e9   :  { %3116 = vmatpush1.msra.mxu1 %v3021_v28  ;;  %v3008_v28 = vld [vmem:[#allocation24 + $0x1f0] sm:$0xff] }
 0x5ea   :  { %3117 = vmatprep.subr.mxu1 %v3020_v29  ;;  %v3078_v29 = vld [vmem:[#allocation24 + $0x3f8] sm:$0xff] }
 0x5eb   :  { %3118 = vmatpush1.msra.mxu1 %v3019_v0  ;;  %v3007_v0 = vld [vmem:[#allocation24 + $0x1e8] sm:$0xff] }
 0x5ec   :  { %3119 = vmatprep.subr.mxu1 %v3018_v34  ;;  %v3077_v34 = vld [vmem:[#allocation24 + $0x3f0] sm:$0xff] }
 0x5ed   :  { %3120 = vmatpush1.msra.mxu1 %v3017_v37  ;;  %v3006_v37 = vld [vmem:[#allocation24 + $0x1e0] sm:$0xff] }
 0x5ee   :  { %3121 = vmatprep.subr.mxu1 %v3016_v38  ;;  %v3076_v38 = vld [vmem:[#allocation24 + $0x3e8] sm:$0xff] }
 0x5ef   :  { %3122 = vmatpush1.msra.mxu1 %v3015_v27  ;;  %v2980_v27 = vld [vmem:[#allocation24 + $0x110] sm:$0xff] }
 0x5f0   :  { %3123 = vmatprep.subr.mxu1 %v3078_v29  ;;  %v2979_v29 = vld [vmem:[#allocation24 + $0x108] sm:$0xff] }
 0x5f1   :  { %3124 = vmatpush2.msra.mxu1 %v3077_v34  ;;  %v2978_v34 = vld [vmem:[#allocation24 + $0x100] sm:$0xff] }
 0x5f2   :  { %3125 = vmatprep.subr.mxu1 %v3076_v38  ;;  %v3047_v38 = vld [vmem:[#allocation24 + $0x300] sm:$0xff] }
 0x670   :  { %v4189_v39 = vpop.f32.mrf.mxu1 }
 0x672   :  { %v4190_v40 = vpop.f32.mrf.mxu1 }
 0x673   :  { %v4191_v20 = vadd.f32 %v4190_v40, %v4189_v39  ;;  %v3005_v39 = vld [vmem:[#allocation24 + $0x1d8] sm:$0xff]  ;;  %v3075_v40 = vld [vmem:[#allocation24 + $0x3e0] sm:$0xff] }
 0x674   :  { %3126 = vmatpush2.msra.mxu1 %v3075_v40 }
 0x675   :  { %v2670_v24 = vmul.f32 0.03125, %v4191_v20  ;;  %v3004_v20 = vld [vmem:[#allocation24 + $0x1d0] sm:$0xff] }
 0x677   :  { %v2742_v43 = vmul.f32 %v2670_v24, %v2670_v24 }
 0x690   :  { %v4224_v14 = vpop.f32.mrf.mxu1 }
 0x692   :  { %v4225_v58 = vpop.f32.mrf.mxu1 }
 0x693   :  { %v4226_v42 = vadd.f32 %v4225_v58, %v4224_v14  ;;  %v3074_v14 = vld [vmem:[#allocation24 + $0x3d8] sm:$0xff]  ;;  %v3073_v58 = vld [vmem:[#allocation24 + $0x3d0] sm:$0xff] }
 0x694   :  { %3127 = vmatprep.subr.mxu1 %v3074_v14 }
 0x695   :  { %v2741_v45 = vmul.f32 0.03125, %v4226_v42  ;;  %v3002_v42 = vld [vmem:[#allocation24 + $0x1c0] sm:$0xff]  ;;  %3128 = vmatpush2.msra.mxu1 %v3073_v58 }
 0x697   :  { %v2743_v47 = vsub.f32 %v2741_v45, %v2742_v43  ;;  %v3072_v43 = vld [vmem:[#allocation24 + $0x3c8] sm:$0xff]  ;;  %v3001_v45 = vld [vmem:[#allocation24 + $0x1b8] sm:$0xff] }
 0x698   :  { %3129 = vmatprep.subr.mxu1 %v3072_v43 }
 0x699   :  { %v2745_v49 = vadd.f32 0.8, %v2743_v47  ;;  %v3071_v47 = vld [vmem:[#allocation24 + $0x3c0] sm:$0xff] }
 0x69a   :  { %3130 = vmatpush2.msra.mxu1 %v3071_v47 }
 0x69b   :  { %4386 = vrsqrt.f32 %v2745_v49  ;;  %v3000_v49 = vld [vmem:[#allocation24 + $0x1b0] sm:$0xff] }
 0x6a8   :  { %v4387_v6 = vpop.eup %4386 }
 0x6a9   :  { %v2747_v7 = vmul.f32 %v4387_v6, %v2744_v5  ;;  %v3070_v5 = vld [vmem:[#allocation24 + $0x3b8] sm:$0xff]  ;;  %v2999_v6 = vld [vmem:[#allocation24 + $0x1a8] sm:$0xff] }
 0x6aa   :  { %3131 = vmatprep.subr.mxu1 %v3070_v5 }
 0x6ab   :  { %4154 = vmatmul.mubr.msk.f32.vlgmr.msra.gmra.mxu0 %vm2767_vm13, %v2747_v7 }
 0x6ac   :  { %2862 = vmatpush1.msra.mxu0 %v5555_v8  ;;  %2909 = vmatprep.mubr.f32.mxu0 %v5299_v41  ;;  %v2749_v8 = vmul.f32 %v2747_v7, %v2670_v24  ;;  %v3003_v24 = vld [vmem:[#allocation24 + $0x1c8] sm:$0xff]  ;;  %v3069_v7 = vld [vmem:[#allocation24 + $0x3b0] sm:$0xff] }
 0x6ad   :  { %2863 = vmatprep.subr.mxu0 %v5558_v51  ;;  %v2748_v51 = vld [vmem:[%s6198_s12] sm:$0x1]  ;;  %3132 = vmatpush2.msra.mxu1 %v3069_v7 }
 0x6ae   :  { %2864 = vmatpush1.msra.mxu0 %v5560_v44  ;;  %v2977_v44 = vld [vmem:[#allocation24 + $0xf8] sm:$0xff] }
 0x6af   :  { %2865 = vmatprep.subr.mxu0 %v5562_v33  ;;  %v2750_v33 = vsub.f32 %v2748_v51, %v2749_v8  ;;  %v2998_v8 = vld [vmem:[#allocation24 + $0x1a0] sm:$0xff]  ;;  %v3068_v51 = vld [vmem:[#allocation24 + $0x3a8] sm:$0xff] }
 0x6b0   :  { %2866 = vmatpush1.msra.mxu0 %v5565_v55  ;;  %v2976_v55 = vld [vmem:[#allocation24 + $0xf0] sm:$0xff]  ;;  %3133 = vmatprep.subr.mxu1 %v3068_v51 }
 0x6b1   :  { %2867 = vmatprep.subr.mxu0 %v5568_v60  ;;  %v2975_v60 = vld [vmem:[#allocation24 + $0xe8] sm:$0xff] }
 0x6b2   :  { %2868 = vmatpush1.msra.mxu0 %v5571_v57  ;;  %v2974_v57 = vld [vmem:[#allocation24 + $0xe0] sm:$0xff] }
 0x6b3   :  { %2869 = vmatprep.subr.mxu0 %v5574_v59  ;;  %v2973_v59 = vld [vmem:[#allocation24 + $0xd8] sm:$0xff] }
 0x6b4   :  { %2870 = vmatpush1.msra.mxu0 %v5577_v61  ;;  %v2972_v61 = vld [vmem:[#allocation24 + $0xd0] sm:$0xff] }
 0x6b5   :  { %2871 = vmatprep.subr.mxu0 %v5580_v62  ;;  %v2971_v62 = vld [vmem:[#allocation24 + $0xc8] sm:$0xff] }
 0x6b6   :  { %2872 = vmatpush1.msra.mxu0 %v5583_v1  ;;  %v2970_v1 = vld [vmem:[#allocation24 + $0xc0] sm:$0xff] }
 0x6b7   :  { %2873 = vmatprep.subr.mxu0 %v5586_v48  ;;  %v2969_v48 = vld [vmem:[#allocation24 + $0xb8] sm:$0xff] }
 0x6b8   :  { %2874 = vmatpush1.msra.mxu0 %v5589_v2  ;;  %v2968_v2 = vld [vmem:[#allocation24 + $0xb0] sm:$0xff] }
 0x6b9   :  { %2875 = vmatprep.subr.mxu0 %v5592_v3  ;;  %v2967_v3 = vld [vmem:[#allocation24 + $0xa8] sm:$0xff] }
 0x6ba   :  { %2876 = vmatpush1.msra.mxu0 %v5595_v4  ;;  %v2966_v4 = vld [vmem:[#allocation24 + $0xa0] sm:$0xff] }
 0x6bb   :  { %4155 = vmatmul.mubr.msk.f32.vlgmr.msra.gmra.mxu0 %vm2767_vm13, %v2750_v33  ;;  %3162 = vmatprep.subr.mxu0 %v2977_v44  ;;  %v2997_v44 = vld [vmem:[#allocation24 + $0x198] sm:$0xff]  ;;  %v3067_v33 = vld [vmem:[#allocation24 + $0x3a0] sm:$0xff] }
 0x6bc   :  { %3163 = vmatpush1.msra.mxu0 %v2976_v55  ;;  %v2996_v55 = vld [vmem:[#allocation24 + $0x190] sm:$0xff]  ;;  %3134 = vmatpush2.msra.mxu1 %v3067_v33 }
 0x6bd   :  { %3164 = vmatprep.subr.mxu0 %v2975_v60  ;;  %v3066_v60 = vld [vmem:[#allocation24 + $0x398] sm:$0xff] }
 0x6be   :  { %3165 = vmatpush1.msra.mxu0 %v2974_v57  ;;  %v2995_v57 = vld [vmem:[#allocation24 + $0x188] sm:$0xff]  ;;  %3135 = vmatprep.subr.mxu1 %v3066_v60 }
 0x6bf   :  { %3166 = vmatprep.subr.mxu0 %v2973_v59  ;;  %v3065_v59 = vld [vmem:[#allocation24 + $0x390] sm:$0xff] }
 0x6c0   :  { %3167 = vmatpush1.msra.mxu0 %v2972_v61  ;;  %v2994_v61 = vld [vmem:[#allocation24 + $0x180] sm:$0xff]  ;;  %3136 = vmatpush2.msra.mxu1 %v3065_v59 }
 0x6c1   :  { %3168 = vmatprep.subr.mxu0 %v2971_v62  ;;  %v3064_v62 = vld [vmem:[#allocation24 + $0x388] sm:$0xff] }
 0x6c2   :  { %3169 = vmatpush1.msra.mxu0 %v2970_v1  ;;  %v2993_v1 = vld [vmem:[#allocation24 + $0x178] sm:$0xff]  ;;  %3137 = vmatprep.subr.mxu1 %v3064_v62 }
 0x6c3   :  { %3170 = vmatprep.subr.mxu0 %v2969_v48  ;;  %v3063_v48 = vld [vmem:[#allocation24 + $0x380] sm:$0xff] }
 0x6c4   :  { %3171 = vmatpush1.msra.mxu0 %v2968_v2  ;;  %v2992_v2 = vld [vmem:[#allocation24 + $0x170] sm:$0xff]  ;;  %3138 = vmatpush2.msra.mxu1 %v3063_v48 }
 0x6c5   :  { %3172 = vmatprep.subr.mxu0 %v2967_v3  ;;  %v3062_v3 = vld [vmem:[#allocation24 + $0x378] sm:$0xff] }
 0x6c6   :  { %3173 = vmatpush1.msra.mxu0 %v2966_v4  ;;  %v2991_v4 = vld [vmem:[#allocation24 + $0x168] sm:$0xff]  ;;  %3139 = vmatprep.subr.mxu1 %v3062_v3 }
 0x6c7   :  { %3174 = vmatprep.subr.mxu0 %v2965_v9  ;;  %v3061_v9 = vld [vmem:[#allocation24 + $0x370] sm:$0xff] }
 0x6c8   :  { %3175 = vmatpush1.msra.mxu0 %v2964_v10  ;;  %v2990_v10 = vld [vmem:[#allocation24 + $0x160] sm:$0xff]  ;;  %3140 = vmatpush2.msra.mxu1 %v3061_v9 }
 0x6c9   :  { %3176 = vmatprep.subr.mxu0 %v2963_v11  ;;  %v3060_v11 = vld [vmem:[#allocation24 + $0x368] sm:$0xff] }
 0x6ca   :  { %3177 = vmatpush1.msra.mxu0 %v2962_v12  ;;  %v2989_v12 = vld [vmem:[#allocation24 + $0x158] sm:$0xff]  ;;  %3141 = vmatprep.subr.mxu1 %v3060_v11 }
 0x6cb   :  { %3178 = vmatprep.subr.mxu0 %v2961_v13  ;;  %v3059_v13 = vld [vmem:[#allocation24 + $0x360] sm:$0xff] }
 0x6cc   :  { %3179 = vmatpush1.msra.mxu0 %v2960_v50  ;;  %v2988_v50 = vld [vmem:[#allocation24 + $0x150] sm:$0xff]  ;;  %3142 = vmatpush2.msra.mxu1 %v3059_v13  ;;  %v3265_v13 = vld [vmem:[#allocation24 + $0x4d8] sm:$0xff] }
 0x6cd   :  { %3180 = vmatprep.subr.mxu0 %v2959_v15  ;;  %v3058_v15 = vld [vmem:[#allocation24 + $0x358] sm:$0xff] }
 0x6ce   :  { %3181 = vmatpush1.msra.mxu0 %v2958_v16  ;;  %v2987_v16 = vld [vmem:[#allocation24 + $0x148] sm:$0xff]  ;;  %3143 = vmatprep.subr.mxu1 %v3058_v15 }
 0x6cf   :  { %3182 = vmatprep.subr.mxu0 %v2957_v18  ;;  %v3057_v18 = vld [vmem:[#allocation24 + $0x350] sm:$0xff]  ;;  %v3263_v15 = vld [vmem:[#allocation24 + $0x4c8] sm:$0xff] }
 0x6d0   :  { %3183 = vmatpush1.msra.mxu0 %v2956_v19  ;;  %v2986_v19 = vld [vmem:[#allocation24 + $0x140] sm:$0xff]  ;;  %3144 = vmatpush2.msra.mxu1 %v3057_v18  ;;  %v3261_v18 = vld [vmem:[#allocation24 + $0x4b8] sm:$0xff] }
 0x6d1   :  { %3184 = vmatprep.subr.mxu0 %v2955_v21  ;;  %v3056_v21 = vld [vmem:[#allocation24 + $0x348] sm:$0xff] }
 0x6d2   :  { %3185 = vmatpush1.msra.mxu0 %v2954_v46  ;;  %v2985_v46 = vld [vmem:[#allocation24 + $0x138] sm:$0xff]  ;;  %3145 = vmatprep.subr.mxu1 %v3056_v21  ;;  %v3259_v21 = vld [vmem:[#allocation24 + $0x4a8] sm:$0xff] }
 0x6d3   :  { %3186 = vmatprep.subr.mxu0 %v2953_v22  ;;  %v3055_v22 = vld [vmem:[#allocation24 + $0x340] sm:$0xff] }
 0x6d4   :  { %3187 = vmatpush1.msra.mxu0 %v2952_v23  ;;  %v2984_v23 = vld [vmem:[#allocation24 + $0x130] sm:$0xff]  ;;  %3146 = vmatpush2.msra.mxu1 %v3055_v22  ;;  %v3257_v22 = vld [vmem:[#allocation24 + $0x498] sm:$0xff] }
 0x6d5   :  { %3188 = vmatprep.subr.mxu0 %v2951_v31  ;;  %v3054_v31 = vld [vmem:[#allocation24 + $0x338] sm:$0xff] }
 0x6d6   :  { %3189 = vmatpush1.msra.mxu0 %v2950_v17  ;;  %v2983_v17 = vld [vmem:[#allocation24 + $0x128] sm:$0xff]  ;;  %3147 = vmatprep.subr.mxu1 %v3054_v31 }
 0x6d7   :  { %3190 = vmatprep.subr.mxu0 %v2949_v63  ;;  %v3053_v63 = vld [vmem:[#allocation24 + $0x330] sm:$0xff]  ;;  %v3255_v31 = vld [vmem:[#allocation24 + $0x488] sm:$0xff] }
 0x6d8   :  { %3191 = vmatpush1.msra.mxu0 %v2948_v25  ;;  %v2982_v25 = vld [vmem:[#allocation24 + $0x120] sm:$0xff]  ;;  %3148 = vmatpush2.msra.mxu1 %v3053_v63  ;;  %v3253_v63 = vld [vmem:[#allocation24 + $0x478] sm:$0xff] }
 0x6d9   :  { %3192 = vmatprep.subr.mxu0 %v2947_v54  ;;  %v3052_v54 = vld [vmem:[#allocation24 + $0x328] sm:$0xff] }
 0x6da   :  { %3193 = vmatpush1.msra.mxu0 %v2946_v52  ;;  %v2981_v52 = vld [vmem:[#allocation24 + $0x118] sm:$0xff]  ;;  %3149 = vmatprep.subr.mxu1 %v3052_v54  ;;  %v3251_v54 = vld [vmem:[#allocation24 + $0x468] sm:$0xff] }
 0x6db   :  { %3194 = vmatprep.subr.mxu0 %v3009_v26  ;;  %v3051_v26 = vld [vmem:[#allocation24 + $0x320] sm:$0xff] }
 0x6dc   :  { %3195 = vmatpush2.msra.mxu0 %v3008_v28  ;;  %v3050_v28 = vld [vmem:[#allocation24 + $0x318] sm:$0xff]  ;;  %3150 = vmatpush2.msra.mxu1 %v3051_v26 }
 0x6dd   :  { %3196 = vmatprep.subr.mxu0 %v3007_v0  ;;  %v3049_v0 = vld [vmem:[#allocation24 + $0x310] sm:$0xff]  ;;  %3151 = vmatprep.subr.mxu1 %v3050_v28  ;;  %v3249_v26 = vld [vmem:[#allocation24 + $0x458] sm:$0xff]  ;;  %v3247_v28 = vld [vmem:[#allocation24 + $0x448] sm:$0xff] }
 0x6de   :  { %3197 = vmatpush2.msra.mxu0 %v3006_v37  ;;  %3152 = vmatpush2.msra.mxu1 %v3049_v0  ;;  %v3048_v37 = vld [vmem:[#allocation24 + $0x308] sm:$0xff]  ;;  %v3245_v0 = vld [vmem:[#allocation24 + $0x438] sm:$0xff] }
 0x6df   :  { %3198 = vmatprep.subr.mxu0 %v3005_v39  ;;  %3153 = vmatprep.subr.mxu1 %v3048_v37  ;;  %v3269_v39 = vld [vmem:[#allocation24 + $0x4f8] sm:$0xff]  ;;  %v3243_v37 = vld [vmem:[#allocation24 + $0x428] sm:$0xff] }
 0x6e0   :  { %3199 = vmatpush2.msra.mxu0 %v3004_v20  ;;  %3154 = vmatpush2.msra.mxu1 %v3047_v38  ;;  %v3242_v38 = vld [vmem:[#allocation24 + $0x420] sm:$0xff] }
 0x6e1   :  { %3200 = vmatprep.subr.mxu0 %v3003_v24  ;;  %3314 = vmatprep.subr.mxu1 %v3269_v39  ;;  %v3241_v39 = vld [vmem:[#allocation24 + $0x418] sm:$0xff] }
 0x6e2   :  { %3201 = vmatpush2.msra.mxu0 %v3002_v42 }
 0x6e3   :  { %3202 = vmatprep.subr.mxu0 %v3001_v45 }
 0x6e4   :  { %3203 = vmatpush2.msra.mxu0 %v3000_v49 }
 0x6e5   :  { %3204 = vmatprep.subr.mxu0 %v2999_v6 }
 0x6e6   :  { %3205 = vmatpush2.msra.mxu0 %v2998_v8 }
 0x6e7   :  { %3206 = vmatprep.subr.mxu0 %v2997_v44 }
 0x6e8   :  { %3207 = vmatpush2.msra.mxu0 %v2996_v55 }
 0x6e9   :  { %3208 = vmatprep.subr.mxu0 %v2995_v57 }
 0x6ea   :  { %3209 = vmatpush2.msra.mxu0 %v2994_v61 }
 0x6eb   :  { %3210 = vmatprep.subr.mxu0 %v2993_v1 }
 0x6ec   :  { %3211 = vmatpush2.msra.mxu0 %v2992_v2 }
 0x6ed   :  { %3212 = vmatprep.subr.mxu0 %v2991_v4  ;;  %v3268_v4 = vld [vmem:[#allocation24 + $0x4f0] sm:$0xff] }
 0x6ee   :  { %3213 = vmatpush2.msra.mxu0 %v2990_v10  ;;  %v3267_v10 = vld [vmem:[#allocation24 + $0x4e8] sm:$0xff] }
 0x6ef   :  { %3214 = vmatprep.subr.mxu0 %v2989_v12  ;;  %v3266_v12 = vld [vmem:[#allocation24 + $0x4e0] sm:$0xff] }
 0x6f0   :  { %3215 = vmatpush2.msra.mxu0 %v2988_v50  ;;  %v3264_v50 = vld [vmem:[#allocation24 + $0x4d0] sm:$0xff] }
 0x6f1   :  { %3216 = vmatprep.subr.mxu0 %v2987_v16  ;;  %v3262_v16 = vld [vmem:[#allocation24 + $0x4c0] sm:$0xff] }
 0x6f2   :  { %3217 = vmatpush2.msra.mxu0 %v2986_v19  ;;  %v3260_v19 = vld [vmem:[#allocation24 + $0x4b0] sm:$0xff] }
 0x6f3   :  { %3218 = vmatprep.subr.mxu0 %v2985_v46  ;;  %v3258_v46 = vld [vmem:[#allocation24 + $0x4a0] sm:$0xff] }
 0x6f4   :  { %3219 = vmatpush2.msra.mxu0 %v2984_v23  ;;  %v3256_v23 = vld [vmem:[#allocation24 + $0x490] sm:$0xff] }
 0x6f5   :  { %3220 = vmatprep.subr.mxu0 %v2983_v17  ;;  %v3254_v17 = vld [vmem:[#allocation24 + $0x480] sm:$0xff] }
 0x6f6   :  { %3221 = vmatpush2.msra.mxu0 %v2982_v25  ;;  %v3252_v25 = vld [vmem:[#allocation24 + $0x470] sm:$0xff] }
 0x6f7   :  { %3222 = vmatprep.subr.mxu0 %v2981_v52  ;;  %v3250_v52 = vld [vmem:[#allocation24 + $0x460] sm:$0xff] }
 0x6f8   :  { %3223 = vmatpush2.msra.mxu0 %v2980_v27  ;;  %v3248_v27 = vld [vmem:[#allocation24 + $0x450] sm:$0xff] }
 0x6f9   :  { %3224 = vmatprep.subr.mxu0 %v2979_v29  ;;  %v3246_v29 = vld [vmem:[#allocation24 + $0x440] sm:$0xff] }
 0x6fa   :  { %3225 = vmatpush2.msra.mxu0 %v2978_v34  ;;  %v3244_v34 = vld [vmem:[#allocation24 + $0x430] sm:$0xff] }
 0x76b   :  { %v2837_v40 = vpop.f32.mrf.mxu0 }
 0x76c   :  { %v2919_v14 = vrot.slane %v2837_v40, %v4967_v53  ;;  %v3240_v40 = vld [vmem:[#allocation24 + $0x410] sm:$0xff] }
 0x76d   :  { %v2839_v20 = vpop.f32.mrf.mxu0 }
 0x76e   :  { %v2923_v24 = vrot.slane %v2839_v20, %v4967_v53  ;;  %v2924_v42 = vmul.f32 %v2919_v14, %v5500_v30  ;;  %v2926_v43 = vmul.f32 %v2919_v14, %v5502_v32  ;;  %v3239_v20 = vld [vmem:[#allocation24 + $0x408] sm:$0xff]  ;;  %v3238_v14 = vld [vmem:[#allocation24 + $0x400] sm:$0xff] }
 0x770   :  { %v2925_v47 = vmul.f32 %v2923_v24, %v5506_v35  ;;  %v2927_v5 = vmul.f32 %v2923_v24, %v5508_v36  ;;  %v3301_v24 = vld [vmem:[#allocation24 + $0x5f8] sm:$0xff] }
 0x77b   :  { %v2911_v58 = vpop.f32.mrf.mxu0 }
 0x77c   :  { %v2931_v45 = vrot.slane %v2911_v58, %v4967_v53  ;;  %v3300_v58 = vld [vmem:[#allocation24 + $0x5f0] sm:$0xff] }
 0x77d   :  { %v2913_v49 = vpop.f32.mrf.mxu0 }
 0x77e   :  { %v2936_v6 = vadd.f32 %v2931_v45, %v2924_v42  ;;  %v2938_v7 = vadd.f32 %v2931_v45, %v2926_v43  ;;  %v2935_v8 = vrot.slane %v2913_v49, %v4967_v53  ;;  %v3299_v42 = vld [vmem:[#allocation24 + $0x5e8] sm:$0xff]  ;;  %v3298_v43 = vld [vmem:[#allocation24 + $0x5e0] sm:$0xff]  ;;  %v3297_v45 = vld [vmem:[#allocation24 + $0x5d8] sm:$0xff] }
 0x77f   :  { %v3295_v49 = vld [vmem:[#allocation24 + $0x5c8] sm:$0xff] }
 0x780   :  { %2940 = vst [vmem:[#allocation8 + $0x10] sm:$0xfc] %v2936_v6  ;;  %2942 = vst [vmem:[#allocation8 + $0x8] sm:$0x3] %v2938_v7  ;;  %v2937_v51 = vadd.f32 %v2935_v8, %v2925_v47  ;;  %v2939_v44 = vadd.f32 %v2935_v8, %v2927_v5  ;;  %v3296_v47 = vld [vmem:[#allocation24 + $0x5d0] sm:$0xff]  ;;  %v3294_v5 = vld [vmem:[#allocation24 + $0x5c0] sm:$0xff] }
 0x781   :  { %v3293_v6 = vld [vmem:[#allocation24 + $0x5b8] sm:$0xff]  ;;  %v3292_v7 = vld [vmem:[#allocation24 + $0x5b0] sm:$0xff]  ;;  %v3291_v8 = vld [vmem:[#allocation24 + $0x5a8] sm:$0xff] }
 0x782   :  { %2941 = vst [vmem:[#allocation8] sm:$0xfc] %v2937_v51  ;;  %2943 = vst [vmem:[#allocation8 + $0x18] sm:$0x3] %v2939_v44  ;;  %v3290_v51 = vld [vmem:[#allocation24 + $0x5a0] sm:$0xff]  ;;  %v3289_v44 = vld [vmem:[#allocation24 + $0x598] sm:$0xff] }
 0x787   :  { %v3010_v30 = vld [vmem:[#allocation8 + $0x10] sm:$0xfc]  ;;  %v3012_v33 = vld [vmem:[#allocation8 + $0x8] sm:$0x3] }
 0x788   :  { %v2944_v32 = vld [vmem:[#allocation8 + $0x10] sm:$0xff]  ;;  %v3083_v55 = vrot.slane %v3010_v30, 2  ;;  %v3084_v59 = vrot.slane %v3012_v33, 2  ;;  %v3288_v30 = vld [vmem:[#allocation24 + $0x590] sm:$0xff] }
 0x789   :  { %v2945_v60 = vld [vmem:[#allocation8] sm:$0xff]  ;;  %v3013_v35 = vld [vmem:[#allocation8 + $0x18] sm:$0x3] }
 0x78a   :  { %v3011_v57 = vld [vmem:[#allocation8] sm:$0xfc]  ;;  %3226 = vmatprep.mubr.f32.mxu0 %v2945_v60  ;;  %v3087_v61 = vrot.slane %v3013_v35, 2  ;;  %v3236_v1 = vld [vmem:[#allocation8 + $0x18] sm:$0xf]  ;;  %v3085_v9 = vsel %vm1027_vm8, %v3083_v55, %v3084_v59  ;;  %v3282_v35 = vld [vmem:[#allocation24 + $0x560] sm:$0xff] }
 0x78b   :  { %v3086_v36 = vrot.slane %v3011_v57, 2  ;;  %v3234_v62 = vld [vmem:[#allocation8] sm:$0xf0]  ;;  %3227 = vmatmul.mubr.f32.vlgmr.msra.gmra.mxu0 %v2944_v32  ;;  %v3310_v2 = vrot.slane %v3236_v1, 4  ;;  %v3287_v33 = vld [vmem:[#allocation24 + $0x588] sm:$0xff]  ;;  %v3286_v32 = vld [vmem:[#allocation24 + $0x580] sm:$0xff] }
 0x78c   :  { %v3309_v48 = vrot.slane %v3234_v62, 4  ;;  %v3285_v55 = vld [vmem:[#allocation24 + $0x578] sm:$0xff]  ;;  %v3284_v60 = vld [vmem:[#allocation24 + $0x570] sm:$0xff]  ;;  %v3283_v57 = vld [vmem:[#allocation24 + $0x568] sm:$0xff] }
 0x78d   :  { %v3088_v3 = vsel %vm1027_vm8, %v3086_v36, %v3087_v61  ;;  %v3281_v59 = vld [vmem:[#allocation24 + $0x558] sm:$0xff]  ;;  %v3280_v36 = vld [vmem:[#allocation24 + $0x550] sm:$0xff]  ;;  %v3279_v61 = vld [vmem:[#allocation24 + $0x548] sm:$0xff] }
 0x78e   :  { %3155 = vmatprep.mubr.f32.mxu1 %v3088_v3  ;;  %v3311_v11 = vsel %vm281_vm0, %v3309_v48, %v3310_v2  ;;  %v3278_v62 = vld [vmem:[#allocation24 + $0x540] sm:$0xff]  ;;  %v3277_v1 = vld [vmem:[#allocation24 + $0x538] sm:$0xff]  ;;  %v3276_v48 = vld [vmem:[#allocation24 + $0x530] sm:$0xff] }
 0x78f   :  { %3156 = vmatmul.mubr.f32.vlgmr.msra.gmra.mxu1 %v3085_v9  ;;  %v3275_v2 = vld [vmem:[#allocation24 + $0x528] sm:$0xff]  ;;  %v3274_v3 = vld [vmem:[#allocation24 + $0x520] sm:$0xff]  ;;  %v3235_v9 = vld [vmem:[#allocation8 + $0x8] sm:$0xf] }
 0x790   :  { %3315 = vmatpush1.msra.mxu1 %v3268_v4  ;;  %3378 = vmatprep.mubr.f32.mxu1 %v3311_v11  ;;  %v3233_v4 = vld [vmem:[#allocation8 + $0x10] sm:$0xf0]  ;;  %v3272_v11 = vld [vmem:[#allocation24 + $0x510] sm:$0xff] }
 0x791   :  { %3316 = vmatprep.subr.mxu1 %v3267_v10  ;;  %v3273_v10 = vld [vmem:[#allocation24 + $0x518] sm:$0xff] }
 0x792   :  { %3317 = vmatpush1.msra.mxu1 %v3266_v12  ;;  %v3271_v12 = vld [vmem:[#allocation24 + $0x508] sm:$0xff] }
 0x793   :  { %3318 = vmatprep.subr.mxu1 %v3265_v13  ;;  %v3306_v13 = vrot.slane %v3233_v4, 4 }
 0x794   :  { %3319 = vmatpush1.msra.mxu1 %v3264_v50  ;;  %v3307_v50 = vrot.slane %v3235_v9, 4 }
 0x795   :  { %3320 = vmatprep.subr.mxu1 %v3263_v15  ;;  %v3270_v15 = vld [vmem:[#allocation24 + $0x500] sm:$0xff] }
 0x796   :  { %3321 = vmatpush1.msra.mxu1 %v3262_v16  ;;  %v3308_v16 = vsel %vm281_vm0, %v3306_v13, %v3307_v50 }
 0x797   :  { %3322 = vmatprep.subr.mxu1 %v3261_v18  ;;  %v5640_v18 = vld [vmem:[%s6205_s19 + $0xf8] sm:$0xff] }
 0x798   :  { %3323 = vmatpush1.msra.mxu1 %v3260_v19  ;;  %4227 = vmatprep.subr.mxu0 %v5640_v18  ;;  %v5646_v19 = vld [vmem:[%s6205_s19 + $0x78] sm:$0xff] }
 0x799   :  { %3324 = vmatprep.subr.mxu1 %v3259_v21  ;;  %4228 = vmatpush3.msra.mxu0 %v5646_v19  ;;  %v5652_v21 = vld [vmem:[%s6205_s19 + $0xf0] sm:$0xff] }
 0x79a   :  { %3325 = vmatpush1.msra.mxu1 %v3258_v46  ;;  %4229 = vmatprep.subr.mxu0 %v5652_v21  ;;  %v5658_v46 = vld [vmem:[%s6205_s19 + $0x70] sm:$0xff] }
 0x79b   :  { %3326 = vmatprep.subr.mxu1 %v3257_v22  ;;  %4230 = vmatpush3.msra.mxu0 %v5658_v46  ;;  %v5664_v22 = vld [vmem:[%s6205_s19 + $0xe8] sm:$0xff] }
 0x79c   :  { %3327 = vmatpush1.msra.mxu1 %v3256_v23  ;;  %4231 = vmatprep.subr.mxu0 %v5664_v22  ;;  %v5670_v23 = vld [vmem:[%s6205_s19 + $0x68] sm:$0xff] }
 0x79d   :  { %3328 = vmatprep.subr.mxu1 %v3255_v31  ;;  %4232 = vmatpush3.msra.mxu0 %v5670_v23  ;;  %v5676_v31 = vld [vmem:[%s6205_s19 + $0xe0] sm:$0xff] }
 0x79e   :  { %3329 = vmatpush1.msra.mxu1 %v3254_v17  ;;  %4233 = vmatprep.subr.mxu0 %v5676_v31  ;;  %v5682_v17 = vld [vmem:[%s6205_s19 + $0x60] sm:$0xff] }
 0x79f   :  { %3330 = vmatprep.subr.mxu1 %v3253_v63  ;;  %4234 = vmatpush3.msra.mxu0 %v5682_v17  ;;  %v5688_v63 = vld [vmem:[%s6205_s19 + $0xd8] sm:$0xff] }
 0x7a0   :  { %3331 = vmatpush1.msra.mxu1 %v3252_v25  ;;  %v5693_v25 = vld [vmem:[%s6205_s19 + $0x58] sm:$0xff]  ;;  %4235 = vmatprep.subr.mxu0 %v5688_v63 }
 0x7a1   :  { %3332 = vmatprep.subr.mxu1 %v3251_v54  ;;  %v5698_v54 = vld [vmem:[%s6205_s19 + $0xd0] sm:$0xff]  ;;  %4236 = vmatpush3.msra.mxu0 %v5693_v25 }
 0x7a2   :  { %3333 = vmatpush1.msra.mxu1 %v3250_v52  ;;  %v5704_v52 = vld [vmem:[%s6205_s19 + $0x50] sm:$0xff]  ;;  %4237 = vmatprep.subr.mxu0 %v5698_v54 }
 0x7a3   :  { %3334 = vmatprep.subr.mxu1 %v3249_v26  ;;  %v5710_v26 = vld [vmem:[%s6205_s19 + $0xc8] sm:$0xff]  ;;  %4238 = vmatpush3.msra.mxu0 %v5704_v52 }
 0x7a4   :  { %3335 = vmatpush1.msra.mxu1 %v3248_v27  ;;  %v5716_v27 = vld [vmem:[%s6205_s19 + $0x48] sm:$0xff]  ;;  %4239 = vmatprep.subr.mxu0 %v5710_v26 }
 0x7a5   :  { %3336 = vmatprep.subr.mxu1 %v3247_v28  ;;  %v5722_v28 = vld [vmem:[%s6205_s19 + $0xc0] sm:$0xff]  ;;  %4240 = vmatpush3.msra.mxu0 %v5716_v27 }
 0x7a6   :  { %3337 = vmatpush1.msra.mxu1 %v3246_v29  ;;  %v5728_v29 = vld [vmem:[%s6205_s19 + $0x40] sm:$0xff]  ;;  %4241 = vmatprep.subr.mxu0 %v5722_v28 }
 0x7a7   :  { %3338 = vmatprep.subr.mxu1 %v3245_v0  ;;  %v5734_v0 = vld [vmem:[%s6205_s19 + $0xb8] sm:$0xff]  ;;  %4242 = vmatpush3.msra.mxu0 %v5728_v29 }
 0x7a8   :  { %3339 = vmatpush1.msra.mxu1 %v3244_v34  ;;  %v5740_v34 = vld [vmem:[%s6205_s19 + $0x38] sm:$0xff]  ;;  %4243 = vmatprep.subr.mxu0 %v5734_v0 }
 0x7a9   :  { %3340 = vmatprep.subr.mxu1 %v3243_v37  ;;  %v5746_v37 = vld [vmem:[%s6205_s19 + $0xb0] sm:$0xff]  ;;  %4244 = vmatpush3.msra.mxu0 %v5740_v34 }
 0x7aa   :  { %3341 = vmatpush1.msra.mxu1 %v3242_v38  ;;  %v5752_v38 = vld [vmem:[%s6205_s19 + $0x30] sm:$0xff]  ;;  %4245 = vmatprep.subr.mxu0 %v5746_v37 }
 0x7ab   :  { %3342 = vmatprep.subr.mxu1 %v3241_v39  ;;  %v5758_v39 = vld [vmem:[%s6205_s19 + $0xa8] sm:$0xff]  ;;  %4246 = vmatpush3.msra.mxu0 %v5752_v38 }
 0x7ac   :  { %3343 = vmatpush1.msra.mxu1 %v3240_v40  ;;  %v5764_v40 = vld [vmem:[%s6205_s19 + $0x28] sm:$0xff]  ;;  %4247 = vmatprep.subr.mxu0 %v5758_v39 }
 0x7ad   :  { %3344 = vmatprep.subr.mxu1 %v3239_v20  ;;  %v5770_v20 = vld [vmem:[%s6205_s19 + $0xa0] sm:$0xff]  ;;  %4248 = vmatpush3.msra.mxu0 %v5764_v40 }
 0x7ae   :  { %3345 = vmatpush1.msra.mxu1 %v3238_v14  ;;  %v5776_v14 = vld [vmem:[%s6205_s19 + $0x20] sm:$0xff]  ;;  %4249 = vmatprep.subr.mxu0 %v5770_v20 }
 0x7af   :  { %3346 = vmatprep.subr.mxu1 %v3301_v24  ;;  %v5782_v24 = vld [vmem:[%s6205_s19 + $0x98] sm:$0xff]  ;;  %4250 = vmatpush3.msra.mxu0 %v5776_v14 }
 0x7b0   :  { %3347 = vmatpush2.msra.mxu1 %v3300_v58  ;;  %v5788_v58 = vld [vmem:[%s6205_s19 + $0x18] sm:$0xff]  ;;  %4251 = vmatprep.subr.mxu0 %v5782_v24 }
 0x7b1   :  { %3348 = vmatprep.subr.mxu1 %v3299_v42  ;;  %v5794_v42 = vld [vmem:[%s6205_s19 + $0x90] sm:$0xff]  ;;  %4252 = vmatpush3.msra.mxu0 %v5788_v58 }
 0x7b2   :  { %3349 = vmatpush2.msra.mxu1 %v3298_v43  ;;  %v5800_v43 = vld [vmem:[%s6205_s19 + $0x10] sm:$0xff]  ;;  %4253 = vmatprep.subr.mxu0 %v5794_v42 }
 0x7b3   :  { %3350 = vmatprep.subr.mxu1 %v3297_v45  ;;  %v5806_v45 = vld [vmem:[%s6205_s19 + $0x88] sm:$0xff]  ;;  %4254 = vmatpush3.msra.mxu0 %v5800_v43 }
 0x7b4   :  { %3351 = vmatpush2.msra.mxu1 %v3296_v47  ;;  %v5812_v47 = vld [vmem:[%s6205_s19 + $0x8] sm:$0xff]  ;;  %4255 = vmatprep.subr.mxu0 %v5806_v45 }
 0x7b5   :  { %3352 = vmatprep.subr.mxu1 %v3295_v49  ;;  %v5818_v49 = vld [vmem:[%s6205_s19 + $0x80] sm:$0xff]  ;;  %4256 = vmatpush3.msra.mxu0 %v5812_v47 }
 0x7b6   :  { %3353 = vmatpush2.msra.mxu1 %v3294_v5  ;;  %v5824_v5 = vld [vmem:[%s6205_s19] sm:$0xff]  ;;  %4257 = vmatprep.subr.mxu0 %v5818_v49 }
 0x7b7   :  { %3354 = vmatprep.subr.mxu1 %v3293_v6  ;;  %4258 = vmatpush3.msra.mxu0 %v5824_v5 }
 0x7b8   :  { %3355 = vmatpush2.msra.mxu1 %v3292_v7  ;;  %4262 = vmatprep.subr.mxu0 %v5640_v18 }
 0x7b9   :  { %3356 = vmatprep.subr.mxu1 %v3291_v8  ;;  %v3387_v8 = vld [vmem:[%s6202_s16] sm:$0x3] }
 0x7ba   :  { %3357 = vmatpush2.msra.mxu1 %v3290_v51 }
 0x7bb   :  { %3358 = vmatprep.subr.mxu1 %v3289_v44 }
 0x7bc   :  { %3359 = vmatpush2.msra.mxu1 %v3288_v30  ;;  %v3392_v30 = vrot.slane %v3387_v8, %v4967_v53 }
 0x7bd   :  { %3360 = vmatprep.subr.mxu1 %v3287_v33 }
 0x7be   :  { %3361 = vmatpush2.msra.mxu1 %v3286_v32 }
 0x7bf   :  { %3362 = vmatprep.subr.mxu1 %v3285_v55 }
 0x7c0   :  { %3363 = vmatpush2.msra.mxu1 %v3284_v60 }
 0x7c1   :  { %3364 = vmatprep.subr.mxu1 %v3283_v57  ;;  %v3396_v57 = vrot.slane %v3387_v8, %v4971_v56 }
 0x7c2   :  { %3365 = vmatpush2.msra.mxu1 %v3282_v35 }
 0x7c3   :  { %3366 = vmatprep.subr.mxu1 %v3281_v59 }
 0x7c4   :  { %3367 = vmatpush2.msra.mxu1 %v3280_v36 }
 0x7c5   :  { %3368 = vmatprep.subr.mxu1 %v3279_v61 }
 0x7c6   :  { %3369 = vmatpush2.msra.mxu1 %v3278_v62 }
 0x7c7   :  { %3370 = vmatprep.subr.mxu1 %v3277_v1 }
 0x7c8   :  { %3371 = vmatpush2.msra.mxu1 %v3276_v48 }
 0x7c9   :  { %3372 = vmatprep.subr.mxu1 %v3275_v2 }
 0x7ca   :  { %3373 = vmatpush2.msra.mxu1 %v3274_v3 }
 0x7cb   :  { %3374 = vmatprep.subr.mxu1 %v3273_v10 }
 0x7cc   :  { %3375 = vmatpush2.msra.mxu1 %v3272_v11 }
 0x7cd   :  { %3376 = vmatprep.subr.mxu1 %v3271_v12 }
 0x7ce   :  { %3377 = vmatpush2.msra.mxu1 %v3270_v15 }
 0x7cf   :  { %3379 = vmatmul.mubr.f32.vlgmr.msra.gmra.mxu1 %v3308_v16 }
 0x7d0   :  { %3739 = vmatprep.mubr.f32.mxu1 %v5299_v41 }
 0x84b   :  { %v3228_v7 = vpop.f32.mrf.mxu0 }
 0x84d   :  { %v3230_v33 = vpop.f32.mrf.mxu0 }
 0x84f   :  { %v3157_v6 = vpop.f32.mrf.mxu1 }
 0x850   :  { %v3229_v44 = vadd.f32 %v3228_v7, %v3157_v6 }
 0x851   :  { %v3159_v51 = vpop.f32.mrf.mxu1 }
 0x852   :  { %v3231_v55 = vadd.f32 %v3230_v33, %v3159_v51 }
 0x88f   :  { %v3380_v32 = vpop.f32.mrf.mxu1 }
 0x890   :  { %v3385_v60 = vadd.f32 %v3380_v32, %v3229_v44 }
 0x891   :  { %v3382_v35 = vpop.f32.mrf.mxu1 }
 0x892   :  { %v3399_v59 = vadd.f32 %v3392_v30, %v3385_v60  ;;  %v3386_v36 = vadd.f32 %v3382_v35, %v3231_v55 }
 0x894   :  { %vm3401_vm8 = vcmp.gt.f32.partialorder %v3399_v59, 0.0  ;;  %v3403_v61 = vmul.f32 0.2, %v3399_v59  ;;  %v3400_v62 = vadd.f32 %v3396_v57, %v3386_v36 }
 0x896   :  { %v3405_v1 = vsel %vm3401_vm8, %v3399_v59, %v3403_v61  ;;  %vm3402_vm14 = vcmp.gt.f32.partialorder %v3400_v62, 0.0  ;;  %v3404_v48 = vmul.f32 0.2, %v3400_v62 }
 0x897   :  { %3407 = vst [vmem:[#allocation5] sm:$0xff] %v3405_v1 }
 0x898   :  { %v3406_v2 = vsel %vm3402_vm14, %v3400_v62, %v3404_v48 }
 0x899   :  { %3408 = vst [vmem:[#allocation5 + $0x8] sm:$0xff] %v3406_v2 }
 0x89e   :  { %v3409_v3 = vld [vmem:[#allocation5] sm:$0x3]  ;;  %v3416_v4 = vld [vmem:[#allocation5] sm:$0x30] }
 0x8a0   :  { %v3410_v9 = vld [vmem:[#allocation5 + $0x8] sm:$0x3]  ;;  %v3417_v10 = vld [vmem:[#allocation5 + $0x8] sm:$0x30] }
 0x8a1   :  { %v3413_v11 = vcombine.low %v3409_v3, %v3410_v9  ;;  %v3420_v12 = vcombine.high %v3416_v4, %v3417_v10  ;;  %v3648_v9 = vld [vmem:[%s6206_s20 + $0x28] sm:$0xff]  ;;  %v3647_v10 = vld [vmem:[%s6206_s20 + $0x20] sm:$0xff] }
 0x8a3   :  { %3415 = vst [vmem:[#allocation9] sm:$0x33] %v3413_v11  ;;  %v3421_v56 = vrot.slane %v3420_v12, 6  ;;  %v3646_v11 = vld [vmem:[%s6206_s20 + $0x18] sm:$0xff]  ;;  %v3645_v12 = vld [vmem:[%s6206_s20 + $0x10] sm:$0xff] }
 0x8a5   :  { %3423 = vst [vmem:[#allocation9] sm:$0xcc] %v3421_v56  ;;  %v3644_v56 = vld [vmem:[%s6206_s20 + $0x8] sm:$0xff] }
 0x8ac   :  { %v5835_v13 = vld [vmem:[#allocation9] sm:$0xff] }
 0x8ad   :  { %v3426_v50 = vcombine.high %v5835_v13, %v5835_v13  ;;  %v3428_v15 = vsel %vm281_vm0, %v5835_v13, 0.0  ;;  %v3442_v16 = vmul.f32 %v5835_v13, %v5835_v13 }
 0x8ae   :  { %v3429_v18 = vrot.slane %v3428_v15, 4 }
 0x8af   :  { %v3435_v6 = vsel %vm281_vm0, %v3426_v50, 0.0  ;;  %v3444_v7 = vcombine.high %v3442_v16, %v3442_v16  ;;  %v3446_v4 = vsel %vm281_vm0, %v3442_v16, 0.0  ;;  %v3643_v50 = vld [vmem:[%s6206_s20] sm:$0xff]  ;;  %v3909_v16 = vld [vmem:[%s6208_s22 + $0xf8] sm:$0xff] }
 0x8b0   :  { %v3436_v8 = vrot.slane %v3435_v6, 4  ;;  %v3430_v51 = vadd.f32 %v3429_v18, %v3428_v15  ;;  %v3876_v15 = vld [vmem:[%s6207_s21 + $0xf8] sm:$0xff] }
 0x8b1   :  { %v3453_v44 = vsel %vm281_vm0, %v3444_v7, 0.0  ;;  %vm4068_vm0 = vcmask 74752  }
 0x8b2   :  { %v3437_v30 = vadd.f32 %v3436_v8, %v3435_v6  ;;  %v3431_v33 = vrot.slane %v3430_v51, 2  ;;  %v3454_v32 = vrot.slane %v3453_v44, 4 }
 0x8b4   :  { %v3438_v55 = vrot.slane %v3437_v30, 2  ;;  %v3432_v60 = vadd.f32 %v3431_v33, %v3430_v51  ;;  %v3455_v57 = vadd.f32 %v3454_v32, %v3453_v44 }
 0x8b6   :  { %v3439_v35 = vadd.f32 %v3438_v55, %v3437_v30  ;;  %v3456_v59 = vrot.slane %v3455_v57, 2  ;;  %v3433_v36 = vrot.slane %v3432_v60, 1 }
 0x8b8   :  { %v3440_v61 = vrot.slane %v3439_v35, 1  ;;  %v3457_v62 = vadd.f32 %v3456_v59, %v3455_v57  ;;  %v3434_v2 = vadd.f32 %v3433_v36, %v3432_v60  ;;  %v3636_v57 = vld [vmem:[%s6203_s17] sm:$0x1]  ;;  %v3893_v36 = vld [vmem:[%s6208_s22 + $0x78] sm:$0xff] }
 0x8ba   :  { %v3441_v1 = vadd.f32 %v3440_v61, %v3439_v35  ;;  %v3458_v48 = vrot.slane %v3457_v62, 1  ;;  %v3640_v61 = vld [vmem:[%s6204_s18] sm:$0x1] }
 0x8bc   :  { %3556 = vmatprep.mubr.f32.mxu0 %v3441_v1  ;;  %v3459_v3 = vadd.f32 %v3458_v48, %v3457_v62  ;;  %v3908_v62 = vld [vmem:[%s6208_s22 + $0xf0] sm:$0xff] }
 0x8bd   :  { %3557 = vmatmul.mubr.f32.vlgmr.msra.gmra.mxu0 %v3434_v2  ;;  %v3892_v48 = vld [vmem:[%s6208_s22 + $0x70] sm:$0xff]  ;;  %v3907_v2 = vld [vmem:[%s6208_s22 + $0xe8] sm:$0xff] }
 0x8be   :  { %4263 = vmatpush3.msra.mxu0 %v5646_v19  ;;  %3627 = vmatprep.mubr.f32.mxu0 %v3459_v3  ;;  %v3447_v19 = vrot.slane %v3446_v4, 4 }
 0x8bf   :  { %4264 = vmatprep.subr.mxu0 %v5652_v21 }
 0x8c0   :  { %4265 = vmatpush3.msra.mxu0 %v5658_v46  ;;  %v3448_v21 = vadd.f32 %v3447_v19, %v3446_v4  ;;  %v3860_v4 = vld [vmem:[%s6207_s21 + $0x78] sm:$0xff]  ;;  %v3891_v19 = vld [vmem:[%s6208_s22 + $0x68] sm:$0xff] }
 0x8c1   :  { %4266 = vmatprep.subr.mxu0 %v5664_v22 }
 0x8c2   :  { %4267 = vmatpush3.msra.mxu0 %v5670_v23  ;;  %v3449_v46 = vrot.slane %v3448_v21, 2 }
 0x8c3   :  { %4268 = vmatprep.subr.mxu0 %v5676_v31 }
 0x8c4   :  { %4269 = vmatpush3.msra.mxu0 %v5682_v17  ;;  %v3450_v22 = vadd.f32 %v3449_v46, %v3448_v21  ;;  %v3674_v17 = vld [vmem:[%s6206_s20 + $0xf8] sm:$0xff]  ;;  %v3875_v21 = vld [vmem:[%s6207_s21 + $0xf0] sm:$0xff] }
 0x8c5   :  { %4270 = vmatprep.subr.mxu0 %v5688_v63  ;;  %v3673_v63 = vld [vmem:[%s6206_s20 + $0xf0] sm:$0xff]  ;;  %3675 = vmatprep.subr.mxu1 %v3674_v17 }
 0x8c6   :  { %4271 = vmatpush3.msra.mxu0 %v5693_v25  ;;  %v3451_v23 = vrot.slane %v3450_v22, 1  ;;  %v3672_v25 = vld [vmem:[%s6206_s20 + $0xe8] sm:$0xff]  ;;  %3676 = vmatpush1.msra.mxu1 %v3673_v63  ;;  %v3859_v46 = vld [vmem:[%s6207_s21 + $0x70] sm:$0xff] }
 0x8c7   :  { %4272 = vmatprep.subr.mxu0 %v5698_v54  ;;  %v3671_v54 = vld [vmem:[%s6206_s20 + $0xe0] sm:$0xff]  ;;  %3677 = vmatprep.subr.mxu1 %v3672_v25 }
 0x8c8   :  { %4273 = vmatpush3.msra.mxu0 %v5704_v52  ;;  %v3452_v31 = vadd.f32 %v3451_v23, %v3450_v22  ;;  %3678 = vmatpush1.msra.mxu1 %v3671_v54  ;;  %v3669_v52 = vld [vmem:[%s6206_s20 + $0xd0] sm:$0xff]  ;;  %v3874_v22 = vld [vmem:[%s6207_s21 + $0xe8] sm:$0xff] }
 0x8c9   :  { %4274 = vmatprep.subr.mxu0 %v5710_v26  ;;  %v3668_v26 = vld [vmem:[%s6206_s20 + $0xc8] sm:$0xff] }
 0x8ca   :  { %4275 = vmatpush3.msra.mxu0 %v5716_v27  ;;  %v3667_v27 = vld [vmem:[%s6206_s20 + $0xc0] sm:$0xff]  ;;  %v3858_v23 = vld [vmem:[%s6207_s21 + $0x68] sm:$0xff] }
 0x8cb   :  { %4276 = vmatprep.subr.mxu0 %v5722_v28  ;;  %v3666_v28 = vld [vmem:[%s6206_s20 + $0xb8] sm:$0xff] }
 0x8cc   :  { %4277 = vmatpush3.msra.mxu0 %v5728_v29  ;;  %v3665_v29 = vld [vmem:[%s6206_s20 + $0xb0] sm:$0xff] }
 0x8cd   :  { %4278 = vmatprep.subr.mxu0 %v5734_v0  ;;  %v3664_v0 = vld [vmem:[%s6206_s20 + $0xa8] sm:$0xff] }
 0x8ce   :  { %4279 = vmatpush3.msra.mxu0 %v5740_v34  ;;  %v3663_v34 = vld [vmem:[%s6206_s20 + $0xa0] sm:$0xff] }
 0x8cf   :  { %4280 = vmatprep.subr.mxu0 %v5746_v37  ;;  %v3662_v37 = vld [vmem:[%s6206_s20 + $0x98] sm:$0xff] }
 0x8d0   :  { %4281 = vmatpush3.msra.mxu0 %v5752_v38  ;;  %v3661_v38 = vld [vmem:[%s6206_s20 + $0x90] sm:$0xff] }
 0x8d1   :  { %4282 = vmatprep.subr.mxu0 %v5758_v39  ;;  %v3660_v39 = vld [vmem:[%s6206_s20 + $0x88] sm:$0xff] }
 0x8d2   :  { %4283 = vmatpush3.msra.mxu0 %v5764_v40  ;;  %v3659_v40 = vld [vmem:[%s6206_s20 + $0x80] sm:$0xff] }
 0x8d3   :  { %4284 = vmatprep.subr.mxu0 %v5770_v20  ;;  %v3658_v20 = vld [vmem:[%s6206_s20 + $0x78] sm:$0xff] }
 0x8d4   :  { %4285 = vmatpush3.msra.mxu0 %v5776_v14  ;;  %v3657_v14 = vld [vmem:[%s6206_s20 + $0x70] sm:$0xff] }
 0x8d5   :  { %4286 = vmatprep.subr.mxu0 %v5782_v24  ;;  %v3656_v24 = vld [vmem:[%s6206_s20 + $0x68] sm:$0xff] }
 0x8d6   :  { %4287 = vmatpush3.msra.mxu0 %v5788_v58  ;;  %v3655_v58 = vld [vmem:[%s6206_s20 + $0x60] sm:$0xff] }
 0x8d7   :  { %4288 = vmatprep.subr.mxu0 %v5794_v42  ;;  %v3654_v42 = vld [vmem:[%s6206_s20 + $0x58] sm:$0xff] }
 0x8d8   :  { %4289 = vmatpush3.msra.mxu0 %v5800_v43  ;;  %v3653_v43 = vld [vmem:[%s6206_s20 + $0x50] sm:$0xff] }
 0x8d9   :  { %4290 = vmatprep.subr.mxu0 %v5806_v45  ;;  %v3652_v45 = vld [vmem:[%s6206_s20 + $0x48] sm:$0xff] }
 0x8da   :  { %4291 = vmatpush3.msra.mxu0 %v5812_v47  ;;  %v3651_v47 = vld [vmem:[%s6206_s20 + $0x40] sm:$0xff] }
 0x8db   :  { %4292 = vmatprep.subr.mxu0 %v5818_v49  ;;  %v3650_v49 = vld [vmem:[%s6206_s20 + $0x38] sm:$0xff] }
 0x8dc   :  { %4293 = vmatpush3.msra.mxu0 %v5824_v5  ;;  %v3649_v5 = vld [vmem:[%s6206_s20 + $0x30] sm:$0xff] }
 0x8dd   :  { %3628 = vmatmul.mubr.f32.vlgmr.msra.gmra.mxu0 %v3452_v31  ;;  %3746 = vmatprep.subr.mxu0 %v3674_v17  ;;  %v3873_v31 = vld [vmem:[%s6207_s21 + $0xe0] sm:$0xff] }
 0x8de   :  { %3810 = vmatprep.mubr.f32.mxu0 %v5299_v41  ;;  %v3670_v41 = vld [vmem:[%s6206_s20 + $0xd8] sm:$0xff]  ;;  %3747 = vmatpush1.msra.mxu0 %v3673_v63  ;;  %v3857_v17 = vld [vmem:[%s6207_s21 + $0x60] sm:$0xff] }
 0x8df   :  { %3748 = vmatprep.subr.mxu0 %v3672_v25  ;;  %3679 = vmatprep.subr.mxu1 %v3670_v41  ;;  %v3906_v63 = vld [vmem:[%s6208_s22 + $0xe0] sm:$0xff]  ;;  %v3872_v25 = vld [vmem:[%s6207_s21 + $0xd8] sm:$0xff] }
 0x8e0   :  { %3749 = vmatpush1.msra.mxu0 %v3671_v54  ;;  %3680 = vmatpush1.msra.mxu1 %v3669_v52  ;;  %v3890_v54 = vld [vmem:[%s6208_s22 + $0x60] sm:$0xff] }
 0x8e1   :  { %3750 = vmatprep.subr.mxu0 %v3670_v41  ;;  %3681 = vmatprep.subr.mxu1 %v3668_v26  ;;  %v3856_v41 = vld [vmem:[%s6207_s21 + $0x58] sm:$0xff] }
 0x8e2   :  { %3751 = vmatpush1.msra.mxu0 %v3669_v52  ;;  %3682 = vmatpush1.msra.mxu1 %v3667_v27  ;;  %v3905_v52 = vld [vmem:[%s6208_s22 + $0xd8] sm:$0xff] }
 0x8e3   :  { %3752 = vmatprep.subr.mxu0 %v3668_v26  ;;  %3683 = vmatprep.subr.mxu1 %v3666_v28  ;;  %v3871_v26 = vld [vmem:[%s6207_s21 + $0xd0] sm:$0xff] }
 0x8e4   :  { %3753 = vmatpush1.msra.mxu0 %v3667_v27  ;;  %3684 = vmatpush1.msra.mxu1 %v3665_v29  ;;  %v3889_v27 = vld [vmem:[%s6208_s22 + $0x58] sm:$0xff] }
 0x8e5   :  { %3754 = vmatprep.subr.mxu0 %v3666_v28  ;;  %3685 = vmatprep.subr.mxu1 %v3664_v0  ;;  %v3855_v28 = vld [vmem:[%s6207_s21 + $0x50] sm:$0xff] }
 0x8e6   :  { %3755 = vmatpush1.msra.mxu0 %v3665_v29  ;;  %3686 = vmatpush1.msra.mxu1 %v3663_v34  ;;  %v3904_v29 = vld [vmem:[%s6208_s22 + $0xd0] sm:$0xff] }
 0x8e7   :  { %3756 = vmatprep.subr.mxu0 %v3664_v0  ;;  %3687 = vmatprep.subr.mxu1 %v3662_v37  ;;  %v3870_v0 = vld [vmem:[%s6207_s21 + $0xc8] sm:$0xff] }
 0x8e8   :  { %3757 = vmatpush1.msra.mxu0 %v3663_v34  ;;  %3688 = vmatpush1.msra.mxu1 %v3661_v38  ;;  %v3888_v34 = vld [vmem:[%s6208_s22 + $0x50] sm:$0xff] }
 0x8e9   :  { %3758 = vmatprep.subr.mxu0 %v3662_v37  ;;  %3689 = vmatprep.subr.mxu1 %v3660_v39  ;;  %v3854_v37 = vld [vmem:[%s6207_s21 + $0x48] sm:$0xff] }
 0x8ea   :  { %3759 = vmatpush1.msra.mxu0 %v3661_v38  ;;  %3690 = vmatpush1.msra.mxu1 %v3659_v40  ;;  %v3903_v38 = vld [vmem:[%s6208_s22 + $0xc8] sm:$0xff] }
 0x8eb   :  { %3760 = vmatprep.subr.mxu0 %v3660_v39  ;;  %3691 = vmatprep.subr.mxu1 %v3658_v20  ;;  %v3869_v39 = vld [vmem:[%s6207_s21 + $0xc0] sm:$0xff] }
 0x8ec   :  { %3761 = vmatpush1.msra.mxu0 %v3659_v40  ;;  %3692 = vmatpush1.msra.mxu1 %v3657_v14  ;;  %v3887_v40 = vld [vmem:[%s6208_s22 + $0x48] sm:$0xff] }
 0x8ed   :  { %3762 = vmatprep.subr.mxu0 %v3658_v20  ;;  %3693 = vmatprep.subr.mxu1 %v3656_v24  ;;  %v3853_v20 = vld [vmem:[%s6207_s21 + $0x40] sm:$0xff] }
 0x8ee   :  { %3763 = vmatpush1.msra.mxu0 %v3657_v14  ;;  %3694 = vmatpush1.msra.mxu1 %v3655_v58  ;;  %v3902_v14 = vld [vmem:[%s6208_s22 + $0xc0] sm:$0xff] }
 0x8ef   :  { %3764 = vmatprep.subr.mxu0 %v3656_v24  ;;  %3695 = vmatprep.subr.mxu1 %v3654_v42  ;;  %v3868_v24 = vld [vmem:[%s6207_s21 + $0xb8] sm:$0xff] }
 0x8f0   :  { %3765 = vmatpush1.msra.mxu0 %v3655_v58  ;;  %3696 = vmatpush1.msra.mxu1 %v3653_v43  ;;  %v3886_v58 = vld [vmem:[%s6208_s22 + $0x40] sm:$0xff] }
 0x8f1   :  { %3766 = vmatprep.subr.mxu0 %v3654_v42  ;;  %3697 = vmatprep.subr.mxu1 %v3652_v45  ;;  %v3852_v42 = vld [vmem:[%s6207_s21 + $0x38] sm:$0xff] }
 0x8f2   :  { %3767 = vmatpush1.msra.mxu0 %v3653_v43  ;;  %3698 = vmatpush1.msra.mxu1 %v3651_v47  ;;  %v3901_v43 = vld [vmem:[%s6208_s22 + $0xb8] sm:$0xff] }
 0x8f3   :  { %3768 = vmatprep.subr.mxu0 %v3652_v45  ;;  %3699 = vmatprep.subr.mxu1 %v3650_v49  ;;  %v3867_v45 = vld [vmem:[%s6207_s21 + $0xb0] sm:$0xff] }
 0x8f4   :  { %3769 = vmatpush1.msra.mxu0 %v3651_v47  ;;  %3700 = vmatpush1.msra.mxu1 %v3649_v5  ;;  %v3885_v47 = vld [vmem:[%s6208_s22 + $0x38] sm:$0xff] }
 0x8f5   :  { %3770 = vmatprep.subr.mxu0 %v3650_v49  ;;  %3701 = vmatprep.subr.mxu1 %v3648_v9  ;;  %v3851_v49 = vld [vmem:[%s6207_s21 + $0x30] sm:$0xff] }
 0x8f6   :  { %3771 = vmatpush1.msra.mxu0 %v3649_v5  ;;  %3702 = vmatpush1.msra.mxu1 %v3647_v10  ;;  %v3900_v5 = vld [vmem:[%s6208_s22 + $0xb0] sm:$0xff] }
 0x8f7   :  { %3772 = vmatprep.subr.mxu0 %v3648_v9  ;;  %3703 = vmatprep.subr.mxu1 %v3646_v11  ;;  %v3866_v9 = vld [vmem:[%s6207_s21 + $0xa8] sm:$0xff] }
 0x8f8   :  { %3773 = vmatpush1.msra.mxu0 %v3647_v10  ;;  %3704 = vmatpush1.msra.mxu1 %v3645_v12  ;;  %v3884_v10 = vld [vmem:[%s6208_s22 + $0x30] sm:$0xff] }
 0x8f9   :  { %3774 = vmatprep.subr.mxu0 %v3646_v11  ;;  %3705 = vmatprep.subr.mxu1 %v3644_v56  ;;  %v3850_v11 = vld [vmem:[%s6207_s21 + $0x28] sm:$0xff] }
 0x8fa   :  { %3775 = vmatpush1.msra.mxu0 %v3645_v12  ;;  %3706 = vmatpush1.msra.mxu1 %v3643_v50  ;;  %v3899_v12 = vld [vmem:[%s6208_s22 + $0xa8] sm:$0xff] }
 0x8fb   :  { %3776 = vmatprep.subr.mxu0 %v3644_v56  ;;  %4297 = vmatprep.subr.mxu1 %v3909_v16  ;;  %v3865_v56 = vld [vmem:[%s6207_s21 + $0xa0] sm:$0xff] }
 0x8fc   :  { %3777 = vmatpush1.msra.mxu0 %v3643_v50  ;;  %v3883_v50 = vld [vmem:[%s6208_s22 + $0x28] sm:$0xff]  ;;  %v3898_v16 = vld [vmem:[%s6208_s22 + $0xa0] sm:$0xff] }
 0x8fd   :  { %4332 = vmatprep.subr.mxu0 %v3876_v15  ;;  %v3849_v15 = vld [vmem:[%s6207_s21 + $0x20] sm:$0xff] }
 0x97d   :  { %v4259_v18 = vpop.f32.mrf.mxu0 }
 0x97f   :  { %v4260_v6 = vpop.f32.mrf.mxu0 }
 0x980   :  { %v4261_v7 = vadd.f32 %v4260_v6, %v4259_v18  ;;  %v3864_v18 = vld [vmem:[%s6207_s21 + $0x98] sm:$0xff]  ;;  %v3882_v6 = vld [vmem:[%s6208_s22 + $0x20] sm:$0xff] }
 0x982   :  { %v3562_v51 = vmul.f32 0.125, %v4261_v7  ;;  %v3848_v7 = vld [vmem:[%s6207_s21 + $0x18] sm:$0xff] }
 0x984   :  { %v3634_v33 = vmul.f32 %v3562_v51, %v3562_v51 }
 0x99d   :  { %v4294_v8 = vpop.f32.mrf.mxu0 }
 0x99f   :  { %v4295_v44 = vpop.f32.mrf.mxu0 }
 0x9a0   :  { %v4296_v30 = vadd.f32 %v4295_v44, %v4294_v8  ;;  %v3897_v8 = vld [vmem:[%s6208_s22 + $0x98] sm:$0xff] }
 0x9a1   :  { %v3881_v44 = vld [vmem:[%s6208_s22 + $0x18] sm:$0xff] }
 0x9a2   :  { %v3633_v32 = vmul.f32 0.125, %v4296_v30  ;;  %v3847_v30 = vld [vmem:[%s6207_s21 + $0x10] sm:$0xff] }
 0x9a4   :  { %v3635_v55 = vsub.f32 %v3633_v32, %v3634_v33  ;;  %v3896_v33 = vld [vmem:[%s6208_s22 + $0x90] sm:$0xff]  ;;  %v3862_v32 = vld [vmem:[%s6207_s21 + $0x88] sm:$0xff] }
 0x9a6   :  { %v3637_v60 = vadd.f32 0.8, %v3635_v55  ;;  %v3880_v55 = vld [vmem:[%s6208_s22 + $0x10] sm:$0xff] }
 0x9a8   :  { %4388 = vrsqrt.f32 %v3637_v60  ;;  %v3846_v60 = vld [vmem:[%s6207_s21 + $0x8] sm:$0xff] }
 0x9b5   :  { %v4389_v35 = vpop.eup %4388 }
 0x9b6   :  { %v3639_v59 = vmul.f32 %v4389_v35, %v3636_v57  ;;  %v3895_v57 = vld [vmem:[%s6208_s22 + $0x88] sm:$0xff]  ;;  %v3861_v35 = vld [vmem:[%s6207_s21 + $0x80] sm:$0xff] }
 0x9b8   :  { %3740 = vmatmul.mubr.f32.vlgmr.msra.gmra.mxu1 %v3639_v59  ;;  %v3641_v1 = vmul.f32 %v3639_v59, %v3562_v51  ;;  %v3863_v51 = vld [vmem:[%s6207_s21 + $0x90] sm:$0xff]  ;;  %v3879_v59 = vld [vmem:[%s6208_s22 + $0x8] sm:$0xff] }
 0x9b9   :  { %4298 = vmatpush3.msra.mxu1 %v3893_v36  ;;  %v3845_v36 = vld [vmem:[%s6207_s21] sm:$0xff] }
 0x9ba   :  { %v3642_v3 = vsub.f32 %v3640_v61, %v3641_v1  ;;  %4299 = vmatprep.subr.mxu1 %v3908_v62  ;;  %v3894_v61 = vld [vmem:[%s6208_s22 + $0x80] sm:$0xff] }
 0x9bb   :  { %4300 = vmatpush3.msra.mxu1 %v3892_v48  ;;  %v3878_v62 = vld [vmem:[%s6208_s22] sm:$0xff] }
 0x9bc   :  { %3811 = vmatmul.mubr.f32.vlgmr.msra.gmra.mxu0 %v3642_v3  ;;  %4301 = vmatprep.subr.mxu1 %v3907_v2 }
 0x9bd   :  { %4333 = vmatpush3.msra.mxu0 %v3860_v4  ;;  %4302 = vmatpush3.msra.mxu1 %v3891_v19 }
 0x9be   :  { %4334 = vmatprep.subr.mxu0 %v3875_v21  ;;  %4303 = vmatprep.subr.mxu1 %v3906_v63 }
 0x9bf   :  { %4335 = vmatpush3.msra.mxu0 %v3859_v46  ;;  %4304 = vmatpush3.msra.mxu1 %v3890_v54 }
 0x9c0   :  { %4336 = vmatprep.subr.mxu0 %v3874_v22  ;;  %4305 = vmatprep.subr.mxu1 %v3905_v52 }
 0x9c1   :  { %4337 = vmatpush3.msra.mxu0 %v3858_v23  ;;  %4306 = vmatpush3.msra.mxu1 %v3889_v27 }
 0x9c2   :  { %4338 = vmatprep.subr.mxu0 %v3873_v31  ;;  %4307 = vmatprep.subr.mxu1 %v3904_v29 }
 0x9c3   :  { %4339 = vmatpush3.msra.mxu0 %v3857_v17  ;;  %4308 = vmatpush3.msra.mxu1 %v3888_v34 }
 0x9c4   :  { %4340 = vmatprep.subr.mxu0 %v3872_v25  ;;  %4309 = vmatprep.subr.mxu1 %v3903_v38 }
 0x9c5   :  { %4341 = vmatpush3.msra.mxu0 %v3856_v41  ;;  %4310 = vmatpush3.msra.mxu1 %v3887_v40 }
 0x9c6   :  { %4342 = vmatprep.subr.mxu0 %v3871_v26  ;;  %4311 = vmatprep.subr.mxu1 %v3902_v14 }
 0x9c7   :  { %4343 = vmatpush3.msra.mxu0 %v3855_v28  ;;  %4312 = vmatpush3.msra.mxu1 %v3886_v58 }
 0x9c8   :  { %4344 = vmatprep.subr.mxu0 %v3870_v0  ;;  %4313 = vmatprep.subr.mxu1 %v3901_v43 }
 0x9c9   :  { %4345 = vmatpush3.msra.mxu0 %v3854_v37  ;;  %4314 = vmatpush3.msra.mxu1 %v3885_v47 }
 0x9ca   :  { %4346 = vmatprep.subr.mxu0 %v3869_v39  ;;  %4315 = vmatprep.subr.mxu1 %v3900_v5 }
 0x9cb   :  { %4347 = vmatpush3.msra.mxu0 %v3853_v20  ;;  %4316 = vmatpush3.msra.mxu1 %v3884_v10 }
 0x9cc   :  { %4348 = vmatprep.subr.mxu0 %v3868_v24  ;;  %4317 = vmatprep.subr.mxu1 %v3899_v12 }
 0x9cd   :  { %4349 = vmatpush3.msra.mxu0 %v3852_v42  ;;  %4318 = vmatpush3.msra.mxu1 %v3883_v50 }
 0x9ce   :  { %4350 = vmatprep.subr.mxu0 %v3867_v45  ;;  %4319 = vmatprep.subr.mxu1 %v3898_v16 }
 0x9cf   :  { %4351 = vmatpush3.msra.mxu0 %v3851_v49  ;;  %4320 = vmatpush3.msra.mxu1 %v3882_v6 }
 0x9d0   :  { %4352 = vmatprep.subr.mxu0 %v3866_v9  ;;  %4321 = vmatprep.subr.mxu1 %v3897_v8 }
 0x9d1   :  { %4353 = vmatpush3.msra.mxu0 %v3850_v11  ;;  %4322 = vmatpush3.msra.mxu1 %v3881_v44 }
 0x9d2   :  { %4354 = vmatprep.subr.mxu0 %v3865_v56  ;;  %4323 = vmatprep.subr.mxu1 %v3896_v33 }
 0x9d3   :  { %4355 = vmatpush3.msra.mxu0 %v3849_v15  ;;  %4324 = vmatpush3.msra.mxu1 %v3880_v55 }
 0x9d4   :  { %4356 = vmatprep.subr.mxu0 %v3864_v18  ;;  %4325 = vmatprep.subr.mxu1 %v3895_v57 }
 0x9d5   :  { %4357 = vmatpush3.msra.mxu0 %v3848_v7  ;;  %4326 = vmatpush3.msra.mxu1 %v3879_v59 }
 0x9d6   :  { %4358 = vmatprep.subr.mxu0 %v3863_v51  ;;  %4327 = vmatprep.subr.mxu1 %v3894_v61 }
 0x9d7   :  { %4359 = vmatpush3.msra.mxu0 %v3847_v30  ;;  %4328 = vmatpush3.msra.mxu1 %v3878_v62 }
 0x9d8   :  { %4360 = vmatprep.subr.mxu0 %v3862_v32 }
 0x9d9   :  { %4361 = vmatpush3.msra.mxu0 %v3846_v60 }
 0x9da   :  { %4362 = vmatprep.subr.mxu0 %v3861_v35 }
 0x9db   :  { %4363 = vmatpush3.msra.mxu0 %v3845_v36 }
 0xa78   :  { %v3741_v1 = vpop.f32.mrf.mxu1 }
 0xa79   :  { %v3820_v2 = vrot.slane %v3741_v1, %v4967_v53 }
 0xa7a   :  { %v3743_v48 = vpop.f32.mrf.mxu1 }
 0xa7b   :  { %v3824_v3 = vrot.slane %v3743_v48, %v4967_v53 }
 0xa7c   :  { %v3812_v4 = vpop.f32.mrf.mxu0 }
 0xa7d   :  { %v3827_v19 = vcombine.low %v3820_v2, %v3824_v3  ;;  %v3833_v46 = vrot.slane %v3812_v4, %v4967_v53 }
 0xa7e   :  { %v3814_v21 = vpop.f32.mrf.mxu0 }
 0xa7f   :  { %v3837_v22 = vrot.slane %v3814_v21, %v4967_v53  ;;  %v3829_v23 = vmul.f32 %v3827_v19, %v5835_v13  ;;  %v4156_v13 = vld [vmem:[#allocation25] ss:$0 sm:$0xff] }
 0xa81   :  { %v3840_v31 = vcombine.low %v3833_v46, %v3837_v22 }
 0xa83   :  { %v3842_v17 = vadd.f32 %v3840_v31, %v3829_v23 }
 0xa85   :  { %3843 = vst [vmem:[#allocation9] sm:$0xff] %v3842_v17 }
 0xa8c   :  { %v3844_v63 = vld [vmem:[#allocation9] sm:$0x33]  ;;  %v3877_v25 = vld [vmem:[#allocation9] sm:$0xcc] }
 0xa8d   :  { %v3987_v54 = vcombine.high %v3844_v63, %v3844_v63  ;;  %v3911_v41 = vcombine.high %v3877_v25, %v3877_v25  ;;  %v3912_v26 = vrot.slane %v3877_v25, 2 }
 0xa8f   :  { %4053 = vmatprep.mubr.f32.mxu0 %v3987_v54  ;;  %v3913_v52 = vrot.slane %v3911_v41, 2 }
 0xa90   :  { %4054 = vmatmul.mubr.f32.vlgmr.msra.gmra.mxu0 %v3844_v63 }
 0xa91   :  { %3980 = vmatprep.mubr.f32.mxu1 %v3913_v52 }
 0xa92   :  { %3981 = vmatmul.mubr.f32.vlgmr.msra.gmra.mxu1 %v3912_v26 }
 0xb50   :  { %v4364_v27 = vpop.f32.mrf.mxu0 }
 0xb52   :  { %v4329_v28 = vpop.f32.mrf.mxu1  ;;  %v4365_v29 = vpop.f32.mrf.mxu0 }
 0xb53   :  { %v4366_v53 = vadd.f32 %v4365_v29, %v4364_v27 }
 0xb54   :  { %v4330_v0 = vpop.f32.mrf.mxu1 }
 0xb55   :  { %v4331_v34 = vadd.f32 %v4330_v0, %v4329_v28 }
 0xb57   :  { %v4056_v37 = vadd.f32 %v4366_v53, %v4331_v34 }
 0xb59   :  { %v4066_v38 = vadd.f32 %v4156_v13, %v4056_v37 }
 0xb5b   :  { %v4069_v39 = vsel %vm4068_vm0, %v4066_v38, -inf  ;;  %4067 = vst [vmem:[%s6211_s25] sm:$0x3] %v4066_v38 }
 0xb5c   :  { %4070 = vmax.xlane.f32.xlu0 %v4069_v39 }
 0xbe5   :  { %v4071_v40 = vpop.xlane.xlu0 %4070 }
 0xbe6   :  { %v4072_v20 = vsub.f32 %v4066_v38, %v4071_v40 }
 0xbe8   :  { %v4073_v14 = vmul.f32 1.442695, %v4072_v20 }
 0xbea   :  { %4390 = vpow2.f32 %v4073_v14 }
 0xbf7   :  { %v4391_v24 = vpop.eup %4390 }
 0xbf8   :  { %v4075_v58 = vsel %vm4068_vm0, %v4391_v24, 0.0 }
 0xbf9   :  { %4076 = vadd.xlane.f32.xlu0 %v4075_v58 }
 0xc82   :  { %v4077_v42 = vpop.xlane.xlu0 %4076 }
 0xc83   :  { %4392 = vrcp.f32 %v4077_v42 }
 0xc90   :  { %v4393_v43 = vpop.eup %4392 }
 0xc91   :  { %v4079_v45 = vmul.f32 %v4393_v43, %v4391_v24 }
 0xc93   :  { %4080 = vst.msk [vmem:[#allocation27] sm:$0x3] %vm4068_vm0, %v4079_v45 }
 0xc94   :  { %4607 = shalt.err (!%p4604_p12)
}
 0xc95   :  { %4090 = dma.vmem_to_hbm [thread:$0]  %s4088_s29, 32, %s6210_s24, [#allocation12]  }
 0xc96   :  { %4628 = dma.done.wait [#allocation12], 32  }
 0xc97   :  { %4629 = vsyncadd [#allocation12], 4294967264 }
 0xc98   :  { %4098 = vsyncpa [#allocation11], 1 }
 0xc99   :  { %4099 = vsyncpa [#allocation14], 1 }
 0xc9a   :  { %4100 = vsyncpa [#allocation17], 1 }
 0xc9b   :  { %4101 = vsyncpa [#allocation20], 1 }
 0xc9c   :  { %4102 = vsyncpa [#allocation23], 1 }
 0xc9d   :  { %4103 = vsyncpa [#allocation26], 1 }
 0xc9e   :  { %4104 = vsyncpa [#allocation12], 1 }

</bundles_post_ra>
